<compile_context>
chip_gen: v7x
topology: tpu7x:2x2x1
jax: 0.10.0
libtpu: 0.0.40
codegen_flags: <defaults>
</compile_context>

<pallas_src>
import functools

import jax
import jax.numpy as jnp
from jax.experimental import pallas as pl
from jax.experimental.pallas import tpu as pltpu


# ----------------------------------------------------------------------------
# Wrapper-side weight / mask preprocessing (pure JAX, one-time per call)
# ----------------------------------------------------------------------------
def make_w_toeplitz(w, W, out_width=None, out_offset=0):
    """(27, Cin, Cout) Minkowski kernel -> (9, W*Cin, W*out_width).

    The kw tap is folded into the contraction (K) dimension; the W-axis "same"
    zero-padding is folded in by dropping out-of-range w_in rows, so K is
    exactly W*Cin (no padded activations needed).  Output columns are placed at
    lane offset `out_offset` within each w block of width `out_width` (used to
    pre-interleave the two branch outputs and remove the final concat).
    """
    _, Cin, Cout = w.shape
    if out_width is None:
        out_width = Cout
    w3 = w.reshape(3, 3, 3, Cin, Cout)
    T = jnp.zeros((3, 3, W, Cin, W, out_width), w.dtype)
    for w_out in range(W):
        for kw in range(3):
            w_in = w_out + kw - 1
            if 0 <= w_in < W:
                T = T.at[:, :, w_in, :, w_out,
                         out_offset:out_offset + Cout].set(w3[:, :, kw, :, :])
    return T.reshape(9, W * Cin, W * out_width)


def make_w_1x1(w, W, out_width=None, out_offset=0):
    """(1, Cin, Cout) -> block-diagonal (W*Cin, W*out_width): the 1x1 conv is a
    single matmul on the lane-packed (D*H, W*Cin) slab."""
    _, Cin, Cout = w.shape
    if out_width is None:
        out_width = Cout
    blk = jnp.zeros((Cin, out_width), w.dtype)
    blk = blk.at[:, out_offset:out_offset + Cout].set(w[0])
    return jnp.kron(jnp.eye(W, dtype=w.dtype), blk)


def make_bias(b, W, out_width=None, out_offset=0):
    """(1, Cout) -> (1, W*out_width) matching the (w, c) lane packing."""
    _, Cout = b.shape
    if out_width is None:
        out_width = Cout
    row = jnp.zeros((1, out_width), b.dtype)
    row = row.at[:, out_offset:out_offset + Cout].set(b)
    return jnp.tile(row, (1, W))


def make_tap_masks(D, H):
    """(9, D*H, 1) f32 row-validity masks for the 9 (kd,kh) taps (zero pad)."""
    d = jnp.arange(D)[:, None]           # (D, 1)
    h = jnp.arange(H)[None, :]           # (1, H)
    masks = []
    for kd in range(3):
        for kh in range(3):
            ok = ((d + kd - 1 >= 0) & (d + kd - 1 < D)
                  & (h + kh - 1 >= 0) & (h + kh - 1 < H))
            masks.append(ok.reshape(D * H, 1))
    return jnp.stack(masks).astype(jnp.float32)


# ----------------------------------------------------------------------------
# Fused Pallas kernel: both branches + interleaved outputs + residual
# ----------------------------------------------------------------------------
def _inception_kernel(x_ref, masks_ref, t00_ref, b00_ref, t01_ref, b01_ref,
                      w10_ref, b10_ref, t11_ref, b11_ref, w12_ref, b12_ref,
                      o_ref, *, D, H):
    DH = D * H
    x2d = x_ref[...]                                    # (D*H, W*C), lane-dense

    def conv3x3(x_val, t_ref, b_ref, relu):
        # x_val: (D*H, W*cin).  Each (kd,kh) tap shift is a sublane roll of the
        # resident slab (XLU slot) + a precomputed row-mask multiply (VPU),
        # fed straight into the Toeplitz matmul.  No scratches, no relayouts.
        n_out = t_ref.shape[-1]
        acc = jnp.zeros((DH, n_out), jnp.float32)
        for kd in range(3):
            for kh in range(3):
                if kd == 1 and kh == 1:
                    lhs = x_val                          # center tap: no shift, no mask
                else:
                    s = (kd - 1) * H + (kh - 1)          # want shifted[r] = x_val[r + s]
                    shifted = pltpu.roll(x_val, (-s) % DH, axis=0)
                    lhs = shifted * masks_ref[kd * 3 + kh]
                acc = acc + jnp.dot(lhs.astype(t_ref.dtype), t_ref[kd * 3 + kh],
                                    preferred_element_type=jnp.float32)
        acc = acc + b_ref[...]                           # bias in f32
        if relu:
            acc = jnp.maximum(acc, 0.0)
        return acc                                       # (D*H, n_out) f32

    # ---- branch 0: conv3x3 (C->C/4) + relu -> conv3x3 (C/4->C/2) ----
    h0 = conv3x3(x2d, t00_ref, b00_ref, relu=True)       # (DH, W*C4)
    out0 = conv3x3(h0, t01_ref, b01_ref, relu=False)     # (DH, W*C); branch-1 lanes are 0

    # ---- branch 1: 1x1 (C->C/4)+relu -> conv3x3 (C/4->C/4)+relu -> 1x1 (C/4->C/2) ----
    h1 = jnp.dot(x2d.astype(w10_ref.dtype), w10_ref[...],
                 preferred_element_type=jnp.float32) + b10_ref[...]
    h1 = jnp.maximum(h1, 0.0)                            # (DH, W*C4)
    h1 = conv3x3(h1, t11_ref, b11_ref, relu=True)        # (DH, W*C4)
    out1 = jnp.dot(h1.astype(w12_ref.dtype), w12_ref[...],
                   preferred_element_type=jnp.float32) + b12_ref[...]  # (DH, W*C)

    # Concat is free (columns pre-interleaved wrapper-side); residual is
    # re-read from x_ref here so the input slab isn't live across both branches.
    o_ref[...] = (out0 + out1 + x_ref[...].astype(jnp.float32)).astype(o_ref.dtype)


# ----------------------------------------------------------------------------
# Wrapper
# ----------------------------------------------------------------------------
def inception_resnet_forward(x, params, compute_dtype=jnp.float32):
    """x: (N, D, H, W, C) NDHWC dense voxel grid.

    compute_dtype: matmul input dtype.  Use jnp.bfloat16 on v6e/v7x for ~2x MXU
    throughput and half the weight VMEM; accumulation/bias/relu/residual stay f32.
    """
    N, D, H, W, C = x.shape
    assert C % 4 == 0
    C4, C2 = C // 4, C // 2
    DH, WC = D * H, W * C

    wd = compute_dtype
    t00 = make_w_toeplitz(params["w0_0"], W).astype(wd)                          # (9, W*C,  W*C4)
    t01 = make_w_toeplitz(params["w0_1"], W, out_width=C, out_offset=0).astype(wd)   # (9, W*C4, W*C)
    t11 = make_w_toeplitz(params["w1_1"], W).astype(wd)                          # (9, W*C4, W*C4)
    w10 = make_w_1x1(params["w1_0"], W).astype(wd)                               # (W*C,  W*C4)
    w12 = make_w_1x1(params["w1_2"], W, out_width=C, out_offset=C2).astype(wd)   # (W*C4, W*C)
    b00 = make_bias(params["b0_0"], W)                                           # biases stay f32
    b01 = make_bias(params["b0_1"], W, out_width=C, out_offset=0)
    b10 = make_bias(params["b1_0"], W)
    b11 = make_bias(params["b1_1"], W)
    b12 = make_bias(params["b1_2"], W, out_width=C, out_offset=C2)
    masks = make_tap_masks(D, H)                                                 # (9, D*H, 1)

    # Single lane-dense working shape (pure metadata reshape, no copy).
    x_flat = x.reshape(N, DH, WC)

    kernel = functools.partial(_inception_kernel, D=D, H=H)

    def const(arr):
        nd = arr.ndim
        return pl.BlockSpec(arr.shape, lambda n, _nd=nd: (0,) * _nd)

    consts = (masks, t00, b00, t01, b01, w10, b10, t11, b11, w12, b12)

    flops = 2 * N * DH * (9 * WC * (W * C4)           # conv0_0
                          + 9 * (W * C4) * WC         # conv0_1 (lane-interleaved)
                          + 9 * (W * C4) * (W * C4)   # conv1_1
                          + WC * (W * C4)             # conv1_0 (block-diag 1x1)
                          + (W * C4) * WC)            # conv1_2 (lane-interleaved)
    bytes_accessed = 2 * x_flat.size * x_flat.dtype.itemsize + sum(
        int(a.size) * a.dtype.itemsize for a in consts)

    out = pl.pallas_call(
        kernel,
        out_shape=jax.ShapeDtypeStruct((N, DH, WC), x.dtype),
        grid=(N,),
        in_specs=[pl.BlockSpec((None, DH, WC), lambda n: (n, 0, 0))]
                 + [const(a) for a in consts],
        out_specs=pl.BlockSpec((None, DH, WC), lambda n: (n, 0, 0)),
        compiler_params=pltpu.CompilerParams(
            # TODO(synk): for odd N on v7x add a second parallel axis (e.g.
            # split D with a 1-plane halo) so both TensorCores stay busy.
            dimension_semantics=("parallel",),
            # 32 MiB is v7x-safe; raise toward 64-100 MiB on v5e/v6e (128 MiB
            # physical) before resorting to spatial tiling.
            vmem_limit_bytes=32 * 1024 * 1024,
        ),
        cost_estimate=pl.CostEstimate(flops=int(flops), transcendentals=0,
                                      bytes_accessed=int(bytes_accessed)),
    )(x_flat, *consts)
    return out.reshape(N, D, H, W, C)


# ----------------------------------------------------------------------------
# Pure-JAX reference (same math, no Pallas) for a correctness sanity check.
# ----------------------------------------------------------------------------
def conv3d_ref(x, w, b, ksize, apply_relu):
    N, D, H, W, Cin = x.shape
    Cout = w.shape[-1]
    xp = jnp.pad(x, ((0, 0), (1, 1), (1, 1), (1, 1), (0, 0))) if ksize == 3 else x
    out = jnp.zeros((N, D, H, W, Cout), jnp.float32)
    k = 0
    for kd in range(ksize):
        for kh in range(ksize):
            for kw in range(ksize):
                patch = xp[:, kd:kd + D, kh:kh + H, kw:kw + W, :]
                out = out + jnp.einsum("ndhwc,co->ndhwo", patch, w[k])
                k += 1
    out = out + b[0]
    return jnp.maximum(out, 0.0) if apply_relu else out


def inception_resnet_ref(x, p):
    h0 = conv3d_ref(x, p["w0_0"], p["b0_0"], 3, True)
    out0 = conv3d_ref(h0, p["w0_1"], p["b0_1"], 3, False)
    h1 = conv3d_ref(x, p["w1_0"], p["b1_0"], 1, True)
    h1 = conv3d_ref(h1, p["w1_1"], p["b1_1"], 3, True)
    out1 = conv3d_ref(h1, p["w1_2"], p["b1_2"], 1, False)
    return jnp.concatenate([out0, out1], axis=-1) + x


# ----------------------------------------------------------------------------
# Deterministic parameter init (MinkowskiConvolution layout: (k^3, Cin, Cout))
# ----------------------------------------------------------------------------
def init_params(key, channels):
    c, c4, c2 = channels, channels // 4, channels // 2
    shapes = {
        "w0_0": (27, c, c4), "b0_0": (1, c4),
        "w0_1": (27, c4, c2), "b0_1": (1, c2),
        "w1_0": (1, c, c4), "b1_0": (1, c4),
        "w1_1": (27, c4, c4), "b1_1": (1, c4),
        "w1_2": (1, c4, c2), "b1_2": (1, c2),
    }
    params = {}
    for name, shp in sorted(shapes.items()):
        key, sub = jax.random.split(key)
        params[name] = (0.1 * jax.random.normal(sub, shp)).astype(jnp.float32)
    return params


if __name__ == "__main__":
    key = jax.random.PRNGKey(0)
    # batch, channels (divisible by 4), cubic spatial size.
    # W*C = 128 -> lane-dense in/out slabs; D*H = 64 -> whole-vreg sublane rolls.
    N, C, S = 2, 16, 8
    kx, kp = jax.random.split(key)
    x = jax.random.normal(kx, (N, S, S, S, C), dtype=jnp.float32)   # NDHWC
    params = init_params(kp, C)

    out = inception_resnet_forward(x, params)
    out = jax.block_until_ready(out)

    ref = inception_resnet_ref(x, params)
    assert out.shape == x.shape
    assert jnp.allclose(out, ref, rtol=1e-4, atol=1e-4), "mismatch vs reference"

    print("KERNEL_OK")
</pallas_src>

<mosaic_0001>
module attributes {stable_mosaic.version = 11 : i64} {
  func.func @_inception_kernel(%arg0: i32, %arg1: memref<1x64x128xf32, #tpu.memory_space<vmem>>, %arg2: memref<9x64x1xf32, #tpu.memory_space<vmem>>, %arg3: memref<9x128x32xf32, #tpu.memory_space<vmem>>, %arg4: memref<1x32xf32, #tpu.memory_space<vmem>>, %arg5: memref<9x32x128xf32, #tpu.memory_space<vmem>>, %arg6: memref<1x128xf32, #tpu.memory_space<vmem>>, %arg7: memref<128x32xf32, #tpu.memory_space<vmem>>, %arg8: memref<1x32xf32, #tpu.memory_space<vmem>>, %arg9: memref<9x32x32xf32, #tpu.memory_space<vmem>>, %arg10: memref<1x32xf32, #tpu.memory_space<vmem>>, %arg11: memref<32x128xf32, #tpu.memory_space<vmem>>, %arg12: memref<1x128xf32, #tpu.memory_space<vmem>>, %arg13: memref<1x64x128xf32, #tpu.memory_space<vmem>>) attributes {dimension_semantics = [#tpu.dimension_semantics<parallel>], iteration_bounds = array<i64: 2>, scalar_prefetch = 0 : i64, scratch_operands = 0 : i64, tpu.core_type = #tpu.core_type<tc>, window_params = [{transform_indices = @transform_0, window_bounds = array<i64: 1, 64, 128>}, {pipeline_mode = #tpu.pipeline_mode<synchronous>, transform_indices = @transform_1, window_bounds = array<i64: 9, 64, 1>}, {pipeline_mode = #tpu.pipeline_mode<synchronous>, transform_indices = @transform_2, window_bounds = array<i64: 9, 128, 32>}, {pipeline_mode = #tpu.pipeline_mode<synchronous>, transform_indices = @transform_3, window_bounds = array<i64: 1, 32>}, {pipeline_mode = #tpu.pipeline_mode<synchronous>, transform_indices = @transform_4, window_bounds = array<i64: 9, 32, 128>}, {pipeline_mode = #tpu.pipeline_mode<synchronous>, transform_indices = @transform_5, window_bounds = array<i64: 1, 128>}, {pipeline_mode = #tpu.pipeline_mode<synchronous>, transform_indices = @transform_6, window_bounds = array<i64: 128, 32>}, {pipeline_mode = #tpu.pipeline_mode<synchronous>, transform_indices = @transform_7, window_bounds = array<i64: 1, 32>}, {pipeline_mode = #tpu.pipeline_mode<synchronous>, transform_indices = @transform_8, window_bounds = array<i64: 9, 32, 32>}, {pipeline_mode = #tpu.pipeline_mode<synchronous>, transform_indices = @transform_9, window_bounds = array<i64: 1, 32>}, {pipeline_mode = #tpu.pipeline_mode<synchronous>, transform_indices = @transform_10, window_bounds = array<i64: 32, 128>}, {pipeline_mode = #tpu.pipeline_mode<synchronous>, transform_indices = @transform_11, window_bounds = array<i64: 1, 128>}, {transform_indices = @transform_12, window_bounds = array<i64: 1, 64, 128>}]} {
    %c0 = arith.constant 0 : index
    %c0_0 = arith.constant 0 : index
    %c0_1 = arith.constant 0 : index
    %0 = vector.load %arg1[%c0, %c0_0, %c0_1] : memref<1x64x128xf32, #tpu.memory_space<vmem>>, vector<1x64x128xf32>
    %1 = vector.shape_cast %0 : vector<1x64x128xf32> to vector<64x128xf32>
    %cst = arith.constant 0.000000e+00 : f32
    %2 = vector.broadcast %cst : f32 to vector<64x32xf32>
    %c9_i32 = arith.constant 9 : i32
    %3 = tpu.dynamic_rotate %1 by %c9_i32 dim 0 : vector<64x128xf32>, i32 -> vector<64x128xf32>
    %c0_2 = arith.constant 0 : index
    %c0_3 = arith.constant 0 : index
    %c0_4 = arith.constant 0 : index
    %4 = vector.load %arg2[%c0_2, %c0_3, %c0_4] : memref<9x64x1xf32, #tpu.memory_space<vmem>>, vector<1x64x1xf32>
    %5 = vector.shape_cast %4 : vector<1x64x1xf32> to vector<64x1xf32>
    %6 = vector.broadcast %5 : vector<64x1xf32> to vector<64x128xf32>
    %7 = arith.mulf %3, %6 : vector<64x128xf32>
    %c0_5 = arith.constant 0 : index
    %c0_6 = arith.constant 0 : index
    %c0_7 = arith.constant 0 : index
    %8 = vector.load %arg3[%c0_5, %c0_6, %c0_7] : memref<9x128x32xf32, #tpu.memory_space<vmem>>, vector<1x128x32xf32>
    %9 = vector.shape_cast %8 : vector<1x128x32xf32> to vector<128x32xf32>
    %cst_8 = arith.constant dense<0.000000e+00> : vector<64x32xf32>
    %10 = tpu.matmul %7, %9, %cst_8 {dimension_numbers = #tpu.dot_dimension_numbers<[1], [0], [0], [1], [0, 0, 1, 1], [], []>} : vector<64x128xf32>, vector<128x32xf32>, vector<64x32xf32> -> vector<64x32xf32>
    %11 = arith.addf %2, %10 : vector<64x32xf32>
    %c8_i32 = arith.constant 8 : i32
    %12 = tpu.dynamic_rotate %1 by %c8_i32 dim 0 : vector<64x128xf32>, i32 -> vector<64x128xf32>
    %c1 = arith.constant 1 : index
    %c0_9 = arith.constant 0 : index
    %c0_10 = arith.constant 0 : index
    %13 = vector.load %arg2[%c1, %c0_9, %c0_10] : memref<9x64x1xf32, #tpu.memory_space<vmem>>, vector<1x64x1xf32>
    %14 = vector.shape_cast %13 : vector<1x64x1xf32> to vector<64x1xf32>
    %15 = vector.broadcast %14 : vector<64x1xf32> to vector<64x128xf32>
    %16 = arith.mulf %12, %15 : vector<64x128xf32>
    %c1_11 = arith.constant 1 : index
    %c0_12 = arith.constant 0 : index
    %c0_13 = arith.constant 0 : index
    %17 = vector.load %arg3[%c1_11, %c0_12, %c0_13] : memref<9x128x32xf32, #tpu.memory_space<vmem>>, vector<1x128x32xf32>
    %18 = vector.shape_cast %17 : vector<1x128x32xf32> to vector<128x32xf32>
    %cst_14 = arith.constant dense<0.000000e+00> : vector<64x32xf32>
    %19 = tpu.matmul %16, %18, %cst_14 {dimension_numbers = #tpu.dot_dimension_numbers<[1], [0], [0], [1], [0, 0, 1, 1], [], []>} : vector<64x128xf32>, vector<128x32xf32>, vector<64x32xf32> -> vector<64x32xf32>
    %20 = arith.addf %11, %19 : vector<64x32xf32>
    %c7_i32 = arith.constant 7 : i32
    %21 = tpu.dynamic_rotate %1 by %c7_i32 dim 0 : vector<64x128xf32>, i32 -> vector<64x128xf32>
    %c2 = arith.constant 2 : index
    %c0_15 = arith.constant 0 : index
    %c0_16 = arith.constant 0 : index
    %22 = vector.load %arg2[%c2, %c0_15, %c0_16] : memref<9x64x1xf32, #tpu.memory_space<vmem>>, vector<1x64x1xf32>
    %23 = vector.shape_cast %22 : vector<1x64x1xf32> to vector<64x1xf32>
    %24 = vector.broadcast %23 : vector<64x1xf32> to vector<64x128xf32>
    %25 = arith.mulf %21, %24 : vector<64x128xf32>
    %c2_17 = arith.constant 2 : index
    %c0_18 = arith.constant 0 : index
    %c0_19 = arith.constant 0 : index
    %26 = vector.load %arg3[%c2_17, %c0_18, %c0_19] : memref<9x128x32xf32, #tpu.memory_space<vmem>>, vector<1x128x32xf32>
    %27 = vector.shape_cast %26 : vector<1x128x32xf32> to vector<128x32xf32>
    %cst_20 = arith.constant dense<0.000000e+00> : vector<64x32xf32>
    %28 = tpu.matmul %25, %27, %cst_20 {dimension_numbers = #tpu.dot_dimension_numbers<[1], [0], [0], [1], [0, 0, 1, 1], [], []>} : vector<64x128xf32>, vector<128x32xf32>, vector<64x32xf32> -> vector<64x32xf32>
    %29 = arith.addf %20, %28 : vector<64x32xf32>
    %c1_i32 = arith.constant 1 : i32
    %30 = tpu.dynamic_rotate %1 by %c1_i32 dim 0 : vector<64x128xf32>, i32 -> vector<64x128xf32>
    %c3 = arith.constant 3 : index
    %c0_21 = arith.constant 0 : index
    %c0_22 = arith.constant 0 : index
    %31 = vector.load %arg2[%c3, %c0_21, %c0_22] : memref<9x64x1xf32, #tpu.memory_space<vmem>>, vector<1x64x1xf32>
    %32 = vector.shape_cast %31 : vector<1x64x1xf32> to vector<64x1xf32>
    %33 = vector.broadcast %32 : vector<64x1xf32> to vector<64x128xf32>
    %34 = arith.mulf %30, %33 : vector<64x128xf32>
    %c3_23 = arith.constant 3 : index
    %c0_24 = arith.constant 0 : index
    %c0_25 = arith.constant 0 : index
    %35 = vector.load %arg3[%c3_23, %c0_24, %c0_25] : memref<9x128x32xf32, #tpu.memory_space<vmem>>, vector<1x128x32xf32>
    %36 = vector.shape_cast %35 : vector<1x128x32xf32> to vector<128x32xf32>
    %cst_26 = arith.constant dense<0.000000e+00> : vector<64x32xf32>
    %37 = tpu.matmul %34, %36, %cst_26 {dimension_numbers = #tpu.dot_dimension_numbers<[1], [0], [0], [1], [0, 0, 1, 1], [], []>} : vector<64x128xf32>, vector<128x32xf32>, vector<64x32xf32> -> vector<64x32xf32>
    %38 = arith.addf %29, %37 : vector<64x32xf32>
    %c4 = arith.constant 4 : index
    %c0_27 = arith.constant 0 : index
    %c0_28 = arith.constant 0 : index
    %39 = vector.load %arg3[%c4, %c0_27, %c0_28] : memref<9x128x32xf32, #tpu.memory_space<vmem>>, vector<1x128x32xf32>
    %40 = vector.shape_cast %39 : vector<1x128x32xf32> to vector<128x32xf32>
    %cst_29 = arith.constant dense<0.000000e+00> : vector<64x32xf32>
    %41 = tpu.matmul %1, %40, %cst_29 {dimension_numbers = #tpu.dot_dimension_numbers<[1], [0], [0], [1], [0, 0, 1, 1], [], []>} : vector<64x128xf32>, vector<128x32xf32>, vector<64x32xf32> -> vector<64x32xf32>
    %42 = arith.addf %38, %41 : vector<64x32xf32>
    %c63_i32 = arith.constant 63 : i32
    %43 = tpu.dynamic_rotate %1 by %c63_i32 dim 0 : vector<64x128xf32>, i32 -> vector<64x128xf32>
    %c5 = arith.constant 5 : index
    %c0_30 = arith.constant 0 : index
    %c0_31 = arith.constant 0 : index
    %44 = vector.load %arg2[%c5, %c0_30, %c0_31] : memref<9x64x1xf32, #tpu.memory_space<vmem>>, vector<1x64x1xf32>
    %45 = vector.shape_cast %44 : vector<1x64x1xf32> to vector<64x1xf32>
    %46 = vector.broadcast %45 : vector<64x1xf32> to vector<64x128xf32>
    %47 = arith.mulf %43, %46 : vector<64x128xf32>
    %c5_32 = arith.constant 5 : index
    %c0_33 = arith.constant 0 : index
    %c0_34 = arith.constant 0 : index
    %48 = vector.load %arg3[%c5_32, %c0_33, %c0_34] : memref<9x128x32xf32, #tpu.memory_space<vmem>>, vector<1x128x32xf32>
    %49 = vector.shape_cast %48 : vector<1x128x32xf32> to vector<128x32xf32>
    %cst_35 = arith.constant dense<0.000000e+00> : vector<64x32xf32>
    %50 = tpu.matmul %47, %49, %cst_35 {dimension_numbers = #tpu.dot_dimension_numbers<[1], [0], [0], [1], [0, 0, 1, 1], [], []>} : vector<64x128xf32>, vector<128x32xf32>, vector<64x32xf32> -> vector<64x32xf32>
    %51 = arith.addf %42, %50 : vector<64x32xf32>
    %c57_i32 = arith.constant 57 : i32
    %52 = tpu.dynamic_rotate %1 by %c57_i32 dim 0 : vector<64x128xf32>, i32 -> vector<64x128xf32>
    %c6 = arith.constant 6 : index
    %c0_36 = arith.constant 0 : index
    %c0_37 = arith.constant 0 : index
    %53 = vector.load %arg2[%c6, %c0_36, %c0_37] : memref<9x64x1xf32, #tpu.memory_space<vmem>>, vector<1x64x1xf32>
    %54 = vector.shape_cast %53 : vector<1x64x1xf32> to vector<64x1xf32>
    %55 = vector.broadcast %54 : vector<64x1xf32> to vector<64x128xf32>
    %56 = arith.mulf %52, %55 : vector<64x128xf32>
    %c6_38 = arith.constant 6 : index
    %c0_39 = arith.constant 0 : index
    %c0_40 = arith.constant 0 : index
    %57 = vector.load %arg3[%c6_38, %c0_39, %c0_40] : memref<9x128x32xf32, #tpu.memory_space<vmem>>, vector<1x128x32xf32>
    %58 = vector.shape_cast %57 : vector<1x128x32xf32> to vector<128x32xf32>
    %cst_41 = arith.constant dense<0.000000e+00> : vector<64x32xf32>
    %59 = tpu.matmul %56, %58, %cst_41 {dimension_numbers = #tpu.dot_dimension_numbers<[1], [0], [0], [1], [0, 0, 1, 1], [], []>} : vector<64x128xf32>, vector<128x32xf32>, vector<64x32xf32> -> vector<64x32xf32>
    %60 = arith.addf %51, %59 : vector<64x32xf32>
    %c56_i32 = arith.constant 56 : i32
    %61 = tpu.dynamic_rotate %1 by %c56_i32 dim 0 : vector<64x128xf32>, i32 -> vector<64x128xf32>
    %c7 = arith.constant 7 : index
    %c0_42 = arith.constant 0 : index
    %c0_43 = arith.constant 0 : index
    %62 = vector.load %arg2[%c7, %c0_42, %c0_43] : memref<9x64x1xf32, #tpu.memory_space<vmem>>, vector<1x64x1xf32>
    %63 = vector.shape_cast %62 : vector<1x64x1xf32> to vector<64x1xf32>
    %64 = vector.broadcast %63 : vector<64x1xf32> to vector<64x128xf32>
    %65 = arith.mulf %61, %64 : vector<64x128xf32>
    %c7_44 = arith.constant 7 : index
    %c0_45 = arith.constant 0 : index
    %c0_46 = arith.constant 0 : index
    %66 = vector.load %arg3[%c7_44, %c0_45, %c0_46] : memref<9x128x32xf32, #tpu.memory_space<vmem>>, vector<1x128x32xf32>
    %67 = vector.shape_cast %66 : vector<1x128x32xf32> to vector<128x32xf32>
    %cst_47 = arith.constant dense<0.000000e+00> : vector<64x32xf32>
    %68 = tpu.matmul %65, %67, %cst_47 {dimension_numbers = #tpu.dot_dimension_numbers<[1], [0], [0], [1], [0, 0, 1, 1], [], []>} : vector<64x128xf32>, vector<128x32xf32>, vector<64x32xf32> -> vector<64x32xf32>
    %69 = arith.addf %60, %68 : vector<64x32xf32>
    %c55_i32 = arith.constant 55 : i32
    %70 = tpu.dynamic_rotate %1 by %c55_i32 dim 0 : vector<64x128xf32>, i32 -> vector<64x128xf32>
    %c8 = arith.constant 8 : index
    %c0_48 = arith.constant 0 : index
    %c0_49 = arith.constant 0 : index
    %71 = vector.load %arg2[%c8, %c0_48, %c0_49] : memref<9x64x1xf32, #tpu.memory_space<vmem>>, vector<1x64x1xf32>
    %72 = vector.shape_cast %71 : vector<1x64x1xf32> to vector<64x1xf32>
    %73 = vector.broadcast %72 : vector<64x1xf32> to vector<64x128xf32>
    %74 = arith.mulf %70, %73 : vector<64x128xf32>
    %c8_50 = arith.constant 8 : index
    %c0_51 = arith.constant 0 : index
    %c0_52 = arith.constant 0 : index
    %75 = vector.load %arg3[%c8_50, %c0_51, %c0_52] : memref<9x128x32xf32, #tpu.memory_space<vmem>>, vector<1x128x32xf32>
    %76 = vector.shape_cast %75 : vector<1x128x32xf32> to vector<128x32xf32>
    %cst_53 = arith.constant dense<0.000000e+00> : vector<64x32xf32>
    %77 = tpu.matmul %74, %76, %cst_53 {dimension_numbers = #tpu.dot_dimension_numbers<[1], [0], [0], [1], [0, 0, 1, 1], [], []>} : vector<64x128xf32>, vector<128x32xf32>, vector<64x32xf32> -> vector<64x32xf32>
    %78 = arith.addf %69, %77 : vector<64x32xf32>
    %c0_54 = arith.constant 0 : index
    %c0_55 = arith.constant 0 : index
    %79 = vector.load %arg4[%c0_54, %c0_55] : memref<1x32xf32, #tpu.memory_space<vmem>>, vector<1x32xf32>
    %80 = vector.broadcast %79 : vector<1x32xf32> to vector<64x32xf32>
    %81 = arith.addf %78, %80 : vector<64x32xf32>
    %cst_56 = arith.constant 0.000000e+00 : f32
    %82 = vector.broadcast %cst_56 : f32 to vector<64x32xf32>
    %83 = arith.maximumf %81, %82 : vector<64x32xf32>
    %cst_57 = arith.constant 0.000000e+00 : f32
    %84 = vector.broadcast %cst_57 : f32 to vector<64x128xf32>
    %c9_i32_58 = arith.constant 9 : i32
    %85 = tpu.dynamic_rotate %83 by %c9_i32_58 dim 0 : vector<64x32xf32>, i32 -> vector<64x32xf32>
    %c0_59 = arith.constant 0 : index
    %c0_60 = arith.constant 0 : index
    %c0_61 = arith.constant 0 : index
    %86 = vector.load %arg2[%c0_59, %c0_60, %c0_61] : memref<9x64x1xf32, #tpu.memory_space<vmem>>, vector<1x64x1xf32>
    %87 = vector.shape_cast %86 : vector<1x64x1xf32> to vector<64x1xf32>
    %88 = vector.broadcast %87 : vector<64x1xf32> to vector<64x32xf32>
    %89 = arith.mulf %85, %88 : vector<64x32xf32>
    %c0_62 = arith.constant 0 : index
    %c0_63 = arith.constant 0 : index
    %c0_64 = arith.constant 0 : index
    %90 = vector.load %arg5[%c0_62, %c0_63, %c0_64] : memref<9x32x128xf32, #tpu.memory_space<vmem>>, vector<1x32x128xf32>
    %91 = vector.shape_cast %90 : vector<1x32x128xf32> to vector<32x128xf32>
    %cst_65 = arith.constant dense<0.000000e+00> : vector<64x128xf32>
    %92 = tpu.matmul %89, %91, %cst_65 {dimension_numbers = #tpu.dot_dimension_numbers<[1], [0], [0], [1], [0, 0, 1, 1], [], []>} : vector<64x32xf32>, vector<32x128xf32>, vector<64x128xf32> -> vector<64x128xf32>
    %93 = arith.addf %84, %92 : vector<64x128xf32>
    %c8_i32_66 = arith.constant 8 : i32
    %94 = tpu.dynamic_rotate %83 by %c8_i32_66 dim 0 : vector<64x32xf32>, i32 -> vector<64x32xf32>
    %c1_67 = arith.constant 1 : index
    %c0_68 = arith.constant 0 : index
    %c0_69 = arith.constant 0 : index
    %95 = vector.load %arg2[%c1_67, %c0_68, %c0_69] : memref<9x64x1xf32, #tpu.memory_space<vmem>>, vector<1x64x1xf32>
    %96 = vector.shape_cast %95 : vector<1x64x1xf32> to vector<64x1xf32>
    %97 = vector.broadcast %96 : vector<64x1xf32> to vector<64x32xf32>
    %98 = arith.mulf %94, %97 : vector<64x32xf32>
    %c1_70 = arith.constant 1 : index
    %c0_71 = arith.constant 0 : index
    %c0_72 = arith.constant 0 : index
    %99 = vector.load %arg5[%c1_70, %c0_71, %c0_72] : memref<9x32x128xf32, #tpu.memory_space<vmem>>, vector<1x32x128xf32>
    %100 = vector.shape_cast %99 : vector<1x32x128xf32> to vector<32x128xf32>
    %cst_73 = arith.constant dense<0.000000e+00> : vector<64x128xf32>
    %101 = tpu.matmul %98, %100, %cst_73 {dimension_numbers = #tpu.dot_dimension_numbers<[1], [0], [0], [1], [0, 0, 1, 1], [], []>} : vector<64x32xf32>, vector<32x128xf32>, vector<64x128xf32> -> vector<64x128xf32>
    %102 = arith.addf %93, %101 : vector<64x128xf32>
    %c7_i32_74 = arith.constant 7 : i32
    %103 = tpu.dynamic_rotate %83 by %c7_i32_74 dim 0 : vector<64x32xf32>, i32 -> vector<64x32xf32>
    %c2_75 = arith.constant 2 : index
    %c0_76 = arith.constant 0 : index
    %c0_77 = arith.constant 0 : index
    %104 = vector.load %arg2[%c2_75, %c0_76, %c0_77] : memref<9x64x1xf32, #tpu.memory_space<vmem>>, vector<1x64x1xf32>
    %105 = vector.shape_cast %104 : vector<1x64x1xf32> to vector<64x1xf32>
    %106 = vector.broadcast %105 : vector<64x1xf32> to vector<64x32xf32>
    %107 = arith.mulf %103, %106 : vector<64x32xf32>
    %c2_78 = arith.constant 2 : index
    %c0_79 = arith.constant 0 : index
    %c0_80 = arith.constant 0 : index
    %108 = vector.load %arg5[%c2_78, %c0_79, %c0_80] : memref<9x32x128xf32, #tpu.memory_space<vmem>>, vector<1x32x128xf32>
    %109 = vector.shape_cast %108 : vector<1x32x128xf32> to vector<32x128xf32>
    %cst_81 = arith.constant dense<0.000000e+00> : vector<64x128xf32>
    %110 = tpu.matmul %107, %109, %cst_81 {dimension_numbers = #tpu.dot_dimension_numbers<[1], [0], [0], [1], [0, 0, 1, 1], [], []>} : vector<64x32xf32>, vector<32x128xf32>, vector<64x128xf32> -> vector<64x128xf32>
    %111 = arith.addf %102, %110 : vector<64x128xf32>
    %c1_i32_82 = arith.constant 1 : i32
    %112 = tpu.dynamic_rotate %83 by %c1_i32_82 dim 0 : vector<64x32xf32>, i32 -> vector<64x32xf32>
    %c3_83 = arith.constant 3 : index
    %c0_84 = arith.constant 0 : index
    %c0_85 = arith.constant 0 : index
    %113 = vector.load %arg2[%c3_83, %c0_84, %c0_85] : memref<9x64x1xf32, #tpu.memory_space<vmem>>, vector<1x64x1xf32>
    %114 = vector.shape_cast %113 : vector<1x64x1xf32> to vector<64x1xf32>
    %115 = vector.broadcast %114 : vector<64x1xf32> to vector<64x32xf32>
    %116 = arith.mulf %112, %115 : vector<64x32xf32>
    %c3_86 = arith.constant 3 : index
    %c0_87 = arith.constant 0 : index
    %c0_88 = arith.constant 0 : index
    %117 = vector.load %arg5[%c3_86, %c0_87, %c0_88] : memref<9x32x128xf32, #tpu.memory_space<vmem>>, vector<1x32x128xf32>
    %118 = vector.shape_cast %117 : vector<1x32x128xf32> to vector<32x128xf32>
    %cst_89 = arith.constant dense<0.000000e+00> : vector<64x128xf32>
    %119 = tpu.matmul %116, %118, %cst_89 {dimension_numbers = #tpu.dot_dimension_numbers<[1], [0], [0], [1], [0, 0, 1, 1], [], []>} : vector<64x32xf32>, vector<32x128xf32>, vector<64x128xf32> -> vector<64x128xf32>
    %120 = arith.addf %111, %119 : vector<64x128xf32>
    %c4_90 = arith.constant 4 : index
    %c0_91 = arith.constant 0 : index
    %c0_92 = arith.constant 0 : index
    %121 = vector.load %arg5[%c4_90, %c0_91, %c0_92] : memref<9x32x128xf32, #tpu.memory_space<vmem>>, vector<1x32x128xf32>
    %122 = vector.shape_cast %121 : vector<1x32x128xf32> to vector<32x128xf32>
    %cst_93 = arith.constant dense<0.000000e+00> : vector<64x128xf32>
    %123 = tpu.matmul %83, %122, %cst_93 {dimension_numbers = #tpu.dot_dimension_numbers<[1], [0], [0], [1], [0, 0, 1, 1], [], []>} : vector<64x32xf32>, vector<32x128xf32>, vector<64x128xf32> -> vector<64x128xf32>
    %124 = arith.addf %120, %123 : vector<64x128xf32>
    %c63_i32_94 = arith.constant 63 : i32
    %125 = tpu.dynamic_rotate %83 by %c63_i32_94 dim 0 : vector<64x32xf32>, i32 -> vector<64x32xf32>
    %c5_95 = arith.constant 5 : index
    %c0_96 = arith.constant 0 : index
    %c0_97 = arith.constant 0 : index
    %126 = vector.load %arg2[%c5_95, %c0_96, %c0_97] : memref<9x64x1xf32, #tpu.memory_space<vmem>>, vector<1x64x1xf32>
    %127 = vector.shape_cast %126 : vector<1x64x1xf32> to vector<64x1xf32>
    %128 = vector.broadcast %127 : vector<64x1xf32> to vector<64x32xf32>
    %129 = arith.mulf %125, %128 : vector<64x32xf32>
    %c5_98 = arith.constant 5 : index
    %c0_99 = arith.constant 0 : index
    %c0_100 = arith.constant 0 : index
    %130 = vector.load %arg5[%c5_98, %c0_99, %c0_100] : memref<9x32x128xf32, #tpu.memory_space<vmem>>, vector<1x32x128xf32>
    %131 = vector.shape_cast %130 : vector<1x32x128xf32> to vector<32x128xf32>
    %cst_101 = arith.constant dense<0.000000e+00> : vector<64x128xf32>
    %132 = tpu.matmul %129, %131, %cst_101 {dimension_numbers = #tpu.dot_dimension_numbers<[1], [0], [0], [1], [0, 0, 1, 1], [], []>} : vector<64x32xf32>, vector<32x128xf32>, vector<64x128xf32> -> vector<64x128xf32>
    %133 = arith.addf %124, %132 : vector<64x128xf32>
    %c57_i32_102 = arith.constant 57 : i32
    %134 = tpu.dynamic_rotate %83 by %c57_i32_102 dim 0 : vector<64x32xf32>, i32 -> vector<64x32xf32>
    %c6_103 = arith.constant 6 : index
    %c0_104 = arith.constant 0 : index
    %c0_105 = arith.constant 0 : index
    %135 = vector.load %arg2[%c6_103, %c0_104, %c0_105] : memref<9x64x1xf32, #tpu.memory_space<vmem>>, vector<1x64x1xf32>
    %136 = vector.shape_cast %135 : vector<1x64x1xf32> to vector<64x1xf32>
    %137 = vector.broadcast %136 : vector<64x1xf32> to vector<64x32xf32>
    %138 = arith.mulf %134, %137 : vector<64x32xf32>
    %c6_106 = arith.constant 6 : index
    %c0_107 = arith.constant 0 : index
    %c0_108 = arith.constant 0 : index
    %139 = vector.load %arg5[%c6_106, %c0_107, %c0_108] : memref<9x32x128xf32, #tpu.memory_space<vmem>>, vector<1x32x128xf32>
    %140 = vector.shape_cast %139 : vector<1x32x128xf32> to vector<32x128xf32>
    %cst_109 = arith.constant dense<0.000000e+00> : vector<64x128xf32>
    %141 = tpu.matmul %138, %140, %cst_109 {dimension_numbers = #tpu.dot_dimension_numbers<[1], [0], [0], [1], [0, 0, 1, 1], [], []>} : vector<64x32xf32>, vector<32x128xf32>, vector<64x128xf32> -> vector<64x128xf32>
    %142 = arith.addf %133, %141 : vector<64x128xf32>
    %c56_i32_110 = arith.constant 56 : i32
    %143 = tpu.dynamic_rotate %83 by %c56_i32_110 dim 0 : vector<64x32xf32>, i32 -> vector<64x32xf32>
    %c7_111 = arith.constant 7 : index
    %c0_112 = arith.constant 0 : index
    %c0_113 = arith.constant 0 : index
    %144 = vector.load %arg2[%c7_111, %c0_112, %c0_113] : memref<9x64x1xf32, #tpu.memory_space<vmem>>, vector<1x64x1xf32>
    %145 = vector.shape_cast %144 : vector<1x64x1xf32> to vector<64x1xf32>
    %146 = vector.broadcast %145 : vector<64x1xf32> to vector<64x32xf32>
    %147 = arith.mulf %143, %146 : vector<64x32xf32>
    %c7_114 = arith.constant 7 : index
    %c0_115 = arith.constant 0 : index
    %c0_116 = arith.constant 0 : index
    %148 = vector.load %arg5[%c7_114, %c0_115, %c0_116] : memref<9x32x128xf32, #tpu.memory_space<vmem>>, vector<1x32x128xf32>
    %149 = vector.shape_cast %148 : vector<1x32x128xf32> to vector<32x128xf32>
    %cst_117 = arith.constant dense<0.000000e+00> : vector<64x128xf32>
    %150 = tpu.matmul %147, %149, %cst_117 {dimension_numbers = #tpu.dot_dimension_numbers<[1], [0], [0], [1], [0, 0, 1, 1], [], []>} : vector<64x32xf32>, vector<32x128xf32>, vector<64x128xf32> -> vector<64x128xf32>
    %151 = arith.addf %142, %150 : vector<64x128xf32>
    %c55_i32_118 = arith.constant 55 : i32
    %152 = tpu.dynamic_rotate %83 by %c55_i32_118 dim 0 : vector<64x32xf32>, i32 -> vector<64x32xf32>
    %c8_119 = arith.constant 8 : index
    %c0_120 = arith.constant 0 : index
    %c0_121 = arith.constant 0 : index
    %153 = vector.load %arg2[%c8_119, %c0_120, %c0_121] : memref<9x64x1xf32, #tpu.memory_space<vmem>>, vector<1x64x1xf32>
    %154 = vector.shape_cast %153 : vector<1x64x1xf32> to vector<64x1xf32>
    %155 = vector.broadcast %154 : vector<64x1xf32> to vector<64x32xf32>
    %156 = arith.mulf %152, %155 : vector<64x32xf32>
    %c8_122 = arith.constant 8 : index
    %c0_123 = arith.constant 0 : index
    %c0_124 = arith.constant 0 : index
    %157 = vector.load %arg5[%c8_122, %c0_123, %c0_124] : memref<9x32x128xf32, #tpu.memory_space<vmem>>, vector<1x32x128xf32>
    %158 = vector.shape_cast %157 : vector<1x32x128xf32> to vector<32x128xf32>
    %cst_125 = arith.constant dense<0.000000e+00> : vector<64x128xf32>
    %159 = tpu.matmul %156, %158, %cst_125 {dimension_numbers = #tpu.dot_dimension_numbers<[1], [0], [0], [1], [0, 0, 1, 1], [], []>} : vector<64x32xf32>, vector<32x128xf32>, vector<64x128xf32> -> vector<64x128xf32>
    %160 = arith.addf %151, %159 : vector<64x128xf32>
    %c0_126 = arith.constant 0 : index
    %c0_127 = arith.constant 0 : index
    %161 = vector.load %arg6[%c0_126, %c0_127] : memref<1x128xf32, #tpu.memory_space<vmem>>, vector<1x128xf32>
    %162 = vector.broadcast %161 : vector<1x128xf32> to vector<64x128xf32>
    %163 = arith.addf %160, %162 : vector<64x128xf32>
    %c0_128 = arith.constant 0 : index
    %c0_129 = arith.constant 0 : index
    %164 = vector.load %arg7[%c0_128, %c0_129] : memref<128x32xf32, #tpu.memory_space<vmem>>, vector<128x32xf32>
    %cst_130 = arith.constant dense<0.000000e+00> : vector<64x32xf32>
    %165 = tpu.matmul %1, %164, %cst_130 {dimension_numbers = #tpu.dot_dimension_numbers<[1], [0], [0], [1], [0, 0, 1, 1], [], []>} : vector<64x128xf32>, vector<128x32xf32>, vector<64x32xf32> -> vector<64x32xf32>
    %c0_131 = arith.constant 0 : index
    %c0_132 = arith.constant 0 : index
    %166 = vector.load %arg8[%c0_131, %c0_132] : memref<1x32xf32, #tpu.memory_space<vmem>>, vector<1x32xf32>
    %167 = vector.broadcast %166 : vector<1x32xf32> to vector<64x32xf32>
    %168 = arith.addf %165, %167 : vector<64x32xf32>
    %cst_133 = arith.constant 0.000000e+00 : f32
    %169 = vector.broadcast %cst_133 : f32 to vector<64x32xf32>
    %170 = arith.maximumf %168, %169 : vector<64x32xf32>
    %cst_134 = arith.constant 0.000000e+00 : f32
    %171 = vector.broadcast %cst_134 : f32 to vector<64x32xf32>
    %c9_i32_135 = arith.constant 9 : i32
    %172 = tpu.dynamic_rotate %170 by %c9_i32_135 dim 0 : vector<64x32xf32>, i32 -> vector<64x32xf32>
    %c0_136 = arith.constant 0 : index
    %c0_137 = arith.constant 0 : index
    %c0_138 = arith.constant 0 : index
    %173 = vector.load %arg2[%c0_136, %c0_137, %c0_138] : memref<9x64x1xf32, #tpu.memory_space<vmem>>, vector<1x64x1xf32>
    %174 = vector.shape_cast %173 : vector<1x64x1xf32> to vector<64x1xf32>
    %175 = vector.broadcast %174 : vector<64x1xf32> to vector<64x32xf32>
    %176 = arith.mulf %172, %175 : vector<64x32xf32>
    %c0_139 = arith.constant 0 : index
    %c0_140 = arith.constant 0 : index
    %c0_141 = arith.constant 0 : index
    %177 = vector.load %arg9[%c0_139, %c0_140, %c0_141] : memref<9x32x32xf32, #tpu.memory_space<vmem>>, vector<1x32x32xf32>
    %178 = vector.shape_cast %177 : vector<1x32x32xf32> to vector<32x32xf32>
    %cst_142 = arith.constant dense<0.000000e+00> : vector<64x32xf32>
    %179 = tpu.matmul %176, %178, %cst_142 {dimension_numbers = #tpu.dot_dimension_numbers<[1], [0], [0], [1], [0, 0, 1, 1], [], []>} : vector<64x32xf32>, vector<32x32xf32>, vector<64x32xf32> -> vector<64x32xf32>
    %180 = arith.addf %171, %179 : vector<64x32xf32>
    %c8_i32_143 = arith.constant 8 : i32
    %181 = tpu.dynamic_rotate %170 by %c8_i32_143 dim 0 : vector<64x32xf32>, i32 -> vector<64x32xf32>
    %c1_144 = arith.constant 1 : index
    %c0_145 = arith.constant 0 : index
    %c0_146 = arith.constant 0 : index
    %182 = vector.load %arg2[%c1_144, %c0_145, %c0_146] : memref<9x64x1xf32, #tpu.memory_space<vmem>>, vector<1x64x1xf32>
    %183 = vector.shape_cast %182 : vector<1x64x1xf32> to vector<64x1xf32>
    %184 = vector.broadcast %183 : vector<64x1xf32> to vector<64x32xf32>
    %185 = arith.mulf %181, %184 : vector<64x32xf32>
    %c1_147 = arith.constant 1 : index
    %c0_148 = arith.constant 0 : index
    %c0_149 = arith.constant 0 : index
    %186 = vector.load %arg9[%c1_147, %c0_148, %c0_149] : memref<9x32x32xf32, #tpu.memory_space<vmem>>, vector<1x32x32xf32>
    %187 = vector.shape_cast %186 : vector<1x32x32xf32> to vector<32x32xf32>
    %cst_150 = arith.constant dense<0.000000e+00> : vector<64x32xf32>
    %188 = tpu.matmul %185, %187, %cst_150 {dimension_numbers = #tpu.dot_dimension_numbers<[1], [0], [0], [1], [0, 0, 1, 1], [], []>} : vector<64x32xf32>, vector<32x32xf32>, vector<64x32xf32> -> vector<64x32xf32>
    %189 = arith.addf %180, %188 : vector<64x32xf32>
    %c7_i32_151 = arith.constant 7 : i32
    %190 = tpu.dynamic_rotate %170 by %c7_i32_151 dim 0 : vector<64x32xf32>, i32 -> vector<64x32xf32>
    %c2_152 = arith.constant 2 : index
    %c0_153 = arith.constant 0 : index
    %c0_154 = arith.constant 0 : index
    %191 = vector.load %arg2[%c2_152, %c0_153, %c0_154] : memref<9x64x1xf32, #tpu.memory_space<vmem>>, vector<1x64x1xf32>
    %192 = vector.shape_cast %191 : vector<1x64x1xf32> to vector<64x1xf32>
    %193 = vector.broadcast %192 : vector<64x1xf32> to vector<64x32xf32>
    %194 = arith.mulf %190, %193 : vector<64x32xf32>
    %c2_155 = arith.constant 2 : index
    %c0_156 = arith.constant 0 : index
    %c0_157 = arith.constant 0 : index
    %195 = vector.load %arg9[%c2_155, %c0_156, %c0_157] : memref<9x32x32xf32, #tpu.memory_space<vmem>>, vector<1x32x32xf32>
    %196 = vector.shape_cast %195 : vector<1x32x32xf32> to vector<32x32xf32>
    %cst_158 = arith.constant dense<0.000000e+00> : vector<64x32xf32>
    %197 = tpu.matmul %194, %196, %cst_158 {dimension_numbers = #tpu.dot_dimension_numbers<[1], [0], [0], [1], [0, 0, 1, 1], [], []>} : vector<64x32xf32>, vector<32x32xf32>, vector<64x32xf32> -> vector<64x32xf32>
    %198 = arith.addf %189, %197 : vector<64x32xf32>
    %c1_i32_159 = arith.constant 1 : i32
    %199 = tpu.dynamic_rotate %170 by %c1_i32_159 dim 0 : vector<64x32xf32>, i32 -> vector<64x32xf32>
    %c3_160 = arith.constant 3 : index
    %c0_161 = arith.constant 0 : index
    %c0_162 = arith.constant 0 : index
    %200 = vector.load %arg2[%c3_160, %c0_161, %c0_162] : memref<9x64x1xf32, #tpu.memory_space<vmem>>, vector<1x64x1xf32>
    %201 = vector.shape_cast %200 : vector<1x64x1xf32> to vector<64x1xf32>
    %202 = vector.broadcast %201 : vector<64x1xf32> to vector<64x32xf32>
    %203 = arith.mulf %199, %202 : vector<64x32xf32>
    %c3_163 = arith.constant 3 : index
    %c0_164 = arith.constant 0 : index
    %c0_165 = arith.constant 0 : index
    %204 = vector.load %arg9[%c3_163, %c0_164, %c0_165] : memref<9x32x32xf32, #tpu.memory_space<vmem>>, vector<1x32x32xf32>
    %205 = vector.shape_cast %204 : vector<1x32x32xf32> to vector<32x32xf32>
    %cst_166 = arith.constant dense<0.000000e+00> : vector<64x32xf32>
    %206 = tpu.matmul %203, %205, %cst_166 {dimension_numbers = #tpu.dot_dimension_numbers<[1], [0], [0], [1], [0, 0, 1, 1], [], []>} : vector<64x32xf32>, vector<32x32xf32>, vector<64x32xf32> -> vector<64x32xf32>
    %207 = arith.addf %198, %206 : vector<64x32xf32>
    %c4_167 = arith.constant 4 : index
    %c0_168 = arith.constant 0 : index
    %c0_169 = arith.constant 0 : index
    %208 = vector.load %arg9[%c4_167, %c0_168, %c0_169] : memref<9x32x32xf32, #tpu.memory_space<vmem>>, vector<1x32x32xf32>
    %209 = vector.shape_cast %208 : vector<1x32x32xf32> to vector<32x32xf32>
    %cst_170 = arith.constant dense<0.000000e+00> : vector<64x32xf32>
    %210 = tpu.matmul %170, %209, %cst_170 {dimension_numbers = #tpu.dot_dimension_numbers<[1], [0], [0], [1], [0, 0, 1, 1], [], []>} : vector<64x32xf32>, vector<32x32xf32>, vector<64x32xf32> -> vector<64x32xf32>
    %211 = arith.addf %207, %210 : vector<64x32xf32>
    %c63_i32_171 = arith.constant 63 : i32
    %212 = tpu.dynamic_rotate %170 by %c63_i32_171 dim 0 : vector<64x32xf32>, i32 -> vector<64x32xf32>
    %c5_172 = arith.constant 5 : index
    %c0_173 = arith.constant 0 : index
    %c0_174 = arith.constant 0 : index
    %213 = vector.load %arg2[%c5_172, %c0_173, %c0_174] : memref<9x64x1xf32, #tpu.memory_space<vmem>>, vector<1x64x1xf32>
    %214 = vector.shape_cast %213 : vector<1x64x1xf32> to vector<64x1xf32>
    %215 = vector.broadcast %214 : vector<64x1xf32> to vector<64x32xf32>
    %216 = arith.mulf %212, %215 : vector<64x32xf32>
    %c5_175 = arith.constant 5 : index
    %c0_176 = arith.constant 0 : index
    %c0_177 = arith.constant 0 : index
    %217 = vector.load %arg9[%c5_175, %c0_176, %c0_177] : memref<9x32x32xf32, #tpu.memory_space<vmem>>, vector<1x32x32xf32>
    %218 = vector.shape_cast %217 : vector<1x32x32xf32> to vector<32x32xf32>
    %cst_178 = arith.constant dense<0.000000e+00> : vector<64x32xf32>
    %219 = tpu.matmul %216, %218, %cst_178 {dimension_numbers = #tpu.dot_dimension_numbers<[1], [0], [0], [1], [0, 0, 1, 1], [], []>} : vector<64x32xf32>, vector<32x32xf32>, vector<64x32xf32> -> vector<64x32xf32>
    %220 = arith.addf %211, %219 : vector<64x32xf32>
    %c57_i32_179 = arith.constant 57 : i32
    %221 = tpu.dynamic_rotate %170 by %c57_i32_179 dim 0 : vector<64x32xf32>, i32 -> vector<64x32xf32>
    %c6_180 = arith.constant 6 : index
    %c0_181 = arith.constant 0 : index
    %c0_182 = arith.constant 0 : index
    %222 = vector.load %arg2[%c6_180, %c0_181, %c0_182] : memref<9x64x1xf32, #tpu.memory_space<vmem>>, vector<1x64x1xf32>
    %223 = vector.shape_cast %222 : vector<1x64x1xf32> to vector<64x1xf32>
    %224 = vector.broadcast %223 : vector<64x1xf32> to vector<64x32xf32>
    %225 = arith.mulf %221, %224 : vector<64x32xf32>
    %c6_183 = arith.constant 6 : index
    %c0_184 = arith.constant 0 : index
    %c0_185 = arith.constant 0 : index
    %226 = vector.load %arg9[%c6_183, %c0_184, %c0_185] : memref<9x32x32xf32, #tpu.memory_space<vmem>>, vector<1x32x32xf32>
    %227 = vector.shape_cast %226 : vector<1x32x32xf32> to vector<32x32xf32>
    %cst_186 = arith.constant dense<0.000000e+00> : vector<64x32xf32>
    %228 = tpu.matmul %225, %227, %cst_186 {dimension_numbers = #tpu.dot_dimension_numbers<[1], [0], [0], [1], [0, 0, 1, 1], [], []>} : vector<64x32xf32>, vector<32x32xf32>, vector<64x32xf32> -> vector<64x32xf32>
    %229 = arith.addf %220, %228 : vector<64x32xf32>
    %c56_i32_187 = arith.constant 56 : i32
    %230 = tpu.dynamic_rotate %170 by %c56_i32_187 dim 0 : vector<64x32xf32>, i32 -> vector<64x32xf32>
    %c7_188 = arith.constant 7 : index
    %c0_189 = arith.constant 0 : index
    %c0_190 = arith.constant 0 : index
    %231 = vector.load %arg2[%c7_188, %c0_189, %c0_190] : memref<9x64x1xf32, #tpu.memory_space<vmem>>, vector<1x64x1xf32>
    %232 = vector.shape_cast %231 : vector<1x64x1xf32> to vector<64x1xf32>
    %233 = vector.broadcast %232 : vector<64x1xf32> to vector<64x32xf32>
    %234 = arith.mulf %230, %233 : vector<64x32xf32>
    %c7_191 = arith.constant 7 : index
    %c0_192 = arith.constant 0 : index
    %c0_193 = arith.constant 0 : index
    %235 = vector.load %arg9[%c7_191, %c0_192, %c0_193] : memref<9x32x32xf32, #tpu.memory_space<vmem>>, vector<1x32x32xf32>
    %236 = vector.shape_cast %235 : vector<1x32x32xf32> to vector<32x32xf32>
    %cst_194 = arith.constant dense<0.000000e+00> : vector<64x32xf32>
    %237 = tpu.matmul %234, %236, %cst_194 {dimension_numbers = #tpu.dot_dimension_numbers<[1], [0], [0], [1], [0, 0, 1, 1], [], []>} : vector<64x32xf32>, vector<32x32xf32>, vector<64x32xf32> -> vector<64x32xf32>
    %238 = arith.addf %229, %237 : vector<64x32xf32>
    %c55_i32_195 = arith.constant 55 : i32
    %239 = tpu.dynamic_rotate %170 by %c55_i32_195 dim 0 : vector<64x32xf32>, i32 -> vector<64x32xf32>
    %c8_196 = arith.constant 8 : index
    %c0_197 = arith.constant 0 : index
    %c0_198 = arith.constant 0 : index
    %240 = vector.load %arg2[%c8_196, %c0_197, %c0_198] : memref<9x64x1xf32, #tpu.memory_space<vmem>>, vector<1x64x1xf32>
    %241 = vector.shape_cast %240 : vector<1x64x1xf32> to vector<64x1xf32>
    %242 = vector.broadcast %241 : vector<64x1xf32> to vector<64x32xf32>
    %243 = arith.mulf %239, %242 : vector<64x32xf32>
    %c8_199 = arith.constant 8 : index
    %c0_200 = arith.constant 0 : index
    %c0_201 = arith.constant 0 : index
    %244 = vector.load %arg9[%c8_199, %c0_200, %c0_201] : memref<9x32x32xf32, #tpu.memory_space<vmem>>, vector<1x32x32xf32>
    %245 = vector.shape_cast %244 : vector<1x32x32xf32> to vector<32x32xf32>
    %cst_202 = arith.constant dense<0.000000e+00> : vector<64x32xf32>
    %246 = tpu.matmul %243, %245, %cst_202 {dimension_numbers = #tpu.dot_dimension_numbers<[1], [0], [0], [1], [0, 0, 1, 1], [], []>} : vector<64x32xf32>, vector<32x32xf32>, vector<64x32xf32> -> vector<64x32xf32>
    %247 = arith.addf %238, %246 : vector<64x32xf32>
    %c0_203 = arith.constant 0 : index
    %c0_204 = arith.constant 0 : index
    %248 = vector.load %arg10[%c0_203, %c0_204] : memref<1x32xf32, #tpu.memory_space<vmem>>, vector<1x32xf32>
    %249 = vector.broadcast %248 : vector<1x32xf32> to vector<64x32xf32>
    %250 = arith.addf %247, %249 : vector<64x32xf32>
    %cst_205 = arith.constant 0.000000e+00 : f32
    %251 = vector.broadcast %cst_205 : f32 to vector<64x32xf32>
    %252 = arith.maximumf %250, %251 : vector<64x32xf32>
    %c0_206 = arith.constant 0 : index
    %c0_207 = arith.constant 0 : index
    %253 = vector.load %arg11[%c0_206, %c0_207] : memref<32x128xf32, #tpu.memory_space<vmem>>, vector<32x128xf32>
    %cst_208 = arith.constant dense<0.000000e+00> : vector<64x128xf32>
    %254 = tpu.matmul %252, %253, %cst_208 {dimension_numbers = #tpu.dot_dimension_numbers<[1], [0], [0], [1], [0, 0, 1, 1], [], []>} : vector<64x32xf32>, vector<32x128xf32>, vector<64x128xf32> -> vector<64x128xf32>
    %c0_209 = arith.constant 0 : index
    %c0_210 = arith.constant 0 : index
    %255 = vector.load %arg12[%c0_209, %c0_210] : memref<1x128xf32, #tpu.memory_space<vmem>>, vector<1x128xf32>
    %256 = vector.broadcast %255 : vector<1x128xf32> to vector<64x128xf32>
    %257 = arith.addf %254, %256 : vector<64x128xf32>
    %258 = arith.addf %163, %257 : vector<64x128xf32>
    %c0_211 = arith.constant 0 : index
    %c0_212 = arith.constant 0 : index
    %c0_213 = arith.constant 0 : index
    %259 = vector.load %arg1[%c0_211, %c0_212, %c0_213] : memref<1x64x128xf32, #tpu.memory_space<vmem>>, vector<1x64x128xf32>
    %260 = vector.shape_cast %259 : vector<1x64x128xf32> to vector<64x128xf32>
    %261 = arith.addf %258, %260 : vector<64x128xf32>
    %c0_214 = arith.constant 0 : index
    %c0_215 = arith.constant 0 : index
    %c0_216 = arith.constant 0 : index
    %262 = vector.load %arg13[%c0_214, %c0_215, %c0_216] : memref<1x64x128xf32, #tpu.memory_space<vmem>>, vector<1x64x128xf32>
    %263 = vector.shape_cast %262 : vector<1x64x128xf32> to vector<64x128xf32>
    %264 = vector.shape_cast %261 : vector<64x128xf32> to vector<1x64x128xf32>
    tpu.vector_store %arg13[%c0_214, %c0_215, %c0_216], %264 {strides = array<i32>} : memref<1x64x128xf32, #tpu.memory_space<vmem>>, vector<1x64x128xf32>,
    return
  }
  func.func @transform_0(%arg0: i32) -> (i32, i32, i32) {
    %c0_i32 = arith.constant 0 : i32
    %c0_i32_0 = arith.constant 0 : i32
    %c0_i32_1 = arith.constant 0 : i32
    return %arg0, %c0_i32, %c0_i32_0 : i32, i32, i32
  }
  func.func @transform_1(%arg0: i32) -> (i32, i32, i32) {
    %c0_i32 = arith.constant 0 : i32
    %c0_i32_0 = arith.constant 0 : i32
    %c0_i32_1 = arith.constant 0 : i32
    %c0_i32_2 = arith.constant 0 : i32
    return %c0_i32, %c0_i32_0, %c0_i32_1 : i32, i32, i32
  }
  func.func @transform_2(%arg0: i32) -> (i32, i32, i32) {
    %c0_i32 = arith.constant 0 : i32
    %c0_i32_0 = arith.constant 0 : i32
    %c0_i32_1 = arith.constant 0 : i32
    %c0_i32_2 = arith.constant 0 : i32
    return %c0_i32, %c0_i32_0, %c0_i32_1 : i32, i32, i32
  }
  func.func @transform_3(%arg0: i32) -> (i32, i32) {
    %c0_i32 = arith.constant 0 : i32
    %c0_i32_0 = arith.constant 0 : i32
    %c0_i32_1 = arith.constant 0 : i32
    return %c0_i32, %c0_i32_0 : i32, i32
  }
  func.func @transform_4(%arg0: i32) -> (i32, i32, i32) {
    %c0_i32 = arith.constant 0 : i32
    %c0_i32_0 = arith.constant 0 : i32
    %c0_i32_1 = arith.constant 0 : i32
    %c0_i32_2 = arith.constant 0 : i32
    return %c0_i32, %c0_i32_0, %c0_i32_1 : i32, i32, i32
  }
  func.func @transform_5(%arg0: i32) -> (i32, i32) {
    %c0_i32 = arith.constant 0 : i32
    %c0_i32_0 = arith.constant 0 : i32
    %c0_i32_1 = arith.constant 0 : i32
    return %c0_i32, %c0_i32_0 : i32, i32
  }
  func.func @transform_6(%arg0: i32) -> (i32, i32) {
    %c0_i32 = arith.constant 0 : i32
    %c0_i32_0 = arith.constant 0 : i32
    %c0_i32_1 = arith.constant 0 : i32
    return %c0_i32, %c0_i32_0 : i32, i32
  }
  func.func @transform_7(%arg0: i32) -> (i32, i32) {
    %c0_i32 = arith.constant 0 : i32
    %c0_i32_0 = arith.constant 0 : i32
    %c0_i32_1 = arith.constant 0 : i32
    return %c0_i32, %c0_i32_0 : i32, i32
  }
  func.func @transform_8(%arg0: i32) -> (i32, i32, i32) {
    %c0_i32 = arith.constant 0 : i32
    %c0_i32_0 = arith.constant 0 : i32
    %c0_i32_1 = arith.constant 0 : i32
    %c0_i32_2 = arith.constant 0 : i32
    return %c0_i32, %c0_i32_0, %c0_i32_1 : i32, i32, i32
  }
  func.func @transform_9(%arg0: i32) -> (i32, i32) {
    %c0_i32 = arith.constant 0 : i32
    %c0_i32_0 = arith.constant 0 : i32
    %c0_i32_1 = arith.constant 0 : i32
    return %c0_i32, %c0_i32_0 : i32, i32
  }
  func.func @transform_10(%arg0: i32) -> (i32, i32) {
    %c0_i32 = arith.constant 0 : i32
    %c0_i32_0 = arith.constant 0 : i32
    %c0_i32_1 = arith.constant 0 : i32
    return %c0_i32, %c0_i32_0 : i32, i32
  }
  func.func @transform_11(%arg0: i32) -> (i32, i32) {
    %c0_i32 = arith.constant 0 : i32
    %c0_i32_0 = arith.constant 0 : i32
    %c0_i32_1 = arith.constant 0 : i32
    return %c0_i32, %c0_i32_0 : i32, i32
  }
  func.func @transform_12(%arg0: i32) -> (i32, i32, i32) {
    %c0_i32 = arith.constant 0 : i32
    %c0_i32_0 = arith.constant 0 : i32
    %c0_i32_1 = arith.constant 0 : i32
    return %arg0, %c0_i32, %c0_i32_0 : i32, i32, i32
  }
}

</mosaic_0001>

<bundles_post_ra>
// kernel: tpu_custom_call.1
= control target key start
LH: loop header
LB: loop body
LE: loop exit
PB: predicated region body
PF: predicated region fallthrough
CT: control target
= control target key end

     0   :  { %17 = vsyncpa [#allocation3], 0  ;;  %s9911_s0 = inlined_call_operand.vmem [shape: f32[2,64,128], index: 0, kind: input, shape index: {}]   ;;  %s9912_s1 = inlined_call_operand.vmem [shape: f32[9,64,1], index: 1, kind: input, shape index: {}]   ;;  %s9913_s2 = inlined_call_operand.vmem [shape: f32[9,128,32], index: 2, kind: input, shape index: {}]   ;;  %s9914_s3 = inlined_call_operand.vmem [shape: f32[1,32], index: 3, kind: input, shape index: {}]   ;;  %s9915_s4 = inlined_call_operand.vmem [shape: f32[9,32,128], index: 4, kind: input, shape index: {}]   ;;  %s9916_s5 = inlined_call_operand.vmem [shape: f32[1,128], index: 5, kind: input, shape index: {}]   ;;  %s9917_s6 = inlined_call_operand.vmem [shape: f32[128,32], index: 6, kind: input, shape index: {}]   ;;  %s9918_s7 = inlined_call_operand.vmem [shape: f32[1,32], index: 7, kind: input, shape index: {}]   ;;  %s9919_s8 = inlined_call_operand.vmem [shape: f32[9,32,32], index: 8, kind: input, shape index: {}]   ;;  %s9920_s9 = inlined_call_operand.vmem [shape: f32[1,32], index: 9, kind: input, shape index: {}]   ;;  %s9921_s10 = inlined_call_operand.vmem [shape: f32[32,128], index: 10, kind: input, shape index: {}]   ;;  %s9922_s11 = inlined_call_operand.vmem [shape: f32[1,128], index: 11, kind: input, shape index: {}]   ;;  %s9923_s12 = inlined_call_operand.hbm [shape: f32[2,64,128], index: 12, kind: output, shape index: {}]  }
   0x1   :  { %19 = vsyncpa [#allocation3 + $0x1], 0  ;;  %s7800_s21 = smov 0   ;;  %s7802_s22 = smov 0  }
   0x2   :  { %s7804_s23 = smov 0   ;;  %s7806_s24 = smov 0  }
   0x3 LB: > { %10010 = sst [smem:[#allocation5_spill]] %s7725_s23  ;;  %s7821_s25 = sadd.s32 4294967295, %s7729_s24   ;;  %s7729_s24 = sphi %s7806_s24, %s10144_s24   ;;  %s7725_s23 = sphi %s7804_s23, %s10146_s23   ;;  %s7721_s22 = sphi %s7802_s22, %s10148_s22   ;;  %s7717_s21 = sphi %s7800_s21, %s10147_s21  }
   0x4   : > { %s5216_s26 = sadd.s32 4294967294, %s7729_s24   ;;  %s7825_s27 = sadd.s32 1, %s7729_s24  }
   0x5   : > { %10011 = sst [smem:[#allocation6_spill]] %s7825_s27  ;;  %s289_s28 = sadd.s32 1, %s7725_s23 }
   0x6   : > { %s286_s29 = ssub.s32 %s7729_s24, %s7825_s27  ;;  %p299_p0 = scmp.ne.s32.totalorder %s7725_s23, %s7721_s22 }
   0x7   : > { %p287_p1 = scmp.eq.s32.totalorder %s286_s29, 0  ;;  %p300_p2 = scmp.eq.s32.totalorder %s7821_s25, 1 }
   0x8   : > { %p305_p3 = scmp.ne.s32.totalorder %s7721_s22, %s7717_s21  ;;  %p306_p4 = scmp.eq.s32.totalorder %s5216_s26, 1 }
   0x9   : > { %s7836_s30 = scalar_select %p287_p1, %s7725_s23, %s289_s28  }
   0xa   : > { %p7838_p5 = por %p300_p2, %p299_p0  ;;  %p7842_p6 = por %p306_p4, %p305_p3 }
   0xb   : > { %10012 = sst [smem:[#allocation7_spill]] %s7836_s30  ;;  %p5219_p7 = scmp.ge.s32.totalorder %s7729_s24, 1 }
   0xc   : > { %p365_p8 = scmp.lt.s32.totalorder %s7729_s24, 3 }
   0xe   : > { %p366_p9 = pnand %p5219_p7, %p365_p8 }
  0x10   : > { %369 = sbr.rel (%p366_p9) target bundleno = 1602 (0x642), region = 68 }
  0x17   : > { %v5225_v0 = vld [vmem:[%s9912_s1 + $0x50] sm:$0xff]  ;;  %v5223_v1 = vld [vmem:[%s9912_s1 + $0x40] sm:$0xff]  ;;  %v7731_v2 = vmov 0   ;;  %v5226_v3 = vld [vmem:[%s9912_s1 + $0x58] sm:$0xff]  ;;  %p407_p10 = scmp.lt.s32.totalorder %s7821_s25, 1  ;;  %vm2128_vm2 = vcmask 261120  }
  0x18   : > { %7658 = vset.pattern.permute.xlu1 %v7731_v2  ;;  %7657 = vset.pattern.permute.xlu0 %v7731_v2  ;;  %v5224_v4 = vld [vmem:[%s9912_s1 + $0x48] sm:$0xff]  ;;  %v5227_v6 = vld [vmem:[%s9912_s1 + $0x60] sm:$0xff]  ;;  %v5230_v7 = vld [vmem:[%s9912_s1 + $0x78] sm:$0xff]  ;;  %s5634_s27 = sshll.u32 %s7821_s25, 10  ;;  %s7732_s30 = smov [#allocation2]  }
  0x19   : > { %532 = vperm.xlu1 %7658, %v5225_v0   ;;  %522 = vperm.xlu0 %7657, %v5223_v1   ;;  %v5228_v5 = vld [vmem:[%s9912_s1 + $0x68] sm:$0xff]  ;;  %v5229_v8 = vld [vmem:[%s9912_s1 + $0x70] sm:$0xff]  ;;  %v439_v10 = vld [vmem:[%s9912_s1] sm:$0xff]  ;;  %s408_s26 = scalar_select %p407_p10, %s7821_s25, 1 }
  0x1a   : > { %v440_v9 = vld [vmem:[%s9912_s1 + $0x8] sm:$0xff]  ;;  %v5231_v11 = vld [vmem:[%s9913_s2 + $0x80] sm:$0xff]  ;;  %v5233_v14 = vld [vmem:[%s9913_s2 + $0x90] sm:$0xff]  ;;  %s9861_s16 = scalar_lea.hbm %s9923_s12, %s5634_s27  ;;  %s7671_s18 = sshll.u32 %s7732_s30, 4  ;;  %s7672_s18 = int_to_ptr.vmem [resolvable:$false] %s7671_s18 }
  0x1b   : > { %v5232_v12 = vld [vmem:[%s9913_s2 + $0x88] sm:$0xff]  ;;  %v442_v15 = vld [vmem:[%s9912_s1 + $0x18] sm:$0xff]  ;;  %v441_v16 = vld [vmem:[%s9912_s1 + $0x10] sm:$0xff]  ;;  %s5633_s17 = sshll.u32 %s408_s26, 6  ;;  %s7673_s19 = scalar_lea.vmem %s7672_s18, 2048 }
  0x1c   : > { %v6923_v13 = vpack.c.bf16 %v5232_v12, %v5231_v11  ;;  %v5234_v17 = vld [vmem:[%s9913_s2 + $0x98] sm:$0xff]  ;;  %v5235_v19 = vld [vmem:[%s9913_s2 + $0xa0] sm:$0xff]  ;;  %v5236_v20 = vld [vmem:[%s9913_s2 + $0xa8] sm:$0xff]  ;;  %s8102_s28 = scalar_lea.vmem %s9911_s0, %s5633_s17 }
  0x1d   : > { %537 = vperm.xlu1 %7658, %v5226_v3   ;;  %527 = vperm.xlu0 %7657, %v5224_v4   ;;  %v6927_v18 = vpack.c.bf16 %v5234_v17, %v5233_v14  ;;  %v444_v21 = vld [vmem:[%s9912_s1 + $0x28] sm:$0xff]  ;;  %v443_v22 = vld [vmem:[%s9912_s1 + $0x20] sm:$0xff]  ;;  %v6931_v23 = vpack.c.bf16 %v5236_v20, %v5235_v19  ;;  %v5237_v24 = vld [vmem:[%s9913_s2 + $0xb0] sm:$0xff] }
  0x1e   : > { %6924 = vmatprep.subr.bf16.mxu0 %v6923_v13  ;;  %v5238_v25 = vld [vmem:[%s9913_s2 + $0xb8] sm:$0xff]  ;;  %v445_v27 = vld [vmem:[%s9912_s1 + $0x30] sm:$0xff]  ;;  %v5239_v29 = vld [vmem:[%s9913_s2 + $0xc0] sm:$0xff] }
  0x1f   : > { %6926 = vmatpush3.bf16.msra.mxu0 %v6923_v13  ;;  %v446_v26 = vld [vmem:[%s9912_s1 + $0x38] sm:$0xff]  ;;  %v6935_v28 = vpack.c.bf16 %v5238_v25, %v5237_v24  ;;  %v5240_v30 = vld [vmem:[%s9913_s2 + $0xc8] sm:$0xff]  ;;  %v5247_v32 = vld [vmem:[%s9912_s1 + $0x80] sm:$0xff] }
  0x20   : > { %6928 = vmatprep.subr.bf16.mxu0 %v6927_v18  ;;  %v5248_v31 = vld [vmem:[%s9912_s1 + $0x88] sm:$0xff]  ;;  %v6939_v33 = vpack.c.bf16 %v5240_v30, %v5239_v29  ;;  %v5241_v34 = vld [vmem:[%s9913_s2 + $0xd0] sm:$0xff]  ;;  %v5242_v35 = vld [vmem:[%s9913_s2 + $0xd8] sm:$0xff] }
  0x21   : > { %547 = vperm.xlu1 %7658, %v5228_v5   ;;  %542 = vperm.xlu0 %7657, %v5227_v6   ;;  %v5250_v36 = vld [vmem:[%s9912_s1 + $0x98] sm:$0xff]  ;;  %v5249_v37 = vld [vmem:[%s9912_s1 + $0x90] sm:$0xff]  ;;  %v6943_v38 = vpack.c.bf16 %v5242_v35, %v5241_v34  ;;  %v5243_v39 = vld [vmem:[%s9913_s2 + $0xe0] sm:$0xff] }
  0x22   : > { %v5244_v40 = vld [vmem:[%s9913_s2 + $0xe8] sm:$0xff]  ;;  %v5251_v42 = vld [vmem:[%s9912_s1 + $0xa0] sm:$0xff]  ;;  %v5245_v44 = vld [vmem:[%s9913_s2 + $0xf0] sm:$0xff] }
  0x23   : > { %6930 = vmatpush3.bf16.msra.mxu0 %v6927_v18  ;;  %v5252_v41 = vld [vmem:[%s9912_s1 + $0xa8] sm:$0xff]  ;;  %v6947_v43 = vpack.c.bf16 %v5244_v40, %v5243_v39  ;;  %v5246_v45 = vld [vmem:[%s9913_s2 + $0xf8] sm:$0xff]  ;;  %v5253_v47 = vld [vmem:[%s9912_s1 + $0xb0] sm:$0xff] }
  0x24   : > { %6932 = vmatprep.subr.bf16.mxu0 %v6931_v23  ;;  %v5254_v46 = vld [vmem:[%s9912_s1 + $0xb8] sm:$0xff]  ;;  %v6951_v48 = vpack.c.bf16 %v5246_v45, %v5245_v44  ;;  %v495_v49 = vld [vmem:[%s9913_s2] sm:$0xff]  ;;  %v496_v50 = vld [vmem:[%s9913_s2 + $0x8] sm:$0xff] }
  0x25   : > { %557 = vperm.xlu1 %7658, %v5230_v7   ;;  %552 = vperm.xlu0 %7657, %v5229_v8   ;;  %v5272_v51 = vld [vmem:[%s9912_s1 + $0xc8] sm:$0xff]  ;;  %v5271_v52 = vld [vmem:[%s9912_s1 + $0xc0] sm:$0xff]  ;;  %v7980_v53 = vpack.c.bf16 %v496_v50, %v495_v49  ;;  %v5274_v54 = vld [vmem:[%s9912_s1 + $0xd8] sm:$0xff] }
  0x26   : > { %v5273_v55 = vld [vmem:[%s9912_s1 + $0xd0] sm:$0xff]  ;;  %v5276_v56 = vld [vmem:[%s9912_s1 + $0xe8] sm:$0xff]  ;;  %v5275_v57 = vld [vmem:[%s9912_s1 + $0xe0] sm:$0xff] }
  0x27   : > { %6934 = vmatpush3.bf16.msra.mxu0 %v6931_v23  ;;  %v5278_v58 = vld [vmem:[%s9912_s1 + $0xf8] sm:$0xff]  ;;  %v5277_v59 = vld [vmem:[%s9912_s1 + $0xf0] sm:$0xff]  ;;  %v5312_v60 = vld [vmem:[%s9912_s1 + $0x148] sm:$0xff] }
  0x28   : > { %6936 = vmatprep.subr.bf16.mxu0 %v6935_v28  ;;  %v5311_v61 = vld [vmem:[%s9912_s1 + $0x140] sm:$0xff]  ;;  %v5314_v62 = vld [vmem:[%s9912_s1 + $0x158] sm:$0xff]  ;;  %v5313_v63 = vld [vmem:[%s9912_s1 + $0x150] sm:$0xff] }
  0x29   : > { %454 = vperm.xlu1 %7658, %v440_v9   ;;  %449 = vperm.xlu0 %7657, %v439_v10   ;;  %v5316_v0 = vld [vmem:[%s9912_s1 + $0x168] sm:$0xff]  ;;  %v5315_v1 = vld [vmem:[%s9912_s1 + $0x160] sm:$0xff]  ;;  %v5318_v2 = vld [vmem:[%s9912_s1 + $0x178] sm:$0xff] }
  0x2a   : > { %v5317_v3 = vld [vmem:[%s9912_s1 + $0x170] sm:$0xff]  ;;  %v5336_v4 = vld [vmem:[%s9912_s1 + $0x188] sm:$0xff]  ;;  %v5335_v5 = vld [vmem:[%s9912_s1 + $0x180] sm:$0xff] }
  0x2b   : > { %6938 = vmatpush3.bf16.msra.mxu0 %v6935_v28  ;;  %v5338_v6 = vld [vmem:[%s9912_s1 + $0x198] sm:$0xff]  ;;  %v5337_v7 = vld [vmem:[%s9912_s1 + $0x190] sm:$0xff]  ;;  %v5340_v8 = vld [vmem:[%s9912_s1 + $0x1a8] sm:$0xff] }
  0x2c   : > { %6940 = vmatprep.subr.bf16.mxu0 %v6939_v33  ;;  %v5339_v9 = vld [vmem:[%s9912_s1 + $0x1a0] sm:$0xff]  ;;  %v5342_v10 = vld [vmem:[%s9912_s1 + $0x1b8] sm:$0xff]  ;;  %v5341_v11 = vld [vmem:[%s9912_s1 + $0x1b0] sm:$0xff] }
  0x2d   : > { %464 = vperm.xlu1 %7658, %v442_v15   ;;  %459 = vperm.xlu0 %7657, %v441_v16   ;;  %v5360_v12 = vld [vmem:[%s9912_s1 + $0x1c8] sm:$0xff]  ;;  %v5359_v13 = vld [vmem:[%s9912_s1 + $0x1c0] sm:$0xff]  ;;  %v5362_v14 = vld [vmem:[%s9912_s1 + $0x1d8] sm:$0xff] }
  0x2e   : > { %v5361_v15 = vld [vmem:[%s9912_s1 + $0x1d0] sm:$0xff]  ;;  %v5364_v16 = vld [vmem:[%s9912_s1 + $0x1e8] sm:$0xff]  ;;  %v5363_v17 = vld [vmem:[%s9912_s1 + $0x1e0] sm:$0xff] }
  0x2f   : > { %6942 = vmatpush3.bf16.msra.mxu0 %v6939_v33  ;;  %v5366_v18 = vld [vmem:[%s9912_s1 + $0x1f8] sm:$0xff]  ;;  %v5365_v19 = vld [vmem:[%s9912_s1 + $0x1f0] sm:$0xff]  ;;  %v5384_v20 = vld [vmem:[%s9912_s1 + $0x208] sm:$0xff] }
  0x30   : > { %6944 = vmatprep.subr.bf16.mxu0 %v6943_v38  ;;  %v5385_v23 = vld [vmem:[%s9912_s1 + $0x210] sm:$0xff]  ;;  %v5388_v24 = vld [vmem:[%s9912_s1 + $0x228] sm:$0xff]  ;;  %v5387_v25 = vld [vmem:[%s9912_s1 + $0x220] sm:$0xff] }
  0x31   : > { %474 = vperm.xlu1 %7658, %v444_v21   ;;  %469 = vperm.xlu0 %7657, %v443_v22   ;;  %v5383_v21 = vld [vmem:[%s9912_s1 + $0x200] sm:$0xff]  ;;  %v5386_v22 = vld [vmem:[%s9912_s1 + $0x218] sm:$0xff]  ;;  %v497_v34 = vld [vmem:[%s9913_s2 + $0x10] sm:$0xff] }
  0x32   : > { %v8105_v28 = vld [vmem:[%s8102_s28 + $0x38] sm:$0xff]  ;;  %v8117_v33 = vld [vmem:[%s8102_s28] sm:$0xff]  ;;  %v8130_v39 = vld [vmem:[%s8102_s28 + $0x10] sm:$0xff] }
  0x33   : > { %6946 = vmatpush3.bf16.msra.mxu0 %v6943_v38  ;;  %v498_v35 = vld [vmem:[%s9913_s2 + $0x18] sm:$0xff]  ;;  %v499_v44 = vld [vmem:[%s9913_s2 + $0x20] sm:$0xff]  ;;  %v500_v45 = vld [vmem:[%s9913_s2 + $0x28] sm:$0xff] }
  0x34   : > { %6948 = vmatprep.subr.bf16.mxu0 %v6947_v43  ;;  %v8156_v50 = vld [vmem:[%s8102_s28 + $0x20] sm:$0xff] }
  0x35   : > { %484 = vperm.xlu1 %7658, %v446_v26   ;;  %479 = vperm.xlu0 %7657, %v445_v27   ;;  %v5390_v26 = vld [vmem:[%s9912_s1 + $0x238] sm:$0xff]  ;;  %v5389_v27 = vld [vmem:[%s9912_s1 + $0x230] sm:$0xff] }
  0x37   : > { %6950 = vmatpush3.bf16.msra.mxu0 %v6947_v43  ;;  %v8137_v43 = vld [vmem:[%s8102_s28 + $0x18] sm:$0xff] }
  0x38   : > { %6952 = vmatprep.subr.bf16.mxu0 %v6951_v48 }
  0x39   : > { %828 = vperm.xlu1 %7658, %v5248_v31   ;;  %823 = vperm.xlu0 %7657, %v5247_v32   ;;  %v8112_v31 = vld [vmem:[%s8102_s28 + $0x8] sm:$0xff] }
  0x3b   : > { %6954 = vmatpush3.bf16.msra.mxu0 %v6951_v48 }
  0x3c   : > { %6956 = vmatprep.subr.bf16.mxu0 %v7980_v53 }
  0x3d   : > { %838 = vperm.xlu1 %7658, %v5250_v36   ;;  %833 = vperm.xlu0 %7657, %v5249_v37   ;;  %v428_v36 = vlaneseq }
  0x3f   : > { %v8150_v48 = vshrl.u32 %v428_v36, 7 }
  0x41   : > { %848 = vperm.xlu1 %7658, %v5252_v41   ;;  %843 = vperm.xlu0 %7657, %v5251_v42   ;;  %v6959_v42 = vpack.c.bf16 %v498_v35, %v497_v34  ;;  %vm430_vm0 = vcmp.lt.s32.totalorder %v8150_v48, 1  ;;  %v423_v34 = vrot.slane %v8137_v43, 7  ;;  %vm803_vm1 = vcmp.lt.s32.totalorder %v8150_v48, 7  ;;  %v5561_v48 = vld [vmem:[%s9919_s8 + $0x98] sm:$0xff] }
  0x45   : > { %858 = vperm.xlu1 %7658, %v5254_v46   ;;  %853 = vperm.xlu0 %7657, %v5253_v47   ;;  %v8148_v47 = vld [vmem:[%s8102_s28 + $0x30] sm:$0xff] }
  0x49   : > { %1015 = vperm.xlu1 %7658, %v5272_v51   ;;  %1010 = vperm.xlu0 %7657, %v5271_v52  }
  0x4d   : > { %1025 = vperm.xlu1 %7658, %v5274_v54   ;;  %1020 = vperm.xlu0 %7657, %v5273_v55   ;;  %v6963_v54 = vpack.c.bf16 %v500_v45, %v499_v44  ;;  %v8163_v55 = vld [vmem:[%s8102_s28 + $0x28] sm:$0xff]  ;;  %v424_v44 = vrot.slane %v8156_v50, 7  ;;  %v5259_v45 = vld [vmem:[%s9913_s2 + $0x120] sm:$0xff] }
  0x51   : > { %1035 = vperm.xlu1 %7658, %v5276_v56   ;;  %1030 = vperm.xlu0 %7657, %v5275_v57   ;;  %v427_v56 = vrot.slane %v8105_v28, 7  ;;  %v426_v57 = vrot.slane %v8148_v47, 7 }
  0x55   : > { %1045 = vperm.xlu1 %7658, %v5278_v58   ;;  %1040 = vperm.xlu0 %7657, %v5277_v59   ;;  %v502_v58 = vld [vmem:[%s9913_s2 + $0x38] sm:$0xff] }
  0x59   : > { %1332 = vperm.xlu1 %7658, %v5312_v60   ;;  %1327 = vperm.xlu0 %7657, %v5311_v61  }
  0x5d   : > { %1342 = vperm.xlu1 %7658, %v5314_v62   ;;  %1337 = vperm.xlu0 %7657, %v5313_v63  }
  0x61   : > { %1352 = vperm.xlu1 %7658, %v5316_v0   ;;  %1347 = vperm.xlu0 %7657, %v5315_v1   ;;  %v8186_v0 = vsel %vm430_vm0, %v426_v57, %v427_v56  ;;  %v503_v1 = vld [vmem:[%s9913_s2 + $0x40] sm:$0xff] }
  0x65   : > { %1362 = vperm.xlu1 %7658, %v5318_v2   ;;  %1357 = vperm.xlu0 %7657, %v5317_v3   ;;  %v504_v2 = vld [vmem:[%s9913_s2 + $0x48] sm:$0xff] }
  0x69   : > { %1519 = vperm.xlu1 %7658, %v5336_v4   ;;  %1514 = vperm.xlu0 %7657, %v5335_v5  }
  0x6d   : > { %1529 = vperm.xlu1 %7658, %v5338_v6   ;;  %1524 = vperm.xlu0 %7657, %v5337_v7   ;;  %v6971_v6 = vpack.c.bf16 %v504_v2, %v503_v1  ;;  %v505_v7 = vld [vmem:[%s9913_s2 + $0x50] sm:$0xff]  ;;  %v5262_v2 = vld [vmem:[%s9913_s2 + $0x138] sm:$0xff] }
  0x6e   : > { %v5261_v1 = vld [vmem:[%s9913_s2 + $0x130] sm:$0xff] }
  0x71   : > { %1539 = vperm.xlu1 %7658, %v5340_v8   ;;  %1534 = vperm.xlu0 %7657, %v5339_v9   ;;  %v506_v8 = vld [vmem:[%s9913_s2 + $0x58] sm:$0xff] }
  0x72   : > { %v6975_v9 = vpack.c.bf16 %v506_v8, %v505_v7  ;;  %v6999_v8 = vpack.c.bf16 %v5262_v2, %v5261_v1  ;;  %v798_v2 = vrot.slane %v8137_v43, 1 }
  0x75   : > { %1549 = vperm.xlu1 %7658, %v5342_v10   ;;  %1544 = vperm.xlu0 %7657, %v5341_v11   ;;  %v507_v10 = vld [vmem:[%s9913_s2 + $0x60] sm:$0xff]  ;;  %v508_v11 = vld [vmem:[%s9913_s2 + $0x68] sm:$0xff] }
  0x79   : > { %1706 = vperm.xlu1 %7658, %v5360_v12   ;;  %1701 = vperm.xlu0 %7657, %v5359_v13   ;;  %v6979_v12 = vpack.c.bf16 %v508_v11, %v507_v10  ;;  %v509_v13 = vld [vmem:[%s9913_s2 + $0x70] sm:$0xff] }
  0x7d   : > { %1716 = vperm.xlu1 %7658, %v5362_v14   ;;  %1711 = vperm.xlu0 %7657, %v5361_v15   ;;  %v510_v14 = vld [vmem:[%s9913_s2 + $0x78] sm:$0xff] }
  0x81   : > { %1726 = vperm.xlu1 %7658, %v5364_v16   ;;  %1721 = vperm.xlu0 %7657, %v5363_v17   ;;  %v6983_v17 = vpack.c.bf16 %v510_v14, %v509_v13  ;;  %v5264_v13 = vld [vmem:[%s9913_s2 + $0x148] sm:$0xff] }
  0x85   : > { %1736 = vperm.xlu1 %7658, %v5366_v18   ;;  %1731 = vperm.xlu0 %7657, %v5365_v19   ;;  %v420_v18 = vrot.slane %v8117_v33, 7  ;;  %v5255_v19 = vld [vmem:[%s9913_s2 + $0x100] sm:$0xff] }
  0x89   : > { %1893 = vperm.xlu1 %7658, %v5384_v20   ;;  %1888 = vperm.xlu0 %7657, %v5383_v21   ;;  %v5256_v20 = vld [vmem:[%s9913_s2 + $0x108] sm:$0xff]  ;;  %v421_v21 = vrot.slane %v8112_v31, 7 }
  0x8d   : > { %1903 = vperm.xlu1 %7658, %v5386_v22   ;;  %1898 = vperm.xlu0 %7657, %v5385_v23   ;;  %v6987_v22 = vpack.c.bf16 %v5256_v20, %v5255_v19  ;;  %v8232_v23 = vsel %vm430_vm0, %v427_v56, %v420_v18  ;;  %v5265_v20 = vld [vmem:[%s9913_s2 + $0x150] sm:$0xff] }
  0x91   : > { %1913 = vperm.xlu1 %7658, %v5388_v24   ;;  %1908 = vperm.xlu0 %7657, %v5387_v25   ;;  %v422_v25 = vrot.slane %v8130_v39, 7 }
  0x95   : > { %1923 = vperm.xlu1 %7658, %v5390_v26   ;;  %1918 = vperm.xlu0 %7657, %v5389_v27   ;;  %v5257_v26 = vld [vmem:[%s9913_s2 + $0x110] sm:$0xff]  ;;  %v5258_v27 = vld [vmem:[%s9913_s2 + $0x118] sm:$0xff] }
  0x98   : > { %v8107_v29 = vpop.permute.xlu1 %532  ;;  %v8109_v30 = vpop.permute.xlu0 %522 }
  0x99   : > { %v560_v32 = vmul.f32 %v8109_v30, %v8105_v28  ;;  %v562_v37 = vmul.f32 %v8107_v29, %v8112_v31 }
  0x9b   : > { %6135 = vmatprep.mubr.f32.mxu0 %v560_v32  ;;  %v8245_v32 = vsel %vm430_vm0, %v420_v18, %v421_v21 }
  0x9c   : > { %v8127_v38 = vpop.permute.xlu1 %537  ;;  %v8132_v40 = vpop.permute.xlu0 %527 }
  0x9d   : > { %v561_v41 = vmul.f32 %v8132_v40, %v8117_v33  ;;  %v563_v46 = vmul.f32 %v8127_v38, %v8130_v39 }
  0x9f   : > { %6136 = vmatmul.mubr.f32.vlgmr.msra.gmra.mrb[0].mxu0 %v561_v41  ;;  %v8254_v41 = vsel %vm430_vm0, %v421_v21, %v422_v25  ;;  %v5266_v21 = vld [vmem:[%s9913_s2 + $0x158] sm:$0xff] }
  0xa0   : > { %6958 = vmatpush3.bf16.msra.mxu0 %v7980_v53  ;;  %v8153_v49 = vpop.permute.xlu1 %547  ;;  %v8158_v51 = vpop.permute.xlu0 %542  ;;  %6138 = vmatprep.mubr.f32.mxu0 %v562_v37  ;;  %v501_v53 = vld [vmem:[%s9913_s2 + $0x30] sm:$0xff]  ;;  %v6991_v37 = vpack.c.bf16 %v5258_v27, %v5257_v26  ;;  %v5268_v26 = vld [vmem:[%s9913_s2 + $0x168] sm:$0xff] }
  0xa1   : > { %v564_v52 = vmul.f32 %v8158_v51, %v8137_v43  ;;  %6960 = vmatprep.subr.bf16.mxu0 %v6959_v42  ;;  %v565_v59 = vmul.f32 %v8153_v49, %v8156_v50  ;;  %v6967_v62 = vpack.c.bf16 %v502_v58, %v501_v53 }
  0xa3   : > { %6139 = vmatmul.mubr.f32.gmra.mrb[2].mxu0 %v563_v46  ;;  %v5260_v46 = vld [vmem:[%s9913_s2 + $0x128] sm:$0xff] }
  0xa4   : > { %6962 = vmatpush3.bf16.msra.mxu0 %v6959_v42  ;;  %v8176_v60 = vpop.permute.xlu0 %552  ;;  %6141 = vmatprep.mubr.f32.mxu0 %v564_v52  ;;  %v8180_v63 = vpop.permute.xlu1 %557  ;;  %v8267_v52 = vsel %vm430_vm0, %v422_v25, %v423_v34  ;;  %v5267_v25 = vld [vmem:[%s9913_s2 + $0x160] sm:$0xff] }
  0xa5   : > { %v566_v61 = vmul.f32 %v8176_v60, %v8163_v55  ;;  %6964 = vmatprep.subr.bf16.mxu0 %v6963_v54  ;;  %v567_v3 = vmul.f32 %v8180_v63, %v8148_v47  ;;  %v7011_v27 = vpack.c.bf16 %v5268_v26, %v5267_v25  ;;  %v801_v26 = vrot.slane %v8148_v47, 1 }
  0xa7   : > { %6142 = vmatmul.mubr.f32.gmra.mrb[4].mxu0 %v565_v59  ;;  %v6995_v59 = vpack.c.bf16 %v5260_v46, %v5259_v45  ;;  %v796_v45 = vrot.slane %v8112_v31, 1  ;;  %v5279_v46 = vld [vmem:[%s9913_s2 + $0x180] sm:$0xff] }
  0xa8   : > { %6966 = vmatpush3.bf16.msra.mxu0 %v6963_v54  ;;  %v8196_v4 = vpop.permute.xlu0 %449  ;;  %6144 = vmatprep.mubr.f32.mxu0 %v566_v61  ;;  %v8218_v15 = vpop.permute.xlu1 %454  ;;  %v425_v54 = vrot.slane %v8163_v55, 7  ;;  %v8278_v61 = vsel %vm430_vm0, %v423_v34, %v424_v44  ;;  %v5269_v34 = vld [vmem:[%s9913_s2 + $0x170] sm:$0xff] }
  0xa9   : > { %v487_v5 = vmul.f32 %v8196_v4, %v8186_v0  ;;  %6968 = vmatprep.subr.bf16.mxu0 %v6967_v62  ;;  %v488_v36 = vmul.f32 %v8218_v15, %v8232_v23 }
  0xaa   : > { %v8303_v10 = vsel %vm430_vm0, %v425_v54, %v426_v57 }
  0xab   : > { %6145 = vmatmul.mubr.f32.gmra.mrb[6].mxu0 %v567_v3  ;;  %v8290_v3 = vsel %vm430_vm0, %v424_v44, %v425_v54  ;;  %v5280_v54 = vld [vmem:[%s9913_s2 + $0x188] sm:$0xff] }
  0xac   : > { %6970 = vmatpush3.bf16.msra.mxu0 %v6967_v62  ;;  %6179 = vmatprep.mubr.f32.mxu0 %v487_v5  ;;  %v8220_v16 = vpop.permute.xlu0 %459  ;;  %v8234_v24 = vpop.permute.xlu1 %464  ;;  %v795_v5 = vrot.slane %v8117_v33, 1 }
  0xad   : > { %6972 = vmatprep.subr.bf16.mxu0 %v6971_v6  ;;  %10015 = vst [vmem:[#allocation8_spill] sm:$0xff] %v8220_v16  ;;  %v489_v42 = vmul.f32 %v8220_v16, %v8245_v32  ;;  %v490_v53 = vmul.f32 %v8234_v24, %v8254_v41 }
  0xb0   : > { %6974 = vmatpush3.bf16.msra.mxu0 %v6971_v6  ;;  %v8248_v35 = vpop.permute.xlu0 %469  ;;  %v8270_v56 = vpop.permute.xlu1 %474  ;;  %v802_v6 = vrot.slane %v8105_v28, 1 }
  0xb1   : > { %6976 = vmatprep.subr.bf16.mxu0 %v6975_v9  ;;  %v491_v62 = vmul.f32 %v8248_v35, %v8267_v52  ;;  %v492_v7 = vmul.f32 %v8270_v56, %v8278_v61 }
  0xb4   : > { %6978 = vmatpush3.bf16.msra.mxu0 %v6975_v9  ;;  %v8274_v58 = vpop.permute.xlu0 %479  ;;  %v8297_v9 = vpop.permute.xlu1 %484 }
  0xb5   : > { %6980 = vmatprep.subr.bf16.mxu0 %v6979_v12  ;;  %10016 = vst [vmem:[#allocation9_spill] sm:$0xff] %v8274_v58  ;;  %v493_v11 = vmul.f32 %v8274_v58, %v8290_v3  ;;  %v494_v57 = vmul.f32 %v8297_v9, %v8303_v10 }
  0xb8   : > { %6982 = vmatpush3.bf16.msra.mxu0 %v6979_v12  ;;  %v5263_v12 = vld [vmem:[%s9913_s2 + $0x140] sm:$0xff]  ;;  %v8313_v14 = vpop.permute.xlu0 %823 }
  0xb9   : > { %6984 = vmatprep.subr.bf16.mxu0 %v6983_v17  ;;  %v7003_v18 = vpack.c.bf16 %v5264_v13, %v5263_v12  ;;  %v799_v12 = vrot.slane %v8156_v50, 1 }
  0xbb   : > { %v8392_v25 = vsel %vm803_vm1, %v798_v2, %v799_v12 }
  0xbc   : > { %6986 = vmatpush3.bf16.msra.mxu0 %v6983_v17  ;;  %v8319_v17 = vsel %vm803_vm1, %v802_v6, %v795_v5 }
  0xbd   : > { %6988 = vmatprep.subr.bf16.mxu0 %v6987_v22  ;;  %v861_v19 = vmul.f32 %v8313_v14, %v8319_v17 }
  0xbf   : > { %6180 = vmatmul.mubr.f32.vlgmr.msra.gmra.mrb[0].mxu0 %v488_v36  ;;  %v5270_v36 = vld [vmem:[%s9913_s2 + $0x178] sm:$0xff] }
  0xc0   : > { %6182 = vmatprep.mubr.f32.mxu0 %v489_v42  ;;  %6990 = vmatpush3.bf16.msra.mxu0 %v6987_v22  ;;  %v7007_v22 = vpack.c.bf16 %v5266_v21, %v5265_v20  ;;  %v8345_v42 = vpop.permute.xlu0 %833  ;;  %v7015_v44 = vpack.c.bf16 %v5270_v36, %v5269_v34  ;;  %v800_v20 = vrot.slane %v8163_v55, 1  ;;  %v5283_v21 = vld [vmem:[%s9913_s2 + $0x1a0] sm:$0xff] }
  0xc1   : > { %6992 = vmatprep.subr.bf16.mxu0 %v6991_v37 }
  0xc3   : > { %6183 = vmatmul.mubr.f32.gmra.mrb[2].mxu0 %v490_v53  ;;  %v797_v53 = vrot.slane %v8130_v39, 1 }
  0xc4   : > { %6185 = vmatprep.mubr.f32.mxu0 %v491_v62  ;;  %6994 = vmatpush3.bf16.msra.mxu0 %v6991_v37  ;;  %v8343_v37 = vpop.permute.xlu1 %828  ;;  %v8357_v62 = vsel %vm803_vm1, %v795_v5, %v796_v45  ;;  %v8373_v5 = vpop.permute.xlu0 %843 }
  0xc5   : > { %6996 = vmatprep.subr.bf16.mxu0 %v6995_v59  ;;  %v862_v13 = vmul.f32 %v8343_v37, %v8357_v62 }
  0xc7   : > { %6186 = vmatmul.mubr.f32.gmra.mrb[4].mxu0 %v492_v7  ;;  %v5281_v7 = vld [vmem:[%s9913_s2 + $0x190] sm:$0xff] }
  0xc8   : > { %6188 = vmatprep.mubr.f32.mxu0 %v493_v11  ;;  %6998 = vmatpush3.bf16.msra.mxu0 %v6995_v59  ;;  %v7019_v59 = vpack.c.bf16 %v5280_v54, %v5279_v46  ;;  %v8359_v1 = vpop.permute.xlu1 %838  ;;  %v8370_v11 = vsel %vm803_vm1, %v796_v45, %v797_v53  ;;  %v8399_v36 = vpop.permute.xlu0 %853  ;;  %v8403_v45 = vsel %vm803_vm1, %v799_v12, %v800_v20  ;;  %v5285_v54 = vld [vmem:[%s9913_s2 + $0x1b0] sm:$0xff] }
  0xc9   : > { %7000 = vmatprep.subr.bf16.mxu0 %v6999_v8  ;;  %v865_v46 = vmul.f32 %v8373_v5, %v8392_v25  ;;  %v8425_v12 = vsel %vm803_vm1, %v801_v26, %v802_v6 }
  0xcb   : > { %6189 = vmatmul.mubr.f32.gmra.mrb[6].mxu0 %v494_v57 }
  0xcc   : > { %7002 = vmatpush3.bf16.msra.mxu0 %v6999_v8  ;;  %6223 = vmatprep.mubr.f32.mxu0 %v861_v19  ;;  %v5282_v8 = vld [vmem:[%s9913_s2 + $0x198] sm:$0xff]  ;;  %v863_v19 = vmul.f32 %v8345_v42, %v8370_v11 }
  0xcd   : > { %7004 = vmatprep.subr.bf16.mxu0 %v7003_v18  ;;  %v7023_v57 = vpack.c.bf16 %v5282_v8, %v5281_v7 }
  0xd0   : > { %7006 = vmatpush3.bf16.msra.mxu0 %v7003_v18  ;;  %v8379_v18 = vsel %vm803_vm1, %v797_v53, %v798_v2  ;;  %v5286_v53 = vld [vmem:[%s9913_s2 + $0x1b8] sm:$0xff] }
  0xd1   : > { %7008 = vmatprep.subr.bf16.mxu0 %v7007_v22  ;;  %v864_v34 = vmul.f32 %v8359_v1, %v8379_v18  ;;  %v7031_v7 = vpack.c.bf16 %v5286_v53, %v5285_v54  ;;  %v5292_v54 = vld [vmem:[%s9913_s2 + $0x1e8] sm:$0xff] }
  0xd4   : > { %7010 = vmatpush3.bf16.msra.mxu0 %v7007_v22  ;;  %v5284_v22 = vld [vmem:[%s9913_s2 + $0x1a8] sm:$0xff] }
  0xd5   : > { %7012 = vmatprep.subr.bf16.mxu0 %v7011_v27 }
  0xd8   : > { %7014 = vmatpush3.bf16.msra.mxu0 %v7011_v27  ;;  %v8395_v27 = vpop.permute.xlu1 %848 }
  0xd9   : > { %7016 = vmatprep.subr.bf16.mxu0 %v7015_v44  ;;  %v866_v2 = vmul.f32 %v8395_v27, %v8403_v45 }
  0xdc   : > { %7018 = vmatpush3.bf16.msra.mxu0 %v7015_v44  ;;  %v7027_v44 = vpack.c.bf16 %v5284_v22, %v5283_v21  ;;  %v8419_v8 = vpop.permute.xlu1 %858 }
  0xdd   : > { %7020 = vmatprep.subr.bf16.mxu0 %v7019_v59  ;;  %v868_v6 = vmul.f32 %v8419_v8, %v8425_v12 }
  0xdf   : > { %6224 = vmatmul.mubr.f32.vlgmr.msra.gmra.mrb[0].mxu0 %v862_v13 }
  0xe0   : > { %6226 = vmatprep.mubr.f32.mxu0 %v863_v19  ;;  %7022 = vmatpush3.bf16.msra.mxu0 %v7019_v59  ;;  %v8415_v59 = vsel %vm803_vm1, %v800_v20, %v801_v26  ;;  %v5288_v19 = vld [vmem:[%s9913_s2 + $0x1c8] sm:$0xff]  ;;  %v8435_v20 = vpop.permute.xlu0 %1010  ;;  %v5289_v26 = vld [vmem:[%s9913_s2 + $0x1d0] sm:$0xff] }
  0xe1   : > { %7024 = vmatprep.subr.bf16.mxu0 %v7023_v57  ;;  %v867_v13 = vmul.f32 %v8399_v36, %v8415_v59  ;;  %v1048_v22 = vmul.f32 %v8435_v20, %v8232_v23 }
  0xe3   : > { %6227 = vmatmul.mubr.f32.gmra.mrb[2].mxu0 %v864_v34  ;;  %v5290_v34 = vld [vmem:[%s9913_s2 + $0x1d8] sm:$0xff] }
  0xe4   : > { %6229 = vmatprep.mubr.f32.mxu0 %v865_v46  ;;  %7026 = vmatpush3.bf16.msra.mxu0 %v7023_v57  ;;  %v5287_v57 = vld [vmem:[%s9913_s2 + $0x1c0] sm:$0xff] }
  0xe5   : > { %7028 = vmatprep.subr.bf16.mxu0 %v7027_v44  ;;  %v7035_v21 = vpack.c.bf16 %v5288_v19, %v5287_v57  ;;  %v5291_v46 = vld [vmem:[%s9913_s2 + $0x1e0] sm:$0xff] }
  0xe6   : > { %v7043_v53 = vpack.c.bf16 %v5292_v54, %v5291_v46  ;;  %v5295_v19 = vld [vmem:[%s9913_s2 + $0x200] sm:$0xff] }
  0xe7   : > { %6230 = vmatmul.mubr.f32.gmra.mrb[4].mxu0 %v866_v2  ;;  %v5293_v2 = vld [vmem:[%s9913_s2 + $0x1f0] sm:$0xff] }
  0xe8   : > { %6232 = vmatprep.mubr.f32.mxu0 %v867_v13  ;;  %7030 = vmatpush3.bf16.msra.mxu0 %v7027_v44  ;;  %v7039_v44 = vpack.c.bf16 %v5290_v34, %v5289_v26  ;;  %v8459_v13 = vpop.permute.xlu1 %1015  ;;  %v5297_v34 = vld [vmem:[%s9913_s2 + $0x210] sm:$0xff] }
  0xe9   : > { %7032 = vmatprep.subr.bf16.mxu0 %v7031_v7  ;;  %10017 = vst [vmem:[#allocation10_spill] sm:$0xff] %v8459_v13  ;;  %v1049_v46 = vmul.f32 %v8459_v13, %v8245_v32 }
  0xeb   : > { %6233 = vmatmul.mubr.f32.gmra.mrb[6].mxu0 %v868_v6  ;;  %v5296_v6 = vld [vmem:[%s9913_s2 + $0x208] sm:$0xff] }
  0xec   : > { %7034 = vmatpush3.bf16.msra.mxu0 %v7031_v7  ;;  %6267 = vmatprep.mubr.f32.mxu0 %v1048_v22  ;;  %v5294_v7 = vld [vmem:[%s9913_s2 + $0x1f8] sm:$0xff]  ;;  %v7051_v22 = vpack.c.bf16 %v5296_v6, %v5295_v19  ;;  %v8469_v26 = vpop.permute.xlu1 %1025  ;;  %v5300_v19 = vld [vmem:[%s9913_s2 + $0x228] sm:$0xff] }
  0xed   : > { %7036 = vmatprep.subr.bf16.mxu0 %v7035_v21  ;;  %v7047_v57 = vpack.c.bf16 %v5294_v7, %v5293_v2  ;;  %10019 = vst [vmem:[#allocation12_spill] sm:$0xff] %v8469_v26  ;;  %v5299_v7 = vld [vmem:[%s9913_s2 + $0x220] sm:$0xff]  ;;  %v1051_v6 = vmul.f32 %v8469_v26, %v8267_v52 }
  0xf0   : > { %7038 = vmatpush3.bf16.msra.mxu0 %v7035_v21  ;;  %v8467_v21 = vpop.permute.xlu0 %1020 }
  0xf1   : > { %7040 = vmatprep.subr.bf16.mxu0 %v7039_v44  ;;  %10018 = vst [vmem:[#allocation11_spill] sm:$0xff] %v8467_v21  ;;  %v1050_v2 = vmul.f32 %v8467_v21, %v8254_v41  ;;  %v5301_v21 = vld [vmem:[%s9913_s2 + $0x230] sm:$0xff] }
  0xf4   : > { %7042 = vmatpush3.bf16.msra.mxu0 %v7039_v44  ;;  %v5298_v44 = vld [vmem:[%s9913_s2 + $0x218] sm:$0xff]  ;;  %v8479_v54 = vpop.permute.xlu0 %1030 }
  0xf5   : > { %7044 = vmatprep.subr.bf16.mxu0 %v7043_v53  ;;  %10020 = vst [vmem:[#allocation13_spill] sm:$0xff] %v8479_v54 }
  0xf8   : > { %7046 = vmatpush3.bf16.msra.mxu0 %v7043_v53  ;;  %v7055_v53 = vpack.c.bf16 %v5298_v44, %v5297_v34  ;;  %v7059_v34 = vpack.c.bf16 %v5300_v19, %v5299_v7  ;;  %v1052_v44 = vmul.f32 %v8479_v54, %v8278_v61  ;;  %v8501_v13 = vpop.permute.xlu0 %1040  ;;  %v5303_v54 = vld [vmem:[%s9913_s2 + $0x240] sm:$0xff] }
  0xf9   : > { %7048 = vmatprep.subr.bf16.mxu0 %v7047_v57  ;;  %10022 = vst [vmem:[#allocation15_spill] sm:$0xff] %v8501_v13  ;;  %v1054_v19 = vmul.f32 %v8501_v13, %v8303_v10 }
  0xfc   : > { %7050 = vmatpush3.bf16.msra.mxu0 %v7047_v57  ;;  %v8489_v57 = vpop.permute.xlu1 %1035 }
  0xfd   : > { %7052 = vmatprep.subr.bf16.mxu0 %v7051_v22  ;;  %10021 = vst [vmem:[#allocation14_spill] sm:$0xff] %v8489_v57 }
  0xff   : > { %6268 = vmatmul.mubr.f32.vlgmr.msra.gmra.mrb[0].mxu0 %v1049_v46  ;;  %v5302_v46 = vld [vmem:[%s9913_s2 + $0x238] sm:$0xff] }
 0x100   : > { %6270 = vmatprep.mubr.f32.mxu0 %v1050_v2  ;;  %7054 = vmatpush3.bf16.msra.mxu0 %v7051_v22  ;;  %v1053_v22 = vmul.f32 %v8489_v57, %v8290_v3  ;;  %v7063_v2 = vpack.c.bf16 %v5302_v46, %v5301_v21  ;;  %v8505_v7 = vpop.permute.xlu1 %1045  ;;  %v5306_v46 = vld [vmem:[%s9913_s2 + $0x258] sm:$0xff]  ;;  %v5348_v57 = vld [vmem:[%s9913_s2 + $0x328] sm:$0xff] }
 0x101   : > { %7056 = vmatprep.subr.bf16.mxu0 %v7055_v53  ;;  %10023 = vst [vmem:[#allocation16_spill] sm:$0xff] %v8505_v7 }
 0x103   : > { %6271 = vmatmul.mubr.f32.gmra.mrb[2].mxu0 %v1051_v6  ;;  %v5304_v6 = vld [vmem:[%s9913_s2 + $0x248] sm:$0xff] }
 0x104   : > { %6273 = vmatprep.mubr.f32.mxu0 %v1052_v44  ;;  %7058 = vmatpush3.bf16.msra.mxu0 %v7055_v53  ;;  %v1055_v53 = vmul.f32 %v8505_v7, %v8186_v0  ;;  %v7067_v21 = vpack.c.bf16 %v5304_v6, %v5303_v54  ;;  %v5305_v44 = vld [vmem:[%s9913_s2 + $0x250] sm:$0xff]  ;;  %v5308_v54 = vld [vmem:[%s9913_s2 + $0x268] sm:$0xff] }
 0x105   : > { %7060 = vmatprep.subr.bf16.mxu0 %v7059_v34  ;;  %v5309_v6 = vld [vmem:[%s9913_s2 + $0x270] sm:$0xff] }
 0x107   : > { %6274 = vmatmul.mubr.f32.gmra.mrb[4].mxu0 %v1053_v22  ;;  %v7071_v22 = vpack.c.bf16 %v5306_v46, %v5305_v44  ;;  %v5319_v44 = vld [vmem:[%s9913_s2 + $0x280] sm:$0xff] }
 0x108   : > { %6276 = vmatprep.mubr.f32.mxu0 %v1054_v19  ;;  %7062 = vmatpush3.bf16.msra.mxu0 %v7059_v34  ;;  %v5307_v34 = vld [vmem:[%s9913_s2 + $0x260] sm:$0xff] }
 0x109   : > { %7064 = vmatprep.subr.bf16.mxu0 %v7063_v2  ;;  %v7075_v19 = vpack.c.bf16 %v5308_v54, %v5307_v34  ;;  %v5321_v34 = vld [vmem:[%s9913_s2 + $0x290] sm:$0xff] }
 0x10b   : > { %6277 = vmatmul.mubr.f32.gmra.mrb[6].mxu0 %v1055_v53 }
 0x10c   : > { %7066 = vmatpush3.bf16.msra.mxu0 %v7063_v2  ;;  %6311 = vmatprep.mubr.f32.mxu0 %v8117_v33  ;;  %v5310_v2 = vld [vmem:[%s9913_s2 + $0x278] sm:$0xff] }
 0x10d   : > { %7068 = vmatprep.subr.bf16.mxu0 %v7067_v21  ;;  %v7079_v53 = vpack.c.bf16 %v5310_v2, %v5309_v6  ;;  %v5323_v6 = vld [vmem:[%s9913_s2 + $0x2a0] sm:$0xff] }
 0x110   : > { %7070 = vmatpush3.bf16.msra.mxu0 %v7067_v21  ;;  %v5320_v21 = vld [vmem:[%s9913_s2 + $0x288] sm:$0xff] }
 0x111   : > { %7072 = vmatprep.subr.bf16.mxu0 %v7071_v22  ;;  %v7083_v46 = vpack.c.bf16 %v5320_v21, %v5319_v44  ;;  %v5326_v44 = vld [vmem:[%s9913_s2 + $0x2b8] sm:$0xff] }
 0x114   : > { %7074 = vmatpush3.bf16.msra.mxu0 %v7071_v22  ;;  %v5322_v22 = vld [vmem:[%s9913_s2 + $0x298] sm:$0xff] }
 0x115   : > { %7076 = vmatprep.subr.bf16.mxu0 %v7075_v19  ;;  %v7087_v54 = vpack.c.bf16 %v5322_v22, %v5321_v34  ;;  %v5328_v34 = vld [vmem:[%s9913_s2 + $0x2c8] sm:$0xff]  ;;  %v8570_v22 = vpop.permute.xlu0 %1327 }
 0x116   : > { %10024 = vst [vmem:[#allocation17_spill] sm:$0xff] %v8570_v22 }
 0x118   : > { %7078 = vmatpush3.bf16.msra.mxu0 %v7075_v19  ;;  %v5324_v19 = vld [vmem:[%s9913_s2 + $0x2a8] sm:$0xff] }
 0x119   : > { %7080 = vmatprep.subr.bf16.mxu0 %v7079_v53  ;;  %v7091_v2 = vpack.c.bf16 %v5324_v19, %v5323_v6  ;;  %v1365_v6 = vmul.f32 %v8570_v22, %v8357_v62  ;;  %v5329_v19 = vld [vmem:[%s9913_s2 + $0x2d0] sm:$0xff] }
 0x11a   : > { %v5333_v22 = vld [vmem:[%s9913_s2 + $0x2f0] sm:$0xff] }
 0x11c   : > { %7082 = vmatpush3.bf16.msra.mxu0 %v7079_v53  ;;  %v5325_v53 = vld [vmem:[%s9913_s2 + $0x2b0] sm:$0xff] }
 0x11d   : > { %7084 = vmatprep.subr.bf16.mxu0 %v7083_v46  ;;  %v7095_v21 = vpack.c.bf16 %v5326_v44, %v5325_v53  ;;  %v5330_v53 = vld [vmem:[%s9913_s2 + $0x2d8] sm:$0xff]  ;;  %v5331_v44 = vld [vmem:[%s9913_s2 + $0x2e0] sm:$0xff] }
 0x11f   : > { %6312 = vmatmul.mubr.f32.vlgmr.msra.gmra.mrb[0].mxu0 %v8112_v31 }
 0x120   : > { %7086 = vmatpush3.bf16.msra.mxu0 %v7083_v46  ;;  %6314 = vmatprep.mubr.f32.mxu0 %v8130_v39  ;;  %v5327_v46 = vld [vmem:[%s9913_s2 + $0x2c0] sm:$0xff] }
 0x121   : > { %7088 = vmatprep.subr.bf16.mxu0 %v7087_v54 }
 0x123   : > { %6315 = vmatmul.mubr.f32.gmra.mrb[2].mxu0 %v8137_v43 }
 0x124   : > { %7090 = vmatpush3.bf16.msra.mxu0 %v7087_v54  ;;  %6317 = vmatprep.mubr.f32.mxu0 %v8156_v50  ;;  %v7099_v54 = vpack.c.bf16 %v5328_v34, %v5327_v46  ;;  %v5332_v46 = vld [vmem:[%s9913_s2 + $0x2e8] sm:$0xff] }
 0x125   : > { %7092 = vmatprep.subr.bf16.mxu0 %v7091_v2  ;;  %v7107_v34 = vpack.c.bf16 %v5332_v46, %v5331_v44  ;;  %v5344_v44 = vld [vmem:[%s9913_s2 + $0x308] sm:$0xff] }
 0x127   : > { %6318 = vmatmul.mubr.f32.gmra.mrb[4].mxu0 %v8163_v55 }
 0x128   : > { %7094 = vmatpush3.bf16.msra.mxu0 %v7091_v2  ;;  %6320 = vmatprep.mubr.f32.mxu0 %v8148_v47  ;;  %v7103_v2 = vpack.c.bf16 %v5330_v53, %v5329_v19  ;;  %v8597_v19 = vpop.permute.xlu0 %1337 }
 0x129   : > { %7096 = vmatprep.subr.bf16.mxu0 %v7095_v21  ;;  %10026 = vst [vmem:[#allocation19_spill] sm:$0xff] %v8597_v19 }
 0x12b   : > { %6321 = vmatmul.mubr.f32.gmra.mrb[6].mxu0 %v8105_v28 }
 0x12c   : > { %7098 = vmatpush3.bf16.msra.mxu0 %v7095_v21  ;;  %6355 = vmatprep.mubr.f32.mxu0 %v1365_v6  ;;  %v5334_v21 = vld [vmem:[%s9913_s2 + $0x2f8] sm:$0xff]  ;;  %v8595_v6 = vpop.permute.xlu1 %1332 }
 0x12d   : > { %7100 = vmatprep.subr.bf16.mxu0 %v7099_v54  ;;  %10025 = vst [vmem:[#allocation18_spill] sm:$0xff] %v8595_v6  ;;  %v7111_v53 = vpack.c.bf16 %v5334_v21, %v5333_v22  ;;  %v5346_v22 = vld [vmem:[%s9913_s2 + $0x318] sm:$0xff]  ;;  %v8613_v21 = vpop.permute.xlu0 %1347  ;;  %v1366_v13 = vmul.f32 %v8595_v6, %v8370_v11  ;;  %v5349_v6 = vld [vmem:[%s9913_s2 + $0x330] sm:$0xff] }
 0x12e   : > { %10027 = vst [vmem:[#allocation20_spill] sm:$0xff] %v8613_v21 }
 0x130   : > { %7102 = vmatpush3.bf16.msra.mxu0 %v7099_v54  ;;  %v5343_v54 = vld [vmem:[%s9913_s2 + $0x300] sm:$0xff]  ;;  %v8605_v7 = vpop.permute.xlu1 %1342 }
 0x131   : > { %7104 = vmatprep.subr.bf16.mxu0 %v7103_v2  ;;  %v7115_v46 = vpack.c.bf16 %v5344_v44, %v5343_v54  ;;  %v1367_v54 = vmul.f32 %v8597_v19, %v8379_v18  ;;  %v5347_v44 = vld [vmem:[%s9913_s2 + $0x320] sm:$0xff]  ;;  %v1369_v19 = vmul.f32 %v8613_v21, %v8403_v45 }
 0x132   : > { %v5351_v21 = vld [vmem:[%s9913_s2 + $0x340] sm:$0xff] }
 0x134   : > { %7106 = vmatpush3.bf16.msra.mxu0 %v7103_v2  ;;  %v5345_v2 = vld [vmem:[%s9913_s2 + $0x310] sm:$0xff]  ;;  %v8625_v26 = vpop.permute.xlu1 %1352 }
 0x135   : > { %7108 = vmatprep.subr.bf16.mxu0 %v7107_v34  ;;  %10028 = vst [vmem:[#allocation21_spill] sm:$0xff] %v8625_v26 }
 0x138   : > { %7110 = vmatpush3.bf16.msra.mxu0 %v7107_v34  ;;  %v7119_v34 = vpack.c.bf16 %v5346_v22, %v5345_v2  ;;  %v8629_v2 = vpop.permute.xlu0 %1357  ;;  %v7123_v22 = vpack.c.bf16 %v5348_v57, %v5347_v44  ;;  %v8641_v57 = vpop.permute.xlu1 %1362 }
 0x139   : > { %7112 = vmatprep.subr.bf16.mxu0 %v7111_v53  ;;  %10029 = vst [vmem:[#allocation22_spill] sm:$0xff] %v8629_v2  ;;  %10030 = vst [vmem:[#allocation23_spill] sm:$0xff] %v8641_v57  ;;  %v1371_v44 = vmul.f32 %v8629_v2, %v8425_v12  ;;  %v5353_v2 = vld [vmem:[%s9913_s2 + $0x350] sm:$0xff] }
 0x13c   : > { %7114 = vmatpush3.bf16.msra.mxu0 %v7111_v53  ;;  %v1368_v53 = vmul.f32 %v8605_v7, %v8392_v25 }
 0x13d   : > { %7116 = vmatprep.subr.bf16.mxu0 %v7115_v46 }
 0x13f   : > { %6356 = vmatmul.mubr.f32.vlgmr.msra.gmra.mrb[0].mxu0 %v1366_v13  ;;  %v5350_v13 = vld [vmem:[%s9913_s2 + $0x338] sm:$0xff] }
 0x140   : > { %6358 = vmatprep.mubr.f32.mxu0 %v1367_v54  ;;  %7118 = vmatpush3.bf16.msra.mxu0 %v7115_v46  ;;  %v1370_v46 = vmul.f32 %v8625_v26, %v8415_v59  ;;  %v7127_v54 = vpack.c.bf16 %v5350_v13, %v5349_v6  ;;  %v1372_v6 = vmul.f32 %v8641_v57, %v8319_v17  ;;  %v5354_v26 = vld [vmem:[%s9913_s2 + $0x358] sm:$0xff] }
 0x141   : > { %7120 = vmatprep.subr.bf16.mxu0 %v7119_v34 }
 0x143   : > { %6359 = vmatmul.mubr.f32.gmra.mrb[2].mxu0 %v1368_v53  ;;  %v5352_v53 = vld [vmem:[%s9913_s2 + $0x348] sm:$0xff] }
 0x144   : > { %6361 = vmatprep.mubr.f32.mxu0 %v1369_v19  ;;  %7122 = vmatpush3.bf16.msra.mxu0 %v7119_v34  ;;  %v8651_v19 = vpop.permute.xlu0 %1514  ;;  %v7131_v34 = vpack.c.bf16 %v5352_v53, %v5351_v21  ;;  %v5355_v21 = vld [vmem:[%s9913_s2 + $0x360] sm:$0xff] }
 0x145   : > { %7124 = vmatprep.subr.bf16.mxu0 %v7123_v22  ;;  %10031 = vst [vmem:[#allocation24_spill] sm:$0xff] %v8651_v19  ;;  %v1552_v13 = vmul.f32 %v8651_v19, %v8245_v32  ;;  %v5356_v32 = vld [vmem:[%s9913_s2 + $0x368] sm:$0xff] }
 0x146   : > { %v5372_v19 = vld [vmem:[%s9913_s2 + $0x3a8] sm:$0xff] }
 0x147   : > { %6362 = vmatmul.mubr.f32.gmra.mrb[4].mxu0 %v1370_v46  ;;  %v7139_v46 = vpack.c.bf16 %v5356_v32, %v5355_v21  ;;  %v5370_v32 = vld [vmem:[%s9913_s2 + $0x398] sm:$0xff] }
 0x148   : > { %6364 = vmatprep.mubr.f32.mxu0 %v1371_v44  ;;  %7126 = vmatpush3.bf16.msra.mxu0 %v7123_v22  ;;  %v7135_v22 = vpack.c.bf16 %v5354_v26, %v5353_v2  ;;  %v5357_v44 = vld [vmem:[%s9913_s2 + $0x370] sm:$0xff]  ;;  %v8675_v26 = vpop.permute.xlu1 %1519  ;;  %v8677_v2 = vpop.permute.xlu0 %1524 }
 0x149   : > { %7128 = vmatprep.subr.bf16.mxu0 %v7127_v54  ;;  %10032 = vst [vmem:[#allocation25_spill] sm:$0xff] %v8677_v2 }
 0x14b   : > { %6365 = vmatmul.mubr.f32.gmra.mrb[6].mxu0 %v1372_v6  ;;  %v5367_v6 = vld [vmem:[%s9913_s2 + $0x380] sm:$0xff] }
 0x14c   : > { %7130 = vmatpush3.bf16.msra.mxu0 %v7127_v54  ;;  %6399 = vmatprep.mubr.f32.mxu0 %v1552_v13  ;;  %v5358_v54 = vld [vmem:[%s9913_s2 + $0x378] sm:$0xff]  ;;  %v8685_v21 = vpop.permute.xlu1 %1529 }
 0x14d   : > { %7132 = vmatprep.subr.bf16.mxu0 %v7131_v34  ;;  %v7143_v53 = vpack.c.bf16 %v5358_v54, %v5357_v44  ;;  %10033 = vst [vmem:[#allocation26_spill] sm:$0xff] %v8685_v21  ;;  %v8693_v44 = vpop.permute.xlu0 %1534  ;;  %v1553_v54 = vmul.f32 %v8675_v26, %v8254_v41  ;;  %v1555_v41 = vmul.f32 %v8685_v21, %v8278_v61 }
 0x14e   : > { %10034 = vst [vmem:[#allocation27_spill] sm:$0xff] %v8693_v44 }
 0x150   : > { %7134 = vmatpush3.bf16.msra.mxu0 %v7131_v34  ;;  %v5368_v34 = vld [vmem:[%s9913_s2 + $0x388] sm:$0xff]  ;;  %v8705_v57 = vpop.permute.xlu1 %1539 }
 0x151   : > { %7136 = vmatprep.subr.bf16.mxu0 %v7135_v22  ;;  %v7147_v13 = vpack.c.bf16 %v5368_v34, %v5367_v6  ;;  %v1554_v6 = vmul.f32 %v8677_v2, %v8267_v52  ;;  %v5371_v34 = vld [vmem:[%s9913_s2 + $0x3a0] sm:$0xff]  ;;  %10035 = vst [vmem:[#allocation28_spill] sm:$0xff] %v8705_v57  ;;  %v1557_v61 = vmul.f32 %v8705_v57, %v8303_v10 }
 0x152   : > { %v7155_v52 = vpack.c.bf16 %v5372_v19, %v5371_v34  ;;  %v5376_v34 = vld [vmem:[%s9913_s2 + $0x3c8] sm:$0xff] }
 0x154   : > { %7138 = vmatpush3.bf16.msra.mxu0 %v7135_v22  ;;  %v5369_v22 = vld [vmem:[%s9913_s2 + $0x390] sm:$0xff]  ;;  %v8721_v19 = vpop.permute.xlu1 %1549 }
 0x155   : > { %7140 = vmatprep.subr.bf16.mxu0 %v7139_v46  ;;  %10037 = vst [vmem:[#allocation30_spill] sm:$0xff] %v8721_v19  ;;  %v1559_v10 = vmul.f32 %v8721_v19, %v8232_v23  ;;  %v5379_v23 = vld [vmem:[%s9913_s2 + $0x3e0] sm:$0xff] }
 0x158   : > { %7142 = vmatpush3.bf16.msra.mxu0 %v7139_v46  ;;  %v7151_v46 = vpack.c.bf16 %v5370_v32, %v5369_v22  ;;  %v1556_v22 = vmul.f32 %v8693_v44, %v8290_v3  ;;  %v5373_v32 = vld [vmem:[%s9913_s2 + $0x3b0] sm:$0xff] }
 0x159   : > { %7144 = vmatprep.subr.bf16.mxu0 %v7143_v53 }
 0x15c   : > { %7146 = vmatpush3.bf16.msra.mxu0 %v7143_v53  ;;  %v8709_v53 = vpop.permute.xlu0 %1544 }
 0x15d   : > { %7148 = vmatprep.subr.bf16.mxu0 %v7147_v13  ;;  %10036 = vst [vmem:[#allocation29_spill] sm:$0xff] %v8709_v53  ;;  %v1558_v3 = vmul.f32 %v8709_v53, %v8186_v0 }
 0x15f   : > { %6400 = vmatmul.mubr.f32.vlgmr.msra.gmra.mrb[0].mxu0 %v1553_v54  ;;  %v5374_v54 = vld [vmem:[%s9913_s2 + $0x3b8] sm:$0xff] }
 0x160   : > { %6402 = vmatprep.mubr.f32.mxu0 %v1554_v6  ;;  %7150 = vmatpush3.bf16.msra.mxu0 %v7147_v13  ;;  %v7159_v13 = vpack.c.bf16 %v5374_v54, %v5373_v32  ;;  %v5375_v6 = vld [vmem:[%s9913_s2 + $0x3c0] sm:$0xff]  ;;  %v5378_v32 = vld [vmem:[%s9913_s2 + $0x3d8] sm:$0xff] }
 0x161   : > { %7152 = vmatprep.subr.bf16.mxu0 %v7151_v46 }
 0x163   : > { %6403 = vmatmul.mubr.f32.gmra.mrb[2].mxu0 %v1555_v41  ;;  %v8731_v41 = vpop.permute.xlu0 %1701 }
 0x164   : > { %6405 = vmatprep.mubr.f32.mxu0 %v1556_v22  ;;  %7154 = vmatpush3.bf16.msra.mxu0 %v7151_v46  ;;  %10038 = vst [vmem:[#allocation31_spill] sm:$0xff] %v8731_v41  ;;  %v7163_v46 = vpack.c.bf16 %v5376_v34, %v5375_v6  ;;  %v1739_v0 = vmul.f32 %v8731_v41, %v8112_v31  ;;  %v5377_v22 = vld [vmem:[%s9913_s2 + $0x3d0] sm:$0xff]  ;;  %v5380_v31 = vld [vmem:[%s9913_s2 + $0x3e8] sm:$0xff] }
 0x165   : > { %7156 = vmatprep.subr.bf16.mxu0 %v7155_v52  ;;  %v7171_v54 = vpack.c.bf16 %v5380_v31, %v5379_v23 }
 0x167   : > { %6406 = vmatmul.mubr.f32.gmra.mrb[4].mxu0 %v1557_v61  ;;  %v5381_v61 = vld [vmem:[%s9913_s2 + $0x3f0] sm:$0xff]  ;;  %v8757_v6 = vpop.permute.xlu0 %1711 }
 0x168   : > { %6408 = vmatprep.mubr.f32.mxu0 %v1558_v3  ;;  %7158 = vmatpush3.bf16.msra.mxu0 %v7155_v52  ;;  %v7167_v52 = vpack.c.bf16 %v5378_v32, %v5377_v22  ;;  %v8755_v3 = vpop.permute.xlu1 %1706  ;;  %10040 = vst [vmem:[#allocation33_spill] sm:$0xff] %v8757_v6  ;;  %v5393_v32 = vld [vmem:[%s9913_s2 + $0x410] sm:$0xff] }
 0x169   : > { %7160 = vmatprep.subr.bf16.mxu0 %v7159_v13  ;;  %10039 = vst [vmem:[#allocation32_spill] sm:$0xff] %v8755_v3  ;;  %v1740_v31 = vmul.f32 %v8755_v3, %v8130_v39 }
 0x16b   : > { %6409 = vmatmul.mubr.f32.gmra.mrb[6].mxu0 %v1559_v10  ;;  %v5391_v10 = vld [vmem:[%s9913_s2 + $0x400] sm:$0xff]  ;;  %v8773_v23 = vpop.permute.xlu0 %1721 }
 0x16c   : > { %7162 = vmatpush3.bf16.msra.mxu0 %v7159_v13  ;;  %6443 = vmatprep.mubr.f32.mxu0 %v1739_v0  ;;  %v5382_v13 = vld [vmem:[%s9913_s2 + $0x3f8] sm:$0xff]  ;;  %v8765_v22 = vpop.permute.xlu1 %1716  ;;  %10042 = vst [vmem:[#allocation35_spill] sm:$0xff] %v8773_v23 }
 0x16d   : > { %7164 = vmatprep.subr.bf16.mxu0 %v7163_v46  ;;  %v7175_v34 = vpack.c.bf16 %v5382_v13, %v5381_v61  ;;  %10041 = vst [vmem:[#allocation34_spill] sm:$0xff] %v8765_v22  ;;  %v1741_v61 = vmul.f32 %v8757_v6, %v8137_v43  ;;  %v5395_v13 = vld [vmem:[%s9913_s2 + $0x420] sm:$0xff]  ;;  %v1742_v39 = vmul.f32 %v8765_v22, %v8156_v50 }
 0x170   : > { %7166 = vmatpush3.bf16.msra.mxu0 %v7163_v46  ;;  %v5392_v46 = vld [vmem:[%s9913_s2 + $0x408] sm:$0xff] }
 0x171   : > { %7168 = vmatprep.subr.bf16.mxu0 %v7167_v52  ;;  %v7179_v0 = vpack.c.bf16 %v5392_v46, %v5391_v10  ;;  %v5396_v10 = vld [vmem:[%s9913_s2 + $0x428] sm:$0xff]  ;;  %v8785_v46 = vpop.permute.xlu1 %1726 }
 0x172   : > { %10043 = vst [vmem:[#allocation36_spill] sm:$0xff] %v8785_v46  ;;  %v7187_v43 = vpack.c.bf16 %v5396_v10, %v5395_v13  ;;  %v1744_v50 = vmul.f32 %v8785_v46, %v8148_v47  ;;  %v5399_v13 = vld [vmem:[%s9913_s2 + $0x440] sm:$0xff]  ;;  %v5400_v10 = vld [vmem:[%s9913_s2 + $0x448] sm:$0xff] }
 0x174   : > { %7170 = vmatpush3.bf16.msra.mxu0 %v7167_v52  ;;  %v5394_v52 = vld [vmem:[%s9913_s2 + $0x418] sm:$0xff] }
 0x175   : > { %7172 = vmatprep.subr.bf16.mxu0 %v7171_v54 }
 0x178   : > { %7174 = vmatpush3.bf16.msra.mxu0 %v7171_v54  ;;  %v7183_v54 = vpack.c.bf16 %v5394_v52, %v5393_v32  ;;  %v1743_v32 = vmul.f32 %v8773_v23, %v8163_v55  ;;  %v5397_v52 = vld [vmem:[%s9913_s2 + $0x430] sm:$0xff] }
 0x179   : > { %7176 = vmatprep.subr.bf16.mxu0 %v7175_v34 }
 0x17c   : > { %7178 = vmatpush3.bf16.msra.mxu0 %v7175_v34  ;;  %v8789_v34 = vpop.permute.xlu0 %1731 }
 0x17d   : > { %7180 = vmatprep.subr.bf16.mxu0 %v7179_v0  ;;  %10044 = vst [vmem:[#allocation37_spill] sm:$0xff] %v8789_v34  ;;  %v1745_v55 = vmul.f32 %v8789_v34, %v8105_v28 }
 0x17f   : > { %6444 = vmatmul.mubr.f32.vlgmr.msra.gmra.mrb[0].mxu0 %v1740_v31  ;;  %v5398_v31 = vld [vmem:[%s9913_s2 + $0x438] sm:$0xff] }
 0x180   : > { %6446 = vmatprep.mubr.f32.mxu0 %v1741_v61  ;;  %7182 = vmatpush3.bf16.msra.mxu0 %v7179_v0  ;;  %v7191_v0 = vpack.c.bf16 %v5398_v31, %v5397_v52  ;;  %v8801_v61 = vpop.permute.xlu1 %1736  ;;  %v5402_v52 = vld [vmem:[%s9913_s2 + $0x458] sm:$0xff] }
 0x181   : > { %7184 = vmatprep.subr.bf16.mxu0 %v7183_v54  ;;  %10045 = vst [vmem:[#allocation38_spill] sm:$0xff] %v8801_v61  ;;  %v1746_v47 = vmul.f32 %v8801_v61, %v8117_v33  ;;  %v5403_v33 = vld [vmem:[%s9913_s2 + $0x460] sm:$0xff]  ;;  %v5431_v61 = vld [vmem:[%s9915_s4 + $0x58] sm:$0xff] }
 0x183   : > { %6447 = vmatmul.mubr.f32.gmra.mrb[2].mxu0 %v1742_v39  ;;  %v8811_v39 = vpop.permute.xlu0 %1888 }
 0x184   : > { %6449 = vmatprep.mubr.f32.mxu0 %v1743_v32  ;;  %7186 = vmatpush3.bf16.msra.mxu0 %v7183_v54  ;;  %10046 = vst [vmem:[#allocation39_spill] sm:$0xff] %v8811_v39  ;;  %v7195_v54 = vpack.c.bf16 %v5400_v10, %v5399_v13  ;;  %v1926_v28 = vmul.f32 %v8811_v39, %v8370_v11  ;;  %v5401_v32 = vld [vmem:[%s9913_s2 + $0x450] sm:$0xff]  ;;  %v5404_v11 = vld [vmem:[%s9913_s2 + $0x468] sm:$0xff] }
 0x185   : > { %7188 = vmatprep.subr.bf16.mxu0 %v7187_v43  ;;  %v7203_v31 = vpack.c.bf16 %v5404_v11, %v5403_v33 }
 0x187   : > { %6450 = vmatmul.mubr.f32.gmra.mrb[4].mxu0 %v1744_v50  ;;  %v5405_v50 = vld [vmem:[%s9913_s2 + $0x470] sm:$0xff]  ;;  %v8837_v10 = vpop.permute.xlu0 %1898 }
 0x188   : > { %6452 = vmatprep.mubr.f32.mxu0 %v1745_v55  ;;  %7190 = vmatpush3.bf16.msra.mxu0 %v7187_v43  ;;  %v7199_v43 = vpack.c.bf16 %v5402_v52, %v5401_v32  ;;  %v8835_v55 = vpop.permute.xlu1 %1893  ;;  %10048 = vst [vmem:[#allocation41_spill] sm:$0xff] %v8837_v10  ;;  %v1928_v32 = vmul.f32 %v8837_v10, %v8392_v25 }
 0x189   : > { %7192 = vmatprep.subr.bf16.mxu0 %v7191_v0  ;;  %10047 = vst [vmem:[#allocation40_spill] sm:$0xff] %v8835_v55 }
 0x18b   : > { %6453 = vmatmul.mubr.f32.gmra.mrb[6].mxu0 %v1746_v47 }
 0x18c   : > { %7194 = vmatpush3.bf16.msra.mxu0 %v7191_v0  ;;  %6487 = vmatprep.mubr.f32.mxu0 %v1926_v28  ;;  %v5406_v0 = vld [vmem:[%s9913_s2 + $0x478] sm:$0xff]  ;;  %v8839_v47 = vpop.permute.xlu1 %1903  ;;  %v8843_v28 = vpop.permute.xlu0 %1908 }
 0x18d   : > { %7196 = vmatprep.subr.bf16.mxu0 %v7195_v54  ;;  %v7207_v13 = vpack.c.bf16 %v5406_v0, %v5405_v50  ;;  %10049 = vst [vmem:[#allocation42_spill] sm:$0xff] %v8839_v47  ;;  %10050 = vst [vmem:[#allocation43_spill] sm:$0xff] %v8843_v28  ;;  %v1930_v33 = vmul.f32 %v8843_v28, %v8415_v59  ;;  %v2111_v59 = vld [vmem:[%s9915_s4] sm:$0xff]  ;;  %v2112_v50 = vld [vmem:[%s9915_s4 + $0x8] sm:$0xff] }
 0x190   : > { %7198 = vmatpush3.bf16.msra.mxu0 %v7195_v54  ;;  %v1927_v54 = vmul.f32 %v8835_v55, %v8379_v18  ;;  %v8847_v52 = vpop.permute.xlu1 %1913  ;;  %v8853_v11 = vpop.permute.xlu0 %1918 }
 0x191   : > { %7200 = vmatprep.subr.bf16.mxu0 %v7199_v43  ;;  %10051 = vst [vmem:[#allocation44_spill] sm:$0xff] %v8847_v52  ;;  %10052 = vst [vmem:[#allocation45_spill] sm:$0xff] %v8853_v11  ;;  %v1931_v18 = vmul.f32 %v8847_v52, %v8425_v12  ;;  %v1932_v25 = vmul.f32 %v8853_v11, %v8319_v17  ;;  %v8869_v12 = vpack.c.bf16 %v2112_v50, %v2111_v59  ;;  %v2113_v17 = vld [vmem:[%s9915_s4 + $0x10] sm:$0xff]  ;;  %v5407_v50 = vld [vmem:[%s9914_s3] ss:$0 sm:$0xff] }
 0x193   : > { %7395 = vmatprep.subr.bf16.mxu1 %v8869_v12 }
 0x194   : > { %7202 = vmatpush3.bf16.msra.mxu0 %v7199_v43  ;;  %v1929_v43 = vmul.f32 %v8839_v47, %v8403_v45  ;;  %7397 = vmatpush3.bf16.msra.mxu1 %v8869_v12 }
 0x195   : > { %7204 = vmatprep.subr.bf16.mxu0 %v7203_v31 }
 0x198   : > { %7206 = vmatpush3.bf16.msra.mxu0 %v7203_v31  ;;  %v8857_v31 = vpop.permute.xlu1 %1923 }
 0x199   : > { %7208 = vmatprep.subr.bf16.mxu0 %v7207_v13  ;;  %10053 = vst [vmem:[#allocation46_spill] sm:$0xff] %v8857_v31  ;;  %v1933_v45 = vmul.f32 %v8857_v31, %v8357_v62  ;;  %v2114_v62 = vld [vmem:[%s9915_s4 + $0x18] sm:$0xff] }
 0x19a   : > { %v8879_v0 = vpack.c.bf16 %v2114_v62, %v2113_v17 }
 0x19c   : > { %7210 = vmatpush3.bf16.msra.mxu0 %v7207_v13  ;;  %7396 = vmatprep.subr.bf16.mxu1 %v8879_v0  ;;  %v5408_v13 = vld [vmem:[%s9915_s4 + $0x20] sm:$0xff] }
 0x19d   : > { %7398 = vmatpush3.bf16.msra.mxu1 %v8879_v0 }
 0x19f   : > { %6488 = vmatmul.mubr.f32.vlgmr.msra.gmra.mrb[0].mxu0 %v1927_v54  ;;  %v5409_v54 = vld [vmem:[%s9915_s4 + $0x28] sm:$0xff] }
 0x1a0   : > { %6490 = vmatprep.mubr.f32.mxu0 %v1928_v32  ;;  %v7211_v32 = vpack.c.bf16 %v5409_v54, %v5408_v13 }
 0x1a2   : > { %7212 = vmatprep.subr.bf16.mxu0 %v7211_v32 }
 0x1a3   : > { %6491 = vmatmul.mubr.f32.gmra.mrb[2].mxu0 %v1929_v43  ;;  %v5410_v43 = vld [vmem:[%s9915_s4 + $0x30] sm:$0xff] }
 0x1a4   : > { %6493 = vmatprep.mubr.f32.mxu0 %v1930_v33  ;;  %7214 = vmatpush3.bf16.msra.mxu0 %v7211_v32  ;;  %v5411_v33 = vld [vmem:[%s9915_s4 + $0x38] sm:$0xff] }
 0x1a7   : > { %6494 = vmatmul.mubr.f32.gmra.mrb[4].mxu0 %v1931_v18  ;;  %v7215_v18 = vpack.c.bf16 %v5411_v33, %v5410_v43 }
 0x1a8   : > { %6496 = vmatprep.mubr.f32.mxu0 %v1932_v25  ;;  %v5428_v25 = vld [vmem:[%s9915_s4 + $0x40] sm:$0xff] }
 0x1a9   : > { %7216 = vmatprep.subr.bf16.mxu0 %v7215_v18 }
 0x1aa   : > { %7218 = vmatpush3.bf16.msra.mxu0 %v7215_v18 }
 0x1ab   : > { %6497 = vmatmul.mubr.f32.gmra.mrb[6].mxu0 %v1933_v45  ;;  %v5429_v45 = vld [vmem:[%s9915_s4 + $0x48] sm:$0xff]  ;;  %7220 = vmatprep.subr.bf16.mxu0 %v8869_v12 }
 0x1ac   : > { %v7227_v59 = vpack.c.bf16 %v5429_v45, %v5428_v25 }
 0x1ae   : > { %7228 = vmatprep.subr.bf16.mxu1 %v7227_v59 }
 0x272   : > { %v6489_v17 = vpop.f32.mrb[0].mxu0 }
 0x273   : > { %v2072_v62 = vadd.f32 %v6489_v17, %v5407_v50  ;;  %v2017_v13 = vpop.f32.mrb[1].mxu0 }
 0x274   : > { %v2071_v54 = vadd.f32 %v5407_v50, %v2017_v13 }
 0x275   : > { %v8905_v32 = vmax.f32 %v2072_v62, 0.0 }
 0x276   : > { %v8907_v43 = vmax.f32 %v2071_v54, 0.0  ;;  %v6492_v33 = vpop.f32.mrb[2].mxu0 }
 0x277   : > { %v2388_v31 = vrot.slane %v8905_v32, 1  ;;  %v2074_v25 = vadd.f32 %v6492_v33, %v5407_v50  ;;  %v2027_v18 = vpop.f32.mrb[3].mxu0  ;;  %v2088_v45 = vrot.slane %v8905_v32, 7 }
 0x278   : > { %v2387_v11 = vrot.slane %v8907_v43, 1  ;;  %v2073_v52 = vadd.f32 %v5407_v50, %v2027_v18  ;;  %v2087_v28 = vrot.slane %v8907_v43, 7 }
 0x279   : > { %v8913_v47 = vmax.f32 %v2074_v25, 0.0 }
 0x27a   : > { %v8917_v17 = vsel %vm803_vm1, %v2387_v11, %v2388_v31  ;;  %v8919_v62 = vmax.f32 %v2073_v52, 0.0  ;;  %v6495_v13 = vpop.f32.mrb[4].mxu0  ;;  %v8923_v54 = vsel %vm430_vm0, %v2087_v28, %v2088_v45  ;;  %v5430_v52 = vld [vmem:[%s9915_s4 + $0x50] sm:$0xff] }
 0x27b   : > { %v2090_v33 = vrot.slane %v8913_v47, 7  ;;  %v2076_v10 = vadd.f32 %v6495_v13, %v5407_v50  ;;  %v2037_v18 = vpop.f32.mrb[5].mxu0  ;;  %v2105_v25 = vmul.f32 %v8923_v54, %v8220_v16  ;;  %v7231_v3 = vpack.c.bf16 %v5431_v61, %v5430_v52 }
 0x27c   : > { %v2089_v55 = vrot.slane %v8919_v62, 7  ;;  %v2075_v39 = vadd.f32 %v5407_v50, %v2037_v18  ;;  %v2389_v13 = vrot.slane %v8919_v62, 1  ;;  %v2390_v19 = vrot.slane %v8913_v47, 1 }
 0x27d   : > { %v8935_v34 = vmax.f32 %v2076_v10, 0.0  ;;  %6530 = vmatprep.mubr.msk.f32.mxu1 %vm2128_vm2, %v2105_v25  ;;  %v5440_v10 = vld [vmem:[%s9915_s4 + $0x60] sm:$0xff]  ;;  %v5441_v25 = vld [vmem:[%s9915_s4 + $0x68] sm:$0xff] }
 0x27e   : > { %v8939_v46 = vmax.f32 %v2075_v39, 0.0  ;;  %v6498_v16 = vpop.f32.mrb[6].mxu0  ;;  %v8943_v18 = vsel %vm430_vm0, %v2088_v45, %v2089_v55  ;;  %v8947_v23 = vsel %vm430_vm0, %v2089_v55, %v2090_v33  ;;  %v7235_v44 = vpack.c.bf16 %v5441_v25, %v5440_v10 }
 0x27f   : > { %v2092_v39 = vrot.slane %v8935_v34, 7  ;;  %v2078_v22 = vadd.f32 %v6498_v16, %v5407_v50  ;;  %v2047_v6 = vpop.f32.mrb[7].mxu0  ;;  %v2106_v45 = vmul.f32 %v8943_v18, %v8234_v24  ;;  %v2107_v57 = vmul.f32 %v8947_v23, %v8248_v35 }
 0x280   : > { %v2091_v41 = vrot.slane %v8939_v46, 7  ;;  %v2077_v55 = vadd.f32 %v5407_v50, %v2047_v6  ;;  %v2391_v52 = vrot.slane %v8939_v46, 1  ;;  %v2392_v25 = vrot.slane %v8935_v34, 1 }
 0x281   : > { %v8960_v53 = vmax.f32 %v2078_v22, 0.0  ;;  %6531 = vmatmul.mubr.msk.f32.vlgmr.msra.gmra.mrb[0].mxu1 %vm2128_vm2, %v2106_v45  ;;  %v8977_v22 = vsel %vm803_vm1, %v2388_v31, %v2389_v13  ;;  %v2117_v45 = vmul.f32 %v8905_v32, %v8107_v29 }
 0x282   : > { %v8965_v21 = vmax.f32 %v2077_v55, 0.0  ;;  %7230 = vmatpush3.bf16.msra.mxu1 %v7227_v59  ;;  %v8969_v16 = vsel %vm430_vm0, %v2090_v33, %v2091_v41  ;;  %v8973_v6 = vsel %vm430_vm0, %v2091_v41, %v2092_v39  ;;  %6533 = vmatprep.mubr.msk.f32.mxu1 %vm2128_vm2, %v2107_v57  ;;  %v2116_v41 = vmul.f32 %v8907_v43, %v8132_v40 }
 0x283   : > { %v2094_v61 = vrot.slane %v8960_v53, 7  ;;  %v2394_v50 = vrot.slane %v8960_v53, 1  ;;  %v2115_v59 = vmul.f32 %v8960_v53, %v8109_v30  ;;  %v2108_v33 = vmul.f32 %v8969_v16, %v8270_v56  ;;  %7232 = vmatprep.subr.bf16.mxu1 %v7231_v3 }
 0x284   : > { %v2093_v31 = vrot.slane %v8965_v21, 7  ;;  %v2109_v10 = vmul.f32 %v8973_v6, %v8274_v58 }
 0x285   : > { %v8995_v57 = vsel %vm430_vm0, %v2094_v61, %v2087_v28  ;;  %6507 = vmatprep.mubr.msk.f32.mxu0 %vm2128_vm2, %v2115_v59  ;;  %6534 = vmatmul.mubr.msk.f32.gmra.mrb[2].mxu1 %vm2128_vm2, %v2108_v33  ;;  %v9003_v55 = vsel %vm803_vm1, %v2394_v50, %v2387_v11  ;;  %v2393_v28 = vrot.slane %v8965_v21, 1  ;;  %v9017_v11 = vsel %vm803_vm1, %v2389_v13, %v2390_v19 }
 0x286   : > { %6508 = vmatmul.mubr.msk.f32.vlgmr.msra.gmra.mrb[8].mxu0 %vm2128_vm2, %v2116_v41  ;;  %6536 = vmatprep.mubr.msk.f32.mxu1 %vm2128_vm2, %v2109_v10  ;;  %v9009_v58 = vsel %vm430_vm0, %v2092_v39, %v2093_v31  ;;  %v2118_v33 = vmul.f32 %v8919_v62, %v8127_v38  ;;  %v2403_v41 = vmul.f32 %v9003_v55, %v8313_v14  ;;  %v5442_v10 = vld [vmem:[%s9915_s4 + $0x70] sm:$0xff] }
 0x287   : > { %6510 = vmatprep.mubr.msk.f32.mxu0 %vm2128_vm2, %v2117_v45  ;;  %7234 = vmatpush3.bf16.msra.mxu1 %v7231_v3  ;;  %v2110_v59 = vmul.f32 %v9009_v58, %v8297_v9  ;;  %v9026_v39 = vsel %vm803_vm1, %v2390_v19, %v2391_v52  ;;  %v2119_v3 = vmul.f32 %v8913_v47, %v8158_v51  ;;  %v5443_v19 = vld [vmem:[%s9915_s4 + $0x78] sm:$0xff] }
 0x288   : > { %7236 = vmatprep.subr.bf16.mxu1 %v7235_v44  ;;  %7222 = vmatpush3.bf16.msra.mxu0 %v8869_v12  ;;  %v9034_v13 = vsel %vm430_vm0, %v2093_v31, %v2094_v61  ;;  %v9044_v12 = vsel %vm803_vm1, %v2391_v52, %v2392_v25  ;;  %v2404_v61 = vmul.f32 %v8917_v17, %v8343_v37 }
 0x289   : > { %6537 = vmatmul.mubr.msk.f32.gmra.mrb[4].mxu1 %vm2128_vm2, %v2110_v59  ;;  %7224 = vmatprep.subr.bf16.mxu0 %v8879_v0  ;;  %v9053_v31 = vsel %vm803_vm1, %v2392_v25, %v2393_v28  ;;  %v9057_v45 = vsel %vm803_vm1, %v2393_v28, %v2394_v50  ;;  %v2120_v52 = vmul.f32 %v8939_v46, %v8153_v49  ;;  %v5452_v25 = vld [vmem:[%s9915_s4 + $0x80] sm:$0xff]  ;;  %v5453_v50 = vld [vmem:[%s9915_s4 + $0x88] sm:$0xff] }
 0x28a   : > { %6511 = vmatmul.mubr.msk.f32.gmra.mrb[10].mxu0 %vm2128_vm2, %v2118_v33  ;;  %6547 = vmatprep.mubr.msk.f32.mxu1 %vm2128_vm2, %v2403_v41  ;;  %v7239_v59 = vpack.c.bf16 %v5443_v19, %v5442_v10  ;;  %v2405_v33 = vmul.f32 %v8977_v22, %v8345_v42  ;;  %v2121_v41 = vmul.f32 %v8935_v34, %v8176_v60 }
 0x28b   : > { %6513 = vmatprep.mubr.msk.f32.mxu0 %vm2128_vm2, %v2119_v3  ;;  %v2122_v28 = vmul.f32 %v8965_v21, %v8180_v63  ;;  %v2407_v3 = vmul.f32 %v9026_v39, %v8373_v5  ;;  %v7243_v10 = vpack.c.bf16 %v5453_v50, %v5452_v25  ;;  %v2408_v19 = vmul.f32 %v9044_v12, %v8395_v27  ;;  %v5455_v25 = vld [vmem:[%s9915_s4 + $0x98] sm:$0xff]  ;;  %v10054_v50 = vld [vmem:[#allocation10_spill] sm:$0xff] }
 0x28c   : > { %7226 = vmatpush3.bf16.msra.mxu0 %v8879_v0  ;;  %v2406_v0 = vmul.f32 %v9017_v11, %v8359_v1 }
 0x28d   : > { %6548 = vmatmul.mubr.msk.f32.vlgmr.msra.gmra.mrb[6].mxu1 %vm2128_vm2, %v2404_v61  ;;  %v2104_v61 = vmul.f32 %v8995_v57, %v8218_v15 }
 0x28e   : > { %7238 = vmatpush3.bf16.msra.mxu1 %v7235_v44  ;;  %6514 = vmatmul.mubr.msk.f32.gmra.mrb[12].mxu0 %vm2128_vm2, %v2120_v52  ;;  %v2103_v44 = vmul.f32 %v9034_v13, %v8196_v4  ;;  %v2409_v52 = vmul.f32 %v9053_v31, %v8399_v36 }
 0x28f   : > { %6550 = vmatprep.mubr.msk.f32.mxu1 %vm2128_vm2, %v2405_v33  ;;  %6516 = vmatprep.mubr.msk.f32.mxu0 %vm2128_vm2, %v2121_v41  ;;  %v2410_v33 = vmul.f32 %v9057_v45, %v8419_v8  ;;  %v2553_v41 = vmul.f32 %v8995_v57, %v8435_v20 }
 0x290   : > { %7240 = vmatprep.subr.bf16.mxu1 %v7239_v59 }
 0x291   : > { %6551 = vmatmul.mubr.msk.f32.gmra.mrb[0].mxu1 %vm2128_vm2, %v2406_v0  ;;  %v2554_v0 = vmul.f32 %v8923_v54, %v10054_v50 }
 0x292   : > { %6517 = vmatmul.mubr.msk.f32.gmra.mrb[14].mxu0 %vm2128_vm2, %v2122_v28  ;;  %6553 = vmatprep.mubr.msk.f32.mxu1 %vm2128_vm2, %v2407_v3  ;;  %v10055_v3 = vld [vmem:[#allocation11_spill] sm:$0xff] }
 0x293   : > { %6527 = vmatprep.mubr.msk.f32.mxu0 %vm2128_vm2, %v2103_v44  ;;  %7242 = vmatpush3.bf16.msra.mxu1 %v7239_v59  ;;  %v5454_v59 = vld [vmem:[%s9915_s4 + $0x90] sm:$0xff]  ;;  %v2555_v44 = vmul.f32 %v8943_v18, %v10055_v3 }
 0x294   : > { %7244 = vmatprep.subr.bf16.mxu1 %v7243_v10  ;;  %v7247_v28 = vpack.c.bf16 %v5455_v25, %v5454_v59  ;;  %v10057_v59 = vld [vmem:[#allocation13_spill] sm:$0xff]  ;;  %v10058_v3 = vld [vmem:[#allocation14_spill] sm:$0xff] }
 0x295   : > { %6554 = vmatmul.mubr.msk.f32.gmra.mrb[2].mxu1 %vm2128_vm2, %v2408_v19  ;;  %v5464_v19 = vld [vmem:[%s9915_s4 + $0xa0] sm:$0xff]  ;;  %v2557_v25 = vmul.f32 %v8969_v16, %v10057_v59  ;;  %v2558_v50 = vmul.f32 %v8973_v6, %v10058_v3  ;;  %v5489_v3 = vld [vmem:[%s9915_s4 + $0xe8] sm:$0xff] }
 0x296   : > { %6528 = vmatmul.mubr.msk.f32.vlgmr.msra.gmra.mrb[8].mxu0 %vm2128_vm2, %v2104_v61  ;;  %6556 = vmatprep.mubr.msk.f32.mxu1 %vm2128_vm2, %v2409_v52  ;;  %v5465_v61 = vld [vmem:[%s9915_s4 + $0xa8] sm:$0xff]  ;;  %v10056_v52 = vld [vmem:[#allocation12_spill] sm:$0xff] }
 0x299   : > { %6557 = vmatmul.mubr.msk.f32.gmra.mrb[4].mxu1 %vm2128_vm2, %v2410_v33  ;;  %v2556_v33 = vmul.f32 %v8947_v23, %v10056_v52 }
 0x29a   : > { %6567 = vmatprep.mubr.msk.f32.mxu1 %vm2128_vm2, %v2553_v41  ;;  %v7251_v41 = vpack.c.bf16 %v5465_v61, %v5464_v19  ;;  %v5466_v61 = vld [vmem:[%s9915_s4 + $0xb0] sm:$0xff] }
 0x29d   : > { %6568 = vmatmul.mubr.msk.f32.vlgmr.msra.gmra.mrb[6].mxu1 %vm2128_vm2, %v2554_v0 }
 0x29e   : > { %7246 = vmatpush3.bf16.msra.mxu1 %v7243_v10  ;;  %6570 = vmatprep.mubr.msk.f32.mxu1 %vm2128_vm2, %v2555_v44  ;;  %v10059_v10 = vld [vmem:[#allocation15_spill] sm:$0xff]  ;;  %v10060_v44 = vld [vmem:[#allocation16_spill] sm:$0xff] }
 0x29f   : > { %7248 = vmatprep.subr.bf16.mxu1 %v7247_v28  ;;  %v2559_v0 = vmul.f32 %v9009_v58, %v10059_v10  ;;  %v2560_v19 = vmul.f32 %v9034_v13, %v10060_v44  ;;  %v10063_v44 = vld [vmem:[#allocation19_spill] sm:$0xff]  ;;  %v5488_v10 = vld [vmem:[%s9915_s4 + $0xe0] sm:$0xff] }
 0x2a1   : > { %6571 = vmatmul.mubr.msk.f32.gmra.mrb[0].mxu1 %vm2128_vm2, %v2556_v33 }
 0x2a2   : > { %6573 = vmatprep.mubr.msk.f32.mxu1 %vm2128_vm2, %v2557_v25  ;;  %7250 = vmatpush3.bf16.msra.mxu1 %v7247_v28  ;;  %v5467_v28 = vld [vmem:[%s9915_s4 + $0xb8] sm:$0xff]  ;;  %v5477_v25 = vld [vmem:[%s9915_s4 + $0xc8] sm:$0xff] }
 0x2a3   : > { %7252 = vmatprep.subr.bf16.mxu1 %v7251_v41  ;;  %v7255_v33 = vpack.c.bf16 %v5467_v28, %v5466_v61  ;;  %v5478_v61 = vld [vmem:[%s9915_s4 + $0xd0] sm:$0xff]  ;;  %v5479_v28 = vld [vmem:[%s9915_s4 + $0xd8] sm:$0xff] }
 0x2a5   : > { %6574 = vmatmul.mubr.msk.f32.gmra.mrb[2].mxu1 %vm2128_vm2, %v2558_v50  ;;  %v5476_v50 = vld [vmem:[%s9915_s4 + $0xc0] sm:$0xff] }
 0x2a6   : > { %6576 = vmatprep.mubr.msk.f32.mxu1 %vm2128_vm2, %v2559_v0  ;;  %v7259_v0 = vpack.c.bf16 %v5477_v25, %v5476_v50  ;;  %v7263_v25 = vpack.c.bf16 %v5479_v28, %v5478_v61  ;;  %v7267_v61 = vpack.c.bf16 %v5489_v3, %v5488_v10  ;;  %v10064_v28 = vld [vmem:[#allocation20_spill] sm:$0xff]  ;;  %v10067_v3 = vld [vmem:[#allocation23_spill] sm:$0xff] }
 0x2a7   : > { %v2852_v10 = vmul.f32 %v9003_v55, %v10067_v3  ;;  %v2997_v3 = vmul.f32 %v8947_v23, %v8677_v2 }
 0x2a9   : > { %6577 = vmatmul.mubr.msk.f32.gmra.mrb[4].mxu1 %vm2128_vm2, %v2560_v19 }
 0x2aa   : > { %6587 = vmatprep.mubr.msk.f32.mxu1 %vm2128_vm2, %v8907_v43 }
 0x2ad   : > { %6588 = vmatmul.mubr.msk.f32.vlgmr.msra.gmra.mrb[6].mxu1 %vm2128_vm2, %v8905_v32 }
 0x2ae   : > { %7254 = vmatpush3.bf16.msra.mxu1 %v7251_v41  ;;  %6590 = vmatprep.mubr.msk.f32.mxu1 %vm2128_vm2, %v8919_v62  ;;  %v10061_v41 = vld [vmem:[#allocation17_spill] sm:$0xff] }
 0x2af   : > { %7256 = vmatprep.subr.bf16.mxu1 %v7255_v33  ;;  %v2845_v19 = vmul.f32 %v8917_v17, %v10061_v41  ;;  %v2847_v41 = vmul.f32 %v9017_v11, %v10063_v44  ;;  %v2849_v44 = vmul.f32 %v9044_v12, %v10064_v28 }
 0x2b1   : > { %6591 = vmatmul.mubr.msk.f32.gmra.mrb[0].mxu1 %vm2128_vm2, %v8913_v47 }
 0x2b2   : > { %6593 = vmatprep.mubr.msk.f32.mxu1 %vm2128_vm2, %v8939_v46  ;;  %7258 = vmatpush3.bf16.msra.mxu1 %v7255_v33  ;;  %v10062_v33 = vld [vmem:[#allocation18_spill] sm:$0xff] }
 0x2b3   : > { %7260 = vmatprep.subr.bf16.mxu1 %v7259_v0  ;;  %v2846_v50 = vmul.f32 %v8977_v22, %v10062_v33  ;;  %v10065_v33 = vld [vmem:[#allocation21_spill] sm:$0xff] }
 0x2b4   : > { %v2850_v59 = vmul.f32 %v9053_v31, %v10065_v33 }
 0x2b5   : > { %6594 = vmatmul.mubr.msk.f32.gmra.mrb[2].mxu1 %vm2128_vm2, %v8935_v34 }
 0x2b6   : > { %6596 = vmatprep.mubr.msk.f32.mxu1 %vm2128_vm2, %v8965_v21 }
 0x2b9   : > { %6597 = vmatmul.mubr.msk.f32.gmra.mrb[4].mxu1 %vm2128_vm2, %v8960_v53 }
 0x2ba   : > { %6607 = vmatprep.mubr.msk.f32.mxu1 %vm2128_vm2, %v2845_v19  ;;  %v2848_v19 = vmul.f32 %v9026_v39, %v8605_v7 }
 0x2bd   : > { %6608 = vmatmul.mubr.msk.f32.vlgmr.msra.gmra.mrb[6].mxu1 %vm2128_vm2, %v2846_v50  ;;  %v10068_v50 = vld [vmem:[#allocation24_spill] sm:$0xff] }
 0x2be   : > { %7262 = vmatpush3.bf16.msra.mxu1 %v7259_v0  ;;  %6610 = vmatprep.mubr.msk.f32.mxu1 %vm2128_vm2, %v2847_v41  ;;  %v10066_v0 = vld [vmem:[#allocation22_spill] sm:$0xff] }
 0x2bf   : > { %7264 = vmatprep.subr.bf16.mxu1 %v7263_v25  ;;  %v2851_v41 = vmul.f32 %v9057_v45, %v10066_v0 }
 0x2c1   : > { %6611 = vmatmul.mubr.msk.f32.gmra.mrb[0].mxu1 %vm2128_vm2, %v2848_v19  ;;  %v2995_v19 = vmul.f32 %v8923_v54, %v10068_v50  ;;  %v5500_v54 = vld [vmem:[%s9915_s4 + $0x100] sm:$0xff]  ;;  %v5501_v50 = vld [vmem:[%s9915_s4 + $0x108] sm:$0xff] }
 0x2c2   : > { %6613 = vmatprep.mubr.msk.f32.mxu1 %vm2128_vm2, %v2849_v44  ;;  %7266 = vmatpush3.bf16.msra.mxu1 %v7263_v25  ;;  %v5490_v44 = vld [vmem:[%s9915_s4 + $0xf0] sm:$0xff]  ;;  %v5491_v25 = vld [vmem:[%s9915_s4 + $0xf8] sm:$0xff] }
 0x2c3   : > { %7268 = vmatprep.subr.bf16.mxu1 %v7267_v61 }
 0x2c5   : > { %6614 = vmatmul.mubr.msk.f32.gmra.mrb[2].mxu1 %vm2128_vm2, %v2850_v59  ;;  %v2996_v59 = vmul.f32 %v8943_v18, %v8675_v26 }
 0x2c6   : > { %6616 = vmatprep.mubr.msk.f32.mxu1 %vm2128_vm2, %v2851_v41  ;;  %v7271_v41 = vpack.c.bf16 %v5491_v25, %v5490_v44  ;;  %v10070_v44 = vld [vmem:[#allocation27_spill] sm:$0xff]  ;;  %v10071_v25 = vld [vmem:[#allocation28_spill] sm:$0xff] }
 0x2c7   : > { %v2999_v23 = vmul.f32 %v8973_v6, %v10070_v44  ;;  %v3000_v2 = vmul.f32 %v9009_v58, %v10071_v25  ;;  %v10074_v6 = vld [vmem:[#allocation31_spill] sm:$0xff] }
 0x2c8   : > { %v5503_v58 = vld [vmem:[%s9915_s4 + $0x118] sm:$0xff] }
 0x2c9   : > { %6617 = vmatmul.mubr.msk.f32.gmra.mrb[4].mxu1 %vm2128_vm2, %v2852_v10  ;;  %v10069_v10 = vld [vmem:[#allocation26_spill] sm:$0xff] }
 0x2ca   : > { %6627 = vmatprep.mubr.msk.f32.mxu1 %vm2128_vm2, %v2995_v19  ;;  %v2998_v18 = vmul.f32 %v8969_v16, %v10069_v10  ;;  %v7275_v19 = vpack.c.bf16 %v5501_v50, %v5500_v54  ;;  %v10073_v16 = vld [vmem:[#allocation30_spill] sm:$0xff] }
 0x2cb   : > { %v3002_v50 = vmul.f32 %v8995_v57, %v10073_v16  ;;  %v10076_v57 = vld [vmem:[#allocation33_spill] sm:$0xff] }
 0x2cd   : > { %6628 = vmatmul.mubr.msk.f32.vlgmr.msra.gmra.mrb[6].mxu1 %vm2128_vm2, %v2996_v59  ;;  %v3145_v59 = vmul.f32 %v8905_v32, %v10074_v6  ;;  %v3460_v32 = vld [vmem:[%s9917_s6] sm:$0xff] }
 0x2ce   : > { %7270 = vmatpush3.bf16.msra.mxu1 %v7267_v61  ;;  %6630 = vmatprep.mubr.msk.f32.mxu1 %vm2128_vm2, %v2997_v3  ;;  %v10072_v61 = vld [vmem:[#allocation29_spill] sm:$0xff] }
 0x2cf   : > { %7272 = vmatprep.subr.bf16.mxu1 %v7271_v41  ;;  %v3001_v3 = vmul.f32 %v9034_v13, %v10072_v61 }
 0x2d1   : > { %6631 = vmatmul.mubr.msk.f32.gmra.mrb[0].mxu1 %vm2128_vm2, %v2998_v18  ;;  %v3147_v18 = vmul.f32 %v8913_v47, %v10076_v57 }
 0x2d2   : > { %6633 = vmatprep.mubr.msk.f32.mxu1 %vm2128_vm2, %v2999_v23  ;;  %7274 = vmatpush3.bf16.msra.mxu1 %v7271_v41  ;;  %v5502_v41 = vld [vmem:[%s9915_s4 + $0x110] sm:$0xff]  ;;  %v3461_v23 = vld [vmem:[%s9917_s6 + $0x8] sm:$0xff] }
 0x2d3   : > { %7276 = vmatprep.subr.bf16.mxu1 %v7275_v19  ;;  %v7279_v54 = vpack.c.bf16 %v5503_v58, %v5502_v41  ;;  %v10079_v41 = vld [vmem:[#allocation36_spill] sm:$0xff] }
 0x2d4   : > { %v3150_v58 = vmul.f32 %v8965_v21, %v10079_v41  ;;  %v3463_v21 = vld [vmem:[%s9917_s6 + $0x18] sm:$0xff] }
 0x2d5   : > { %6634 = vmatmul.mubr.msk.f32.gmra.mrb[2].mxu1 %vm2128_vm2, %v3000_v2  ;;  %v10075_v2 = vld [vmem:[#allocation32_spill] sm:$0xff] }
 0x2d6   : > { %6636 = vmatprep.mubr.msk.f32.mxu1 %vm2128_vm2, %v3001_v3  ;;  %v3146_v13 = vmul.f32 %v8919_v62, %v10075_v2  ;;  %v10077_v3 = vld [vmem:[#allocation34_spill] sm:$0xff] }
 0x2d7   : > { %v3148_v62 = vmul.f32 %v8939_v46, %v10077_v3  ;;  %v10081_v46 = vld [vmem:[#allocation38_spill] sm:$0xff] }
 0x2d9   : > { %6637 = vmatmul.mubr.msk.f32.gmra.mrb[4].mxu1 %vm2128_vm2, %v3002_v50  ;;  %v7283_v50 = vpack.c.bf16 %v3461_v23, %v3460_v32 }
 0x2da   : > { %6647 = vmatprep.mubr.msk.f32.mxu1 %vm2128_vm2, %v3145_v59  ;;  %v10078_v59 = vld [vmem:[#allocation35_spill] sm:$0xff] }
 0x2db   : > { %v3149_v47 = vmul.f32 %v8935_v34, %v10078_v59  ;;  %v10082_v34 = vld [vmem:[#allocation39_spill] sm:$0xff] }
 0x2dc   : > { %v3295_v32 = vmul.f32 %v8977_v22, %v10082_v34  ;;  %v3464_v22 = vld [vmem:[%s9917_s6 + $0x20] sm:$0xff] }
 0x2dd   : > { %6648 = vmatmul.mubr.msk.f32.vlgmr.msra.gmra.mrb[6].mxu1 %vm2128_vm2, %v3146_v13 }
 0x2de   : > { %7278 = vmatpush3.bf16.msra.mxu1 %v7275_v19  ;;  %6650 = vmatprep.mubr.msk.f32.mxu1 %vm2128_vm2, %v3147_v18  ;;  %v10080_v19 = vld [vmem:[#allocation37_spill] sm:$0xff]  ;;  %v3152_v18 = vmul.f32 %v8907_v43, %v10081_v46 }
 0x2df   : > { %7280 = vmatprep.subr.bf16.mxu1 %v7279_v54  ;;  %v3151_v13 = vmul.f32 %v8960_v53, %v10080_v19  ;;  %v10083_v53 = vld [vmem:[#allocation40_spill] sm:$0xff]  ;;  %v10084_v43 = vld [vmem:[#allocation41_spill] sm:$0xff] }
 0x2e0   : > { %v3296_v23 = vmul.f32 %v9017_v11, %v10083_v53 }
 0x2e1   : > { %6651 = vmatmul.mubr.msk.f32.gmra.mrb[0].mxu1 %vm2128_vm2, %v3148_v62 }
 0x2e2   : > { %6653 = vmatprep.mubr.msk.f32.mxu1 %vm2128_vm2, %v3149_v47  ;;  %7282 = vmatpush3.bf16.msra.mxu1 %v7279_v54  ;;  %v3462_v54 = vld [vmem:[%s9917_s6 + $0x10] sm:$0xff]  ;;  %v3297_v47 = vmul.f32 %v9026_v39, %v10084_v43 }
 0x2e3   : > { %7284 = vmatprep.subr.bf16.mxu1 %v7283_v50  ;;  %v7287_v62 = vpack.c.bf16 %v3463_v21, %v3462_v54  ;;  %v3466_v54 = vld [vmem:[%s9917_s6 + $0x30] sm:$0xff]  ;;  %v3467_v21 = vld [vmem:[%s9917_s6 + $0x38] sm:$0xff] }
 0x2e4   : > { %v3622_v43 = vld [vmem:[%s9919_s8 + $0x10] sm:$0xff] }
 0x2e5   : > { %6654 = vmatmul.mubr.msk.f32.gmra.mrb[2].mxu1 %vm2128_vm2, %v3150_v58  ;;  %v3465_v58 = vld [vmem:[%s9917_s6 + $0x28] sm:$0xff] }
 0x2e6   : > { %6656 = vmatprep.mubr.msk.f32.mxu1 %vm2128_vm2, %v3151_v13  ;;  %v10085_v13 = vld [vmem:[#allocation42_spill] sm:$0xff] }
 0x2e7   : > { %v3298_v11 = vmul.f32 %v9044_v12, %v10085_v13 }
 0x2e9   : > { %6657 = vmatmul.mubr.msk.f32.gmra.mrb[4].mxu1 %vm2128_vm2, %v3152_v18  ;;  %v7291_v18 = vpack.c.bf16 %v3465_v58, %v3464_v22  ;;  %v3468_v22 = vld [vmem:[%s9917_s6 + $0x40] sm:$0xff]  ;;  %v3469_v58 = vld [vmem:[%s9917_s6 + $0x48] sm:$0xff] }
 0x2ea   : > { %6667 = vmatprep.mubr.msk.f32.mxu1 %vm2128_vm2, %v3295_v32  ;;  %v10086_v32 = vld [vmem:[#allocation43_spill] sm:$0xff] }
 0x2eb   : > { %v3299_v39 = vmul.f32 %v9053_v31, %v10086_v32  ;;  %v10088_v31 = vld [vmem:[#allocation45_spill] sm:$0xff] }
 0x2ed   : > { %6668 = vmatmul.mubr.msk.f32.vlgmr.msra.gmra.mrb[6].mxu1 %vm2128_vm2, %v3296_v23  ;;  %v7295_v23 = vpack.c.bf16 %v3467_v21, %v3466_v54  ;;  %v9327_v54 = vld [vmem:[%s8102_s28] sm:$0xff]  ;;  %v3473_v21 = vld [vmem:[%s9917_s6 + $0x68] sm:$0xff] }
 0x2ee   : > { %7286 = vmatpush3.bf16.msra.mxu1 %v7283_v50  ;;  %6670 = vmatprep.mubr.msk.f32.mxu1 %vm2128_vm2, %v3297_v47  ;;  %v10087_v50 = vld [vmem:[#allocation44_spill] sm:$0xff]  ;;  %v3301_v47 = vmul.f32 %v9003_v55, %v10088_v31  ;;  %v3470_v55 = vld [vmem:[%s9917_s6 + $0x50] sm:$0xff]  ;;  %10090 = vst [vmem:[#allocation12_spill] sm:$0xff] %v9327_v54 }
 0x2ef   : > { %7288 = vmatprep.subr.bf16.mxu1 %v7287_v62  ;;  %v3300_v12 = vmul.f32 %v9057_v45, %v10087_v50 }
 0x2f1   : > { %6671 = vmatmul.mubr.msk.f32.gmra.mrb[0].mxu1 %vm2128_vm2, %v3298_v11  ;;  %v7299_v11 = vpack.c.bf16 %v3469_v58, %v3468_v22  ;;  %v9343_v58 = vld [vmem:[%s8102_s28 + $0x8] sm:$0xff] }
 0x2f2   : > { %7290 = vmatpush3.bf16.msra.mxu1 %v7287_v62  ;;  %6673 = vmatprep.mubr.msk.f32.mxu1 %vm2128_vm2, %v3299_v39  ;;  %v10089_v62 = vld [vmem:[#allocation46_spill] sm:$0xff]  ;;  %v3471_v39 = vld [vmem:[%s9917_s6 + $0x58] sm:$0xff]  ;;  %10091 = vst [vmem:[#allocation20_spill] sm:$0xff] %v9343_v58 }
 0x2f3   : > { %7292 = vmatprep.subr.bf16.mxu1 %v7291_v18  ;;  %v3302_v45 = vmul.f32 %v8917_v17, %v10089_v62  ;;  %v3472_v17 = vld [vmem:[%s9917_s6 + $0x60] sm:$0xff] }
 0x2f5   : > { %6674 = vmatmul.mubr.msk.f32.gmra.mrb[2].mxu1 %vm2128_vm2, %v3300_v12  ;;  %v7307_v12 = vpack.c.bf16 %v3473_v21, %v3472_v17  ;;  %v9367_v17 = vld [vmem:[%s8102_s28 + $0x38] sm:$0xff] }
 0x2f6   : > { %7294 = vmatpush3.bf16.msra.mxu1 %v7291_v18  ;;  %6676 = vmatprep.mubr.msk.f32.mxu1 %vm2128_vm2, %v3301_v47  ;;  %v7303_v18 = vpack.c.bf16 %v3471_v39, %v3470_v55  ;;  %v3475_v47 = vld [vmem:[%s9917_s6 + $0x78] sm:$0xff]  ;;  %v9355_v55 = vld [vmem:[%s8102_s28 + $0x20] sm:$0xff]  ;;  %v9359_v39 = vld [vmem:[%s8102_s28 + $0x28] sm:$0xff]  ;;  %10097 = vst [vmem:[#allocation29_spill] sm:$0xff] %v9367_v17 }
 0x2f7   : > { %7296 = vmatprep.subr.bf16.mxu1 %v7295_v23  ;;  %10094 = vst [vmem:[#allocation26_spill] sm:$0xff] %v9355_v55  ;;  %10095 = vst [vmem:[#allocation27_spill] sm:$0xff] %v9359_v39 }
 0x2f9   : > { %6677 = vmatmul.mubr.msk.f32.gmra.mrb[4].mxu1 %vm2128_vm2, %v3302_v45  ;;  %v9347_v45 = vld [vmem:[%s8102_s28 + $0x10] sm:$0xff] }
 0x2fa   : > { %7298 = vmatpush3.bf16.msra.mxu1 %v7295_v23  ;;  %6711 = vmatprep.mubr.f32.mxu1 %v9327_v54  ;;  %v3474_v23 = vld [vmem:[%s9917_s6 + $0x70] sm:$0xff]  ;;  %10092 = vst [vmem:[#allocation21_spill] sm:$0xff] %v9347_v45 }
 0x2fb   : > { %7300 = vmatprep.subr.bf16.mxu1 %v7299_v11  ;;  %v7311_v22 = vpack.c.bf16 %v3475_v47, %v3474_v23 }
 0x2fe   : > { %7302 = vmatpush3.bf16.msra.mxu1 %v7299_v11  ;;  %v9351_v11 = vld [vmem:[%s8102_s28 + $0x18] sm:$0xff] }
 0x2ff   : > { %7304 = vmatprep.subr.bf16.mxu1 %v7303_v18  ;;  %10093 = vst [vmem:[#allocation22_spill] sm:$0xff] %v9351_v11 }
 0x302   : > { %7306 = vmatpush3.bf16.msra.mxu1 %v7303_v18  ;;  %v9363_v18 = vld [vmem:[%s8102_s28 + $0x30] sm:$0xff]  ;;  %s404_s28 = sand.u32 1, %s7721_s22  }
 0x303   : > { %7308 = vmatprep.subr.bf16.mxu1 %v7307_v12  ;;  %10096 = vst [vmem:[#allocation28_spill] sm:$0xff] %v9363_v18  ;;  %s5220_s20 = sshll.u32 %s404_s28, 6  ;;  %s9870_s25 = scalar_lea.sflag [#allocation3], %s404_s28 }
 0x304   : > { %s9842_s23 = scalar_lea.vmem [#allocation2], %s5220_s20 }
 0x305   : > { %s5154_s26 = sshll.u32 %s9842_s23, 4  ;;  %s9863_s26 = int_to_ptr.vmem [resolvable:$true] %s5154_s26 }
 0x306   : > { %7310 = vmatpush3.bf16.msra.mxu1 %v7307_v12  ;;  %s7667_s17 = scalar_lea.vmem %s9863_s26, 1024  ;;  %p7674_p0 = scmp.lt.s32.totalorder %s9863_s26, %s7672_s18 }
 0x307   : > { %7312 = vmatprep.subr.bf16.mxu1 %v7311_v22  ;;  %p7668_p11 = scmp.ne.s32.totalorder %s9863_s26, %s7667_s17  ;;  %p7675_p1 = scmp.lt.s32.totalorder %s7673_s19, %s7667_s17 }
 0x309   : > { %p7669_p12 = pnand %p7668_p11, %p7838_p5  ;;  %p7676_p2 = por %p7675_p1, %p7674_p0 }
 0x30a   : > { %7314 = vmatpush3.bf16.msra.mxu1 %v7311_v22 }
 0x30b   : > { %p7670_p13 = pneg %p7669_p12 }
 0x30d   : > { %6712 = vmatmul.mubr.f32.vlgmr.msra.gmra.mrb[8].mxu1 %v9343_v58  ;;  %v3620_v58 = vld [vmem:[%s9919_s8] sm:$0xff]  ;;  %p7677_p3 = pnand %p7676_p2, %p7670_p13 }
 0x30e   : > { %6714 = vmatprep.mubr.f32.mxu1 %v9347_v45 }
 0x311   : > { %6715 = vmatmul.mubr.f32.gmra.mrb[10].mxu1 %v9351_v11 }
 0x312   : > { %6717 = vmatprep.mubr.f32.mxu1 %v9355_v55 }
 0x315   : > { %6718 = vmatmul.mubr.f32.gmra.mrb[12].mxu1 %v9359_v39 }
 0x316   : > { %6720 = vmatprep.mubr.f32.mxu1 %v9363_v18  ;;  %v5514_v18 = vld [vmem:[%s9919_s8 + $0x20] sm:$0xff] }
 0x319   : > { %6721 = vmatmul.mubr.f32.gmra.mrb[14].mxu1 %v9367_v17  ;;  %v5515_v17 = vld [vmem:[%s9919_s8 + $0x28] sm:$0xff] }
 0x31a   : > { %v7315_v45 = vpack.c.bf16 %v5515_v17, %v5514_v18  ;;  %v3621_v18 = vld [vmem:[%s9919_s8 + $0x8] sm:$0xff] }
 0x31c   : > { %7316 = vmatprep.subr.bf16.mxu1 %v7315_v45 }
 0x31d   : > { %7318 = vmatpush3.bf16.msra.mxu1 %v7315_v45  ;;  %v7323_v45 = vpack.c.bf16 %v3621_v18, %v3620_v58 }
 0x35d   : > { %v9370_v21 = vpop.f32.mrb[10].mxu0 }
 0x35e   : > { %10098 = vst [vmem:[#allocation30_spill] sm:$0xff] %v9370_v21  ;;  %v9372_v12 = vpop.f32.mrb[11].mxu0 }
 0x35f   : > { %10099 = vst [vmem:[#allocation31_spill] sm:$0xff] %v9372_v12 }
 0x361   : > { %v9374_v23 = vpop.f32.mrb[12].mxu0 }
 0x362   : > { %10100 = vst [vmem:[#allocation32_spill] sm:$0xff] %v9374_v23  ;;  %v9376_v47 = vpop.f32.mrb[13].mxu0 }
 0x363   : > { %10101 = vst [vmem:[#allocation33_spill] sm:$0xff] %v9376_v47 }
 0x365   : > { %v9378_v22 = vpop.f32.mrb[14].mxu0 }
 0x366   : > { %10102 = vst [vmem:[#allocation34_spill] sm:$0xff] %v9378_v22  ;;  %v9380_v55 = vpop.f32.mrb[15].mxu0  ;;  %v5516_v22 = vld [vmem:[%s9919_s8 + $0x30] sm:$0xff] }
 0x367   : > { %10103 = vst [vmem:[#allocation35_spill] sm:$0xff] %v9380_v55  ;;  %v5517_v55 = vld [vmem:[%s9919_s8 + $0x38] sm:$0xff] }
 0x368   : > { %v7319_v54 = vpack.c.bf16 %v5517_v55, %v5516_v22  ;;  %v5513_v55 = vld [vmem:[%s9918_s7] ss:$0 sm:$0xff] }
 0x369   : > { %v9388_v39 = vpop.f32.mrb[8].mxu0 }
 0x36a   : > { %10104 = vst [vmem:[#allocation36_spill] sm:$0xff] %v9388_v39  ;;  %v9390_v11 = vpop.f32.mrb[9].mxu0  ;;  %7320 = vmatprep.subr.bf16.mxu1 %v7319_v54 }
 0x36b   : > { %10105 = vst [vmem:[#allocation37_spill] sm:$0xff] %v9390_v11  ;;  %7322 = vmatpush3.bf16.msra.mxu1 %v7319_v54 }
 0x36c   : > { %7324 = vmatprep.subr.bf16.mxu1 %v7323_v45 }
 0x3e0   : > { %v6713_v17 = vpop.f32.mrb[8].mxu1 }
 0x3e1   : > { %v3549_v47 = vpop.f32.mrb[9].mxu1  ;;  %v3555_v39 = vadd.f32 %v6713_v17, %v5513_v55 }
 0x3e2   : > { %v3550_v12 = vadd.f32 %v5513_v55, %v3549_v47  ;;  %v3623_v47 = vld [vmem:[%s9919_s8 + $0x18] sm:$0xff] }
 0x3e3   : > { %v9409_v58 = vmax.f32 %v3555_v39, 0.0 }
 0x3e4   : > { %v6716_v23 = vpop.f32.mrb[10].mxu1  ;;  %v9407_v50 = vmax.f32 %v3550_v12, 0.0 }
 0x3e5   : > { %v3559_v11 = vpop.f32.mrb[11].mxu1  ;;  %v3565_v18 = vadd.f32 %v6716_v23, %v5513_v55  ;;  %v3626_v34 = vmul.f32 %v9409_v58, %v8107_v29 }
 0x3e6   : > { %v3560_v32 = vadd.f32 %v5513_v55, %v3559_v11  ;;  %v3625_v11 = vmul.f32 %v9407_v50, %v8132_v40 }
 0x3e7   : > { %v9425_v23 = vmax.f32 %v3565_v18, 0.0 }
 0x3e8   : > { %v6719_v22 = vpop.f32.mrb[12].mxu1  ;;  %v9423_v39 = vmax.f32 %v3560_v32, 0.0 }
 0x3e9   : > { %v3569_v54 = vpop.f32.mrb[13].mxu1  ;;  %v3575_v53 = vadd.f32 %v6719_v22, %v5513_v55  ;;  %v3628_v22 = vmul.f32 %v9425_v23, %v8158_v51  ;;  %v3596_v51 = vrot.slane %v9407_v50, 7 }
 0x3ea   : > { %v3570_v12 = vadd.f32 %v5513_v55, %v3569_v54  ;;  %v3627_v29 = vmul.f32 %v9423_v39, %v8127_v38 }
 0x3ec   : > { %v6722_v21 = vpop.f32.mrb[14].mxu1 }
 0x3ed   : > { %v3585_v62 = vadd.f32 %v6722_v21, %v5513_v55  ;;  %v3579_v31 = vpop.f32.mrb[15].mxu1 }
 0x3ee   : > { %v3580_v17 = vadd.f32 %v5513_v55, %v3579_v31  ;;  %v5534_v31 = vld [vmem:[%s9919_s8 + $0x40] sm:$0xff]  ;;  %v9444_v55 = vmax.f32 %v3575_v53, 0.0  ;;  %v3597_v53 = vrot.slane %v9409_v58, 7 }
 0x3ef   : > { %v9411_v13 = vmax.f32 %v3585_v62, 0.0  ;;  %v7327_v62 = vpack.c.bf16 %v3623_v47, %v3622_v43  ;;  %v9440_v43 = vmax.f32 %v3570_v12, 0.0  ;;  %v3599_v12 = vrot.slane %v9425_v23, 7 }
 0x3f0   : > { %v9436_v40 = vmax.f32 %v3580_v17, 0.0  ;;  %v3630_v38 = vmul.f32 %v9444_v55, %v8176_v60 }
 0x3f1   : > { %v3624_v21 = vmul.f32 %v9411_v13, %v8109_v30  ;;  %v5535_v30 = vld [vmem:[%s9919_s8 + $0x48] sm:$0xff]  ;;  %v3603_v54 = vrot.slane %v9411_v13, 7 }
 0x3f2   : > { %v7331_v32 = vpack.c.bf16 %v5535_v30, %v5534_v31  ;;  %v3602_v18 = vrot.slane %v9436_v40, 7  ;;  %v3631_v47 = vmul.f32 %v9436_v40, %v8180_v63  ;;  %v9483_v63 = vsel %vm430_vm0, %v3596_v51, %v3597_v53  ;;  %v10106_v30 = vld [vmem:[#allocation8_spill] sm:$0xff] }
 0x3f3   : > { %6731 = vmatprep.mubr.msk.f32.mxu1 %vm2128_vm2, %v3624_v21  ;;  %v9469_v60 = vsel %vm430_vm0, %v3603_v54, %v3596_v51  ;;  %v5536_v21 = vld [vmem:[%s9919_s8 + $0x50] sm:$0xff]  ;;  %v3600_v31 = vrot.slane %v9440_v43, 7 }
 0x3f4   : > { %6732 = vmatmul.mubr.msk.f32.vlgmr.msra.gmra.mrb[16].mxu1 %vm2128_vm2, %v3625_v11  ;;  %v5537_v11 = vld [vmem:[%s9919_s8 + $0x58] sm:$0xff] }
 0x3f5   : > { %7326 = vmatpush3.bf16.msra.mxu1 %v7323_v45  ;;  %6734 = vmatprep.mubr.msk.f32.mxu1 %vm2128_vm2, %v3626_v34  ;;  %v3629_v34 = vmul.f32 %v9440_v43, %v8153_v49  ;;  %v9461_v45 = vsel %vm430_vm0, %v3602_v18, %v3603_v54  ;;  %v3598_v49 = vrot.slane %v9423_v39, 7  ;;  %v5546_v54 = vld [vmem:[%s9919_s8 + $0x60] sm:$0xff] }
 0x3f6   : > { %7328 = vmatprep.subr.bf16.mxu1 %v7327_v62  ;;  %v3612_v17 = vmul.f32 %v9461_v45, %v8196_v4  ;;  %v3613_v4 = vmul.f32 %v9469_v60, %v8218_v15  ;;  %v3601_v15 = vrot.slane %v9444_v55, 7 }
 0x3f8   : > { %6735 = vmatmul.mubr.msk.f32.gmra.mrb[18].mxu1 %vm2128_vm2, %v3627_v29  ;;  %v3614_v29 = vmul.f32 %v9483_v63, %v10106_v30 }
 0x3f9   : > { %6737 = vmatprep.mubr.msk.f32.mxu1 %vm2128_vm2, %v3628_v22  ;;  %7330 = vmatpush3.bf16.msra.mxu1 %v7327_v62  ;;  %v7335_v62 = vpack.c.bf16 %v5537_v11, %v5536_v21  ;;  %v9493_v22 = vsel %vm430_vm0, %v3597_v53, %v3598_v49  ;;  %v3902_v21 = vrot.slane %v9411_v13, 1  ;;  %v10107_v11 = vld [vmem:[#allocation9_spill] sm:$0xff] }
 0x3fa   : > { %7332 = vmatprep.subr.bf16.mxu1 %v7331_v32  ;;  %v3615_v53 = vmul.f32 %v9493_v22, %v8234_v24  ;;  %v3895_v24 = vrot.slane %v9407_v50, 1 }
 0x3fc   : > { %6738 = vmatmul.mubr.msk.f32.gmra.mrb[20].mxu1 %vm2128_vm2, %v3629_v34  ;;  %v5547_v34 = vld [vmem:[%s9919_s8 + $0x68] sm:$0xff] }
 0x3fd   : > { %6740 = vmatprep.mubr.msk.f32.mxu1 %vm2128_vm2, %v3630_v38  ;;  %v9505_v38 = vsel %vm430_vm0, %v3598_v49, %v3599_v12  ;;  %v7339_v51 = vpack.c.bf16 %v5547_v34, %v5546_v54  ;;  %v3896_v49 = vrot.slane %v9409_v58, 1  ;;  %v5548_v54 = vld [vmem:[%s9919_s8 + $0x70] sm:$0xff]  ;;  %v5549_v34 = vld [vmem:[%s9919_s8 + $0x78] sm:$0xff] }
 0x3ff   : > { %v9544_v30 = vsel %vm803_vm1, %v3895_v24, %v3896_v49 }
 0x400   : > { %6741 = vmatmul.mubr.msk.f32.gmra.mrb[22].mxu1 %vm2128_vm2, %v3631_v47  ;;  %v3616_v47 = vmul.f32 %v9505_v38, %v8248_v35 }
 0x401   : > { %6751 = vmatprep.mubr.msk.f32.mxu1 %vm2128_vm2, %v3612_v17  ;;  %v9514_v17 = vsel %vm430_vm0, %v3599_v12, %v3600_v31 }
 0x402   : > { %v3617_v35 = vmul.f32 %v9514_v17, %v8270_v56 }
 0x404   : > { %6752 = vmatmul.mubr.msk.f32.vlgmr.msra.gmra.mrb[16].mxu1 %vm2128_vm2, %v3613_v4  ;;  %v9531_v4 = vsel %vm430_vm0, %v3601_v15, %v3602_v18  ;;  %v3898_v18 = vrot.slane %v9425_v23, 1 }
 0x405   : > { %7334 = vmatpush3.bf16.msra.mxu1 %v7331_v32  ;;  %6754 = vmatprep.mubr.msk.f32.mxu1 %vm2128_vm2, %v3614_v29  ;;  %v9520_v32 = vsel %vm430_vm0, %v3600_v31, %v3601_v15  ;;  %v3897_v31 = vrot.slane %v9423_v39, 1  ;;  %v3619_v56 = vmul.f32 %v9531_v4, %v8297_v9  ;;  %v3899_v15 = vrot.slane %v9440_v43, 1 }
 0x406   : > { %7336 = vmatprep.subr.bf16.mxu1 %v7335_v62  ;;  %v3618_v12 = vmul.f32 %v9520_v32, %v10107_v11  ;;  %v5559_v11 = vld [vmem:[%s9919_s8 + $0x88] sm:$0xff] }
 0x407   : > { %v9559_v9 = vsel %vm803_vm1, %v3896_v49, %v3897_v31  ;;  %v5558_v49 = vld [vmem:[%s9919_s8 + $0x80] sm:$0xff] }
 0x408   : > { %6755 = vmatmul.mubr.msk.f32.gmra.mrb[18].mxu1 %vm2128_vm2, %v3615_v53  ;;  %v7343_v53 = vpack.c.bf16 %v5549_v34, %v5548_v54  ;;  %v4061_v34 = vmul.f32 %v9469_v60, %v8435_v20  ;;  %v5570_v20 = vld [vmem:[%s9919_s8 + $0xa0] sm:$0xff] }
 0x409   : > { %6757 = vmatprep.mubr.msk.f32.mxu1 %vm2128_vm2, %v3616_v47  ;;  %7338 = vmatpush3.bf16.msra.mxu1 %v7335_v62  ;;  %v9537_v62 = vsel %vm803_vm1, %v3902_v21, %v3895_v24  ;;  %v3900_v47 = vrot.slane %v9444_v55, 1  ;;  %v3913_v24 = vmul.f32 %v9559_v9, %v8345_v42 }
 0x40a   : > { %7340 = vmatprep.subr.bf16.mxu1 %v7339_v51  ;;  %v3911_v29 = vmul.f32 %v9537_v62, %v8313_v14  ;;  %v3912_v14 = vmul.f32 %v9544_v30, %v8343_v37  ;;  %v3901_v37 = vrot.slane %v9436_v40, 1 }
 0x40c   : > { %6758 = vmatmul.mubr.msk.f32.gmra.mrb[20].mxu1 %vm2128_vm2, %v3617_v35  ;;  %v9569_v35 = vsel %vm803_vm1, %v3897_v31, %v3898_v18  ;;  %v7347_v31 = vpack.c.bf16 %v5559_v11, %v5558_v49  ;;  %v10110_v49 = vld [vmem:[#allocation13_spill] sm:$0xff] }
 0x40d   : > { %6760 = vmatprep.mubr.msk.f32.mxu1 %vm2128_vm2, %v3618_v12  ;;  %v9581_v12 = vsel %vm803_vm1, %v3898_v18, %v3899_v15  ;;  %v3914_v42 = vmul.f32 %v9569_v35, %v8359_v1  ;;  %v9595_v18 = vsel %vm803_vm1, %v3900_v47, %v3901_v37  ;;  %v4065_v11 = vmul.f32 %v9514_v17, %v10110_v49 }
 0x410   : > { %6761 = vmatmul.mubr.msk.f32.gmra.mrb[22].mxu1 %vm2128_vm2, %v3619_v56  ;;  %v3915_v56 = vmul.f32 %v9581_v12, %v8373_v5  ;;  %v3917_v5 = vmul.f32 %v9595_v18, %v8399_v36  ;;  %v10108_v36 = vld [vmem:[#allocation10_spill] sm:$0xff] }
 0x411   : > { %6771 = vmatprep.mubr.msk.f32.mxu1 %vm2128_vm2, %v3911_v29  ;;  %v9590_v29 = vsel %vm803_vm1, %v3899_v15, %v3900_v47  ;;  %v4064_v47 = vmul.f32 %v9505_v38, %v10056_v52  ;;  %v10113_v52 = vld [vmem:[#allocation16_spill] sm:$0xff] }
 0x412   : > { %v3916_v1 = vmul.f32 %v9590_v29, %v8395_v27  ;;  %v5560_v27 = vld [vmem:[%s9919_s8 + $0x90] sm:$0xff] }
 0x413   : > { %v7351_v15 = vpack.c.bf16 %v5561_v48, %v5560_v27  ;;  %v5582_v27 = vld [vmem:[%s9919_s8 + $0xc0] sm:$0xff]  ;;  %v5583_v48 = vld [vmem:[%s9919_s8 + $0xc8] sm:$0xff] }
 0x414   : > { %6772 = vmatmul.mubr.msk.f32.vlgmr.msra.gmra.mrb[16].mxu1 %vm2128_vm2, %v3912_v14 }
 0x415   : > { %7342 = vmatpush3.bf16.msra.mxu1 %v7339_v51  ;;  %6774 = vmatprep.mubr.msk.f32.mxu1 %vm2128_vm2, %v3913_v24  ;;  %v9604_v51 = vsel %vm803_vm1, %v3901_v37, %v3902_v21  ;;  %v4062_v21 = vmul.f32 %v9483_v63, %v10108_v36  ;;  %v10111_v37 = vld [vmem:[#allocation14_spill] sm:$0xff]  ;;  %v7363_v36 = vpack.c.bf16 %v5583_v48, %v5582_v27  ;;  %v10119_v48 = vld [vmem:[#allocation25_spill] sm:$0xff] }
 0x416   : > { %7344 = vmatprep.subr.bf16.mxu1 %v7343_v53  ;;  %v3918_v54 = vmul.f32 %v9604_v51, %v8419_v8  ;;  %v10109_v8 = vld [vmem:[#allocation11_spill] sm:$0xff] }
 0x417   : > { %v4063_v14 = vmul.f32 %v9493_v22, %v10109_v8  ;;  %v5584_v8 = vld [vmem:[%s9919_s8 + $0xd0] sm:$0xff] }
 0x418   : > { %6775 = vmatmul.mubr.msk.f32.gmra.mrb[18].mxu1 %vm2128_vm2, %v3914_v42  ;;  %v4066_v42 = vmul.f32 %v9520_v32, %v10111_v37  ;;  %v5595_v37 = vld [vmem:[%s9919_s8 + $0xe8] sm:$0xff] }
 0x419   : > { %6777 = vmatprep.mubr.msk.f32.mxu1 %vm2128_vm2, %v3915_v56  ;;  %7346 = vmatpush3.bf16.msra.mxu1 %v7343_v53  ;;  %v5571_v53 = vld [vmem:[%s9919_s8 + $0xa8] sm:$0xff] }
 0x41a   : > { %7348 = vmatprep.subr.bf16.mxu1 %v7347_v31  ;;  %v7355_v24 = vpack.c.bf16 %v5571_v53, %v5570_v20  ;;  %v10115_v20 = vld [vmem:[#allocation18_spill] sm:$0xff] }
 0x41b   : > { %v4354_v53 = vmul.f32 %v9559_v9, %v10115_v20  ;;  %v10126_v20 = vld [vmem:[#allocation45_spill] sm:$0xff] }
 0x41c   : > { %6778 = vmatmul.mubr.msk.f32.gmra.mrb[20].mxu1 %vm2128_vm2, %v3916_v1  ;;  %v4068_v1 = vmul.f32 %v9461_v45, %v10113_v52  ;;  %v4358_v52 = vmul.f32 %v9595_v18, %v10065_v33  ;;  %v5597_v33 = vld [vmem:[%s9919_s8 + $0xf8] sm:$0xff] }
 0x41d   : > { %6780 = vmatprep.mubr.msk.f32.mxu1 %vm2128_vm2, %v3917_v5  ;;  %v5572_v5 = vld [vmem:[%s9919_s8 + $0xb0] sm:$0xff] }
 0x420   : > { %6781 = vmatmul.mubr.msk.f32.gmra.mrb[22].mxu1 %vm2128_vm2, %v3918_v54  ;;  %v5573_v54 = vld [vmem:[%s9919_s8 + $0xb8] sm:$0xff] }
 0x421   : > { %6791 = vmatprep.mubr.msk.f32.mxu1 %vm2128_vm2, %v4061_v34  ;;  %v7359_v34 = vpack.c.bf16 %v5573_v54, %v5572_v5 }
 0x424   : > { %6792 = vmatmul.mubr.msk.f32.vlgmr.msra.gmra.mrb[16].mxu1 %vm2128_vm2, %v4062_v21  ;;  %v10114_v21 = vld [vmem:[#allocation17_spill] sm:$0xff] }
 0x425   : > { %7350 = vmatpush3.bf16.msra.mxu1 %v7347_v31  ;;  %6794 = vmatprep.mubr.msk.f32.mxu1 %vm2128_vm2, %v4063_v14  ;;  %v10112_v31 = vld [vmem:[#allocation15_spill] sm:$0xff] }
 0x426   : > { %7352 = vmatprep.subr.bf16.mxu1 %v7351_v15  ;;  %v4067_v56 = vmul.f32 %v9531_v4, %v10112_v31  ;;  %v5585_v14 = vld [vmem:[%s9919_s8 + $0xd8] sm:$0xff] }
 0x428   : > { %6795 = vmatmul.mubr.msk.f32.gmra.mrb[18].mxu1 %vm2128_vm2, %v4064_v47  ;;  %v7367_v47 = vpack.c.bf16 %v5585_v14, %v5584_v8  ;;  %v4509_v8 = vmul.f32 %v9461_v45, %v10072_v61  ;;  %v4654_v61 = vmul.f32 %v9423_v39, %v10075_v2  ;;  %v4656_v2 = vmul.f32 %v9440_v43, %v10077_v3 }
 0x429   : > { %6797 = vmatprep.mubr.msk.f32.mxu1 %vm2128_vm2, %v4065_v11  ;;  %7354 = vmatpush3.bf16.msra.mxu1 %v7351_v15  ;;  %v4353_v15 = vmul.f32 %v9544_v30, %v10114_v21  ;;  %v5594_v11 = vld [vmem:[%s9919_s8 + $0xe0] sm:$0xff]  ;;  %v5607_v21 = vld [vmem:[%s9919_s8 + $0x108] sm:$0xff]  ;;  %v4660_v3 = vmul.f32 %v9407_v50, %v10081_v46 }
 0x42a   : > { %7356 = vmatprep.subr.bf16.mxu1 %v7355_v24  ;;  %v7371_v31 = vpack.c.bf16 %v5595_v37, %v5594_v11  ;;  %v10122_v46 = vld [vmem:[#allocation41_spill] sm:$0xff] }
 0x42c   : > { %6798 = vmatmul.mubr.msk.f32.gmra.mrb[20].mxu1 %vm2128_vm2, %v4066_v42  ;;  %v4356_v42 = vmul.f32 %v9581_v12, %v8605_v7  ;;  %v10117_v7 = vld [vmem:[#allocation23_spill] sm:$0xff] }
 0x42d   : > { %6800 = vmatprep.mubr.msk.f32.mxu1 %vm2128_vm2, %v4067_v56  ;;  %v4357_v56 = vmul.f32 %v9590_v29, %v10064_v28  ;;  %v4360_v5 = vmul.f32 %v9537_v62, %v10117_v7  ;;  %v10118_v28 = vld [vmem:[#allocation24_spill] sm:$0xff] }
 0x42e   : > { %v4503_v54 = vmul.f32 %v9483_v63, %v10118_v28  ;;  %v5606_v63 = vld [vmem:[%s9919_s8 + $0x100] sm:$0xff] }
 0x430   : > { %6801 = vmatmul.mubr.msk.f32.gmra.mrb[22].mxu1 %vm2128_vm2, %v4068_v1  ;;  %v4359_v1 = vmul.f32 %v9604_v51, %v10066_v0  ;;  %v4504_v0 = vmul.f32 %v9493_v22, %v8675_v26  ;;  %v4506_v26 = vmul.f32 %v9514_v17, %v10069_v10  ;;  %v7379_v22 = vpack.c.bf16 %v5607_v21, %v5606_v63  ;;  %v5608_v17 = vld [vmem:[%s9919_s8 + $0x110] sm:$0xff] }
 0x431   : > { %6811 = vmatprep.mubr.msk.f32.mxu1 %vm2128_vm2, %v9407_v50  ;;  %v4510_v10 = vmul.f32 %v9469_v60, %v10073_v16  ;;  %v4655_v16 = vmul.f32 %v9425_v23, %v10076_v57  ;;  %v4657_v57 = vmul.f32 %v9444_v55, %v10078_v59  ;;  %v4659_v60 = vmul.f32 %v9411_v13, %v10080_v19  ;;  %v10120_v59 = vld [vmem:[#allocation39_spill] sm:$0xff]  ;;  %v10121_v19 = vld [vmem:[#allocation40_spill] sm:$0xff] }
 0x432   : > { %v4805_v50 = vmul.f32 %v9581_v12, %v10122_v46  ;;  %v10135_v46 = vld [vmem:[#allocation12_spill] sm:$0xff] }
 0x434   : > { %6812 = vmatmul.mubr.msk.f32.vlgmr.msra.gmra.mrb[16].mxu1 %vm2128_vm2, %v9409_v58 }
 0x435   : > { %7358 = vmatpush3.bf16.msra.mxu1 %v7355_v24  ;;  %6814 = vmatprep.mubr.msk.f32.mxu1 %vm2128_vm2, %v9423_v39  ;;  %v10116_v24 = vld [vmem:[#allocation19_spill] sm:$0xff] }
 0x436   : > { %7360 = vmatprep.subr.bf16.mxu1 %v7359_v34  ;;  %v4355_v49 = vmul.f32 %v9569_v35, %v10116_v24 }
 0x438   : > { %6815 = vmatmul.mubr.msk.f32.gmra.mrb[18].mxu1 %vm2128_vm2, %v9425_v23  ;;  %v4658_v23 = vmul.f32 %v9436_v40, %v10079_v41  ;;  %v4979_v41 = vld [vmem:[%s9921_s10 + $0x18] sm:$0xff] }
 0x439   : > { %6817 = vmatprep.mubr.msk.f32.mxu1 %vm2128_vm2, %v9440_v43  ;;  %7362 = vmatpush3.bf16.msra.mxu1 %v7359_v34  ;;  %v5596_v34 = vld [vmem:[%s9919_s8 + $0xf0] sm:$0xff]  ;;  %v4803_v43 = vmul.f32 %v9559_v9, %v10120_v59  ;;  %v10124_v9 = vld [vmem:[#allocation43_spill] sm:$0xff] }
 0x43a   : > { %7364 = vmatprep.subr.bf16.mxu1 %v7363_v36  ;;  %v7375_v27 = vpack.c.bf16 %v5597_v33, %v5596_v34  ;;  %v4807_v14 = vmul.f32 %v9595_v18, %v10124_v9  ;;  %v5618_v18 = vld [vmem:[%s9920_s9] ss:$0 sm:$0xff] }
 0x43c   : > { %6818 = vmatmul.mubr.msk.f32.gmra.mrb[20].mxu1 %vm2128_vm2, %v9444_v55  ;;  %v4978_v55 = vld [vmem:[%s9921_s10 + $0x10] sm:$0xff] }
 0x43d   : > { %6820 = vmatprep.mubr.msk.f32.mxu1 %vm2128_vm2, %v9436_v40  ;;  %v7391_v40 = vpack.c.bf16 %v4979_v41, %v4978_v55  ;;  %v10134_v41 = vld [vmem:[#allocation20_spill] sm:$0xff] }
 0x440   : > { %6821 = vmatmul.mubr.msk.f32.gmra.mrb[22].mxu1 %vm2128_vm2, %v9411_v13  ;;  %v4804_v13 = vmul.f32 %v9569_v35, %v10121_v19  ;;  %v10125_v35 = vld [vmem:[#allocation44_spill] sm:$0xff] }
 0x441   : > { %6831 = vmatprep.mubr.msk.f32.mxu1 %vm2128_vm2, %v4353_v15  ;;  %v4508_v15 = vmul.f32 %v9531_v4, %v10071_v25  ;;  %v5609_v25 = vld [vmem:[%s9919_s8 + $0x118] sm:$0xff]  ;;  %v4808_v12 = vmul.f32 %v9604_v51, %v10125_v35 }
 0x442   : > { %v7383_v45 = vpack.c.bf16 %v5609_v25, %v5608_v17  ;;  %v10131_v17 = vld [vmem:[#allocation37_spill] sm:$0xff] }
 0x444   : > { %6832 = vmatmul.mubr.msk.f32.vlgmr.msra.gmra.mrb[16].mxu1 %vm2128_vm2, %v4354_v53  ;;  %v4809_v53 = vmul.f32 %v9537_v62, %v10126_v20  ;;  %v10138_v20 = vld [vmem:[#allocation35_spill] sm:$0xff] }
 0x445   : > { %7366 = vmatpush3.bf16.msra.mxu1 %v7363_v36  ;;  %6834 = vmatprep.mubr.msk.f32.mxu1 %vm2128_vm2, %v4355_v49  ;;  %v4505_v36 = vmul.f32 %v9505_v38, %v10119_v48  ;;  %v4507_v38 = vmul.f32 %v9520_v32, %v10070_v44  ;;  %v4653_v44 = vmul.f32 %v9409_v58, %v10074_v6  ;;  %v4976_v6 = vld [vmem:[%s9921_s10] sm:$0xff]  ;;  %v4977_v58 = vld [vmem:[%s9921_s10 + $0x8] sm:$0xff]  ;;  %v10123_v32 = vld [vmem:[#allocation42_spill] sm:$0xff] }
 0x446   : > { %7368 = vmatprep.subr.bf16.mxu1 %v7367_v47  ;;  %v7387_v39 = vpack.c.bf16 %v4977_v58, %v4976_v6  ;;  %v4806_v4 = vmul.f32 %v9590_v29, %v10123_v32  ;;  %v10127_v29 = vld [vmem:[#allocation46_spill] sm:$0xff] }
 0x448   : > { %6835 = vmatmul.mubr.msk.f32.gmra.mrb[18].mxu1 %vm2128_vm2, %v4356_v42 }
 0x449   : > { %6837 = vmatprep.mubr.msk.f32.mxu1 %vm2128_vm2, %v4357_v56  ;;  %7370 = vmatpush3.bf16.msra.mxu1 %v7367_v47  ;;  %v4810_v47 = vmul.f32 %v9544_v30, %v10127_v29  ;;  %v10139_v29 = vld [vmem:[#allocation21_spill] sm:$0xff] }
 0x44a   : > { %7372 = vmatprep.subr.bf16.mxu1 %v7371_v31 }
 0x44c   : > { %6838 = vmatmul.mubr.msk.f32.gmra.mrb[20].mxu1 %vm2128_vm2, %v4358_v52 }
 0x44d   : > { %6840 = vmatprep.mubr.msk.f32.mxu1 %vm2128_vm2, %v4359_v1 }
 0x450   : > { %6841 = vmatmul.mubr.msk.f32.gmra.mrb[22].mxu1 %vm2128_vm2, %v4360_v5 }
 0x451   : > { %6851 = vmatprep.mubr.msk.f32.mxu1 %vm2128_vm2, %v4503_v54 }
 0x454   : > { %6852 = vmatmul.mubr.msk.f32.vlgmr.msra.gmra.mrb[16].mxu1 %vm2128_vm2, %v4504_v0 }
 0x455   : > { %7374 = vmatpush3.bf16.msra.mxu1 %v7371_v31  ;;  %6854 = vmatprep.mubr.msk.f32.mxu1 %vm2128_vm2, %v4505_v36 }
 0x456   : > { %7376 = vmatprep.subr.bf16.mxu1 %v7375_v27 }
 0x458   : > { %6855 = vmatmul.mubr.msk.f32.gmra.mrb[18].mxu1 %vm2128_vm2, %v4506_v26  ;;  %v5512_v26 = vld [vmem:[%s9916_s5] ss:$0 sm:$0xff] }
 0x459   : > { %6857 = vmatprep.mubr.msk.f32.mxu1 %vm2128_vm2, %v4507_v38  ;;  %7378 = vmatpush3.bf16.msra.mxu1 %v7375_v27  ;;  %v7402_v25 = vadd.f32 %v5512_v26, %v10131_v17 }
 0x45a   : > { %7380 = vmatprep.subr.bf16.mxu1 %v7379_v22 }
 0x45c   : > { %6858 = vmatmul.mubr.msk.f32.gmra.mrb[20].mxu1 %vm2128_vm2, %v4508_v15  ;;  %v10129_v15 = vld [vmem:[#allocation36_spill] sm:$0xff] }
 0x45d   : > { %6860 = vmatprep.mubr.msk.f32.mxu1 %vm2128_vm2, %v4509_v8  ;;  %v7399_v8 = vadd.f32 %v10129_v15, %v5512_v26 }
 0x460   : > { %6861 = vmatmul.mubr.msk.f32.gmra.mrb[22].mxu1 %vm2128_vm2, %v4510_v10  ;;  %v10130_v10 = vld [vmem:[#allocation31_spill] sm:$0xff] }
 0x461   : > { %6871 = vmatprep.mubr.msk.f32.mxu1 %vm2128_vm2, %v4653_v44  ;;  %v7408_v44 = vadd.f32 %v5512_v26, %v10130_v10 }
 0x464   : > { %6872 = vmatmul.mubr.msk.f32.vlgmr.msra.gmra.mrb[16].mxu1 %vm2128_vm2, %v4654_v61 }
 0x465   : > { %7382 = vmatpush3.bf16.msra.mxu1 %v7379_v22  ;;  %6874 = vmatprep.mubr.msk.f32.mxu1 %vm2128_vm2, %v4655_v16  ;;  %v10128_v22 = vld [vmem:[#allocation30_spill] sm:$0xff] }
 0x466   : > { %7384 = vmatprep.subr.bf16.mxu1 %v7383_v45  ;;  %v7405_v38 = vadd.f32 %v10128_v22, %v5512_v26 }
 0x468   : > { %6875 = vmatmul.mubr.msk.f32.gmra.mrb[18].mxu1 %vm2128_vm2, %v4656_v2  ;;  %v10132_v2 = vld [vmem:[#allocation32_spill] sm:$0xff] }
 0x469   : > { %6877 = vmatprep.mubr.msk.f32.mxu1 %vm2128_vm2, %v4657_v57  ;;  %7386 = vmatpush3.bf16.msra.mxu1 %v7383_v45  ;;  %v5619_v45 = vld [vmem:[%s9922_s11] ss:$0 sm:$0xff] }
 0x46a   : > { %7388 = vmatprep.subr.bf16.mxu1 %v7387_v39  ;;  %v7409_v55 = vadd.f32 %v7408_v44, %v5619_v45 }
 0x46c   : > { %6878 = vmatmul.mubr.msk.f32.gmra.mrb[20].mxu1 %vm2128_vm2, %v4658_v23  ;;  %v7406_v23 = vadd.f32 %v7405_v38, %v5619_v45 }
 0x46d   : > { %6880 = vmatprep.mubr.msk.f32.mxu1 %vm2128_vm2, %v4659_v60  ;;  %v10133_v60 = vld [vmem:[#allocation33_spill] sm:$0xff] }
 0x470   : > { %6881 = vmatmul.mubr.msk.f32.gmra.mrb[22].mxu1 %vm2128_vm2, %v4660_v3  ;;  %v7414_v3 = vadd.f32 %v5512_v26, %v10133_v60 }
 0x471   : > { %6891 = vmatprep.mubr.msk.f32.mxu1 %vm2128_vm2, %v4803_v43 }
 0x474   : > { %6892 = vmatmul.mubr.msk.f32.vlgmr.msra.gmra.mrb[16].mxu1 %vm2128_vm2, %v4804_v13 }
 0x475   : > { %6894 = vmatprep.mubr.msk.f32.mxu1 %vm2128_vm2, %v4805_v50  ;;  %7390 = vmatpush3.bf16.msra.mxu1 %v7387_v39  ;;  %v7411_v39 = vadd.f32 %v10132_v2, %v5512_v26 }
 0x476   : > { %7392 = vmatprep.subr.bf16.mxu1 %v7391_v40 }
 0x478   : > { %6895 = vmatmul.mubr.msk.f32.gmra.mrb[18].mxu1 %vm2128_vm2, %v4806_v4  ;;  %v10136_v4 = vld [vmem:[#allocation34_spill] sm:$0xff] }
 0x479   : > { %6897 = vmatprep.mubr.msk.f32.mxu1 %vm2128_vm2, %v4807_v14  ;;  %7394 = vmatpush3.bf16.msra.mxu1 %v7391_v40  ;;  %v7417_v9 = vadd.f32 %v10136_v4, %v5512_v26  ;;  %v10137_v14 = vld [vmem:[#allocation22_spill] sm:$0xff] }
 0x47c   : > { %6898 = vmatmul.mubr.msk.f32.gmra.mrb[20].mxu1 %vm2128_vm2, %v4808_v12  ;;  %v7412_v12 = vadd.f32 %v7411_v39, %v5619_v45 }
 0x47d   : > { %6900 = vmatprep.mubr.msk.f32.mxu1 %vm2128_vm2, %v4809_v53  ;;  %v7420_v53 = vadd.f32 %v5512_v26, %v10138_v20 }
 0x480   : > { %6901 = vmatmul.mubr.msk.f32.gmra.mrb[22].mxu1 %vm2128_vm2, %v4810_v47 }
 0x547   : > { %v6893_v24 = vpop.f32.mrb[16].mxu1 }
 0x548   : > { %v4961_v49 = vadd.f32 %v6893_v24, %v5618_v18  ;;  %v4906_v11 = vpop.f32.mrb[17].mxu1  ;;  %v7415_v24 = vadd.f32 %v7414_v3, %v5619_v45 }
 0x549   : > { %v4960_v51 = vadd.f32 %v5618_v18, %v4906_v11 }
 0x54a   : > { %v4969_v62 = vmax.f32 %v4961_v49, 0.0 }
 0x54b   : > { %v4968_v37 = vmax.f32 %v4960_v51, 0.0  ;;  %v6896_v42 = vpop.f32.mrb[18].mxu1 }
 0x54c   : > { %v4963_v31 = vadd.f32 %v6896_v42, %v5618_v18  ;;  %v4916_v56 = vpop.f32.mrb[19].mxu1 }
 0x54d   : > { %v4962_v52 = vadd.f32 %v5618_v18, %v4916_v56  ;;  %6911 = vmatprep.mubr.msk.f32.mxu1 %vm2128_vm2, %v4968_v37  ;;  %v10140_v37 = vld [vmem:[#allocation27_spill] sm:$0xff] }
 0x54e   : > { %6912 = vmatmul.mubr.msk.f32.vlgmr.msra.gmra.mrb[6].mxu1 %vm2128_vm2, %v4969_v62  ;;  %v4971_v7 = vmax.f32 %v4963_v31, 0.0  ;;  %v7418_v62 = vadd.f32 %v7417_v9, %v5619_v45  ;;  %v10141_v31 = vld [vmem:[#allocation26_spill] sm:$0xff] }
 0x54f   : > { %v4970_v30 = vmax.f32 %v4962_v52, 0.0  ;;  %v6899_v1 = vpop.f32.mrb[20].mxu1 }
 0x550   : > { %v4965_v5 = vadd.f32 %v6899_v1, %v5618_v18  ;;  %v4926_v28 = vpop.f32.mrb[21].mxu1 }
 0x551   : > { %v4964_v54 = vadd.f32 %v5618_v18, %v4926_v28  ;;  %6914 = vmatprep.mubr.msk.f32.mxu1 %vm2128_vm2, %v4970_v30  ;;  %v7421_v30 = vadd.f32 %v7420_v53, %v5619_v45  ;;  %v10142_v28 = vld [vmem:[#allocation29_spill] sm:$0xff] }
 0x552   : > { %6915 = vmatmul.mubr.msk.f32.gmra.mrb[0].mxu1 %vm2128_vm2, %v4971_v7  ;;  %v4973_v0 = vmax.f32 %v4965_v5, 0.0 }
 0x553   : > { %v4972_v34 = vmax.f32 %v4964_v54, 0.0  ;;  %v6902_v33 = vpop.f32.mrb[22].mxu1 }
 0x554   : > { %v4967_v27 = vadd.f32 %v6902_v33, %v5618_v18  ;;  %v4936_v48 = vpop.f32.mrb[23].mxu1 }
 0x555   : > { %v4966_v36 = vadd.f32 %v5618_v18, %v4936_v48  ;;  %6917 = vmatprep.mubr.msk.f32.mxu1 %vm2128_vm2, %v4972_v34  ;;  %v10143_v34 = vld [vmem:[#allocation28_spill] sm:$0xff] }
 0x556   : > { %6918 = vmatmul.mubr.msk.f32.gmra.mrb[2].mxu1 %vm2128_vm2, %v4973_v0  ;;  %v4975_v21 = vmax.f32 %v4967_v27, 0.0 }
 0x557   : > { %v4974_v63 = vmax.f32 %v4966_v36, 0.0 }
 0x559   : > { %6920 = vmatprep.mubr.msk.f32.mxu1 %vm2128_vm2, %v4974_v63 }
 0x55a   : > { %6921 = vmatmul.mubr.msk.f32.gmra.mrb[4].mxu1 %vm2128_vm2, %v4975_v21 }
 0x621   : > { %v6913_v61 = vpop.f32.mrb[6].mxu1 }
 0x622   : > { %v7400_v16 = vadd.f32 %v7399_v8, %v6913_v61  ;;  %v5077_v6 = vpop.f32.mrb[7].mxu1 }
 0x623   : > { %v7403_v58 = vadd.f32 %v7402_v25, %v5077_v6 }
 0x624   : > { %v7401_v57 = vadd.f32 %v7400_v16, %v5619_v45 }
 0x625   : > { %v7404_v59 = vadd.f32 %v7403_v58, %v5619_v45  ;;  %v6916_v43 = vpop.f32.mrb[0].mxu1 }
 0x626   : > { %v5125_v19 = vadd.f32 %v10134_v41, %v7401_v57  ;;  %v7407_v13 = vadd.f32 %v7406_v23, %v6916_v43  ;;  %v5087_v40 = vpop.f32.mrb[1].mxu1 }
 0x627   : > { %v5124_v50 = vadd.f32 %v10135_v46, %v7404_v59  ;;  %v7410_v32 = vadd.f32 %v7409_v55, %v5087_v40 }
 0x628   : > { %5133 = vst [vmem:[%s9842_s23 + $0x8] sm:$0xff] %v5125_v19  ;;  %v5127_v35 = vadd.f32 %v10137_v14, %v7407_v13 }
 0x629   : > { %5132 = vst [vmem:[%s9842_s23] sm:$0xff] %v5124_v50  ;;  %v5126_v47 = vadd.f32 %v10139_v29, %v7410_v32  ;;  %v6919_v18 = vpop.f32.mrb[2].mxu1 }
 0x62a   : > { %5135 = vst [vmem:[%s9842_s23 + $0x18] sm:$0xff] %v5127_v35  ;;  %v7413_v49 = vadd.f32 %v7412_v12, %v6919_v18  ;;  %v5097_v11 = vpop.f32.mrb[3].mxu1 }
 0x62b   : > { %5134 = vst [vmem:[%s9842_s23 + $0x10] sm:$0xff] %v5126_v47  ;;  %v7416_v51 = vadd.f32 %v7415_v24, %v5097_v11 }
 0x62c   : > { %v5129_v42 = vadd.f32 %v10140_v37, %v7413_v49 }
 0x62d   : > { %v5128_v56 = vadd.f32 %v10141_v31, %v7416_v51  ;;  %v6922_v52 = vpop.f32.mrb[4].mxu1 }
 0x62e   : > { %5137 = vst [vmem:[%s9842_s23 + $0x28] sm:$0xff] %v5129_v42  ;;  %v7419_v1 = vadd.f32 %v7418_v62, %v6922_v52  ;;  %v5107_v7 = vpop.f32.mrb[5].mxu1 }
 0x62f   : > { %5136 = vst [vmem:[%s9842_s23 + $0x20] sm:$0xff] %v5128_v56  ;;  %v7422_v5 = vadd.f32 %v7421_v30, %v5107_v7 }
 0x630   : > { %v5131_v54 = vadd.f32 %v10142_v28, %v7419_v1 }
 0x631   : > { %v5130_v33 = vadd.f32 %v10143_v34, %v7422_v5 }
 0x632   : > { %5139 = vst [vmem:[%s9842_s23 + $0x38] sm:$0xff] %v5131_v54 }
 0x633   : > { %5138 = vst [vmem:[%s9842_s23 + $0x30] sm:$0xff] %v5130_v33 }
 0x634   : > { %7680 = shalt.err (!%p7677_p3)
}
 0x635   : > { %s7681_s28 = scalar_lea.hbm %s9861_s16, 1024  ;;  %s7685_s27 = scalar_lea.hbm %s9923_s12, 2048 }
 0x636   : > { %p7682_p4 = scmp.ne.s32.totalorder %s9861_s16, %s7681_s28  ;;  %p7686_p9 = scmp.lt.u32.totalorder %s9861_s16, %s9923_s12 }
 0x637   : > { %p7687_p10 = scmp.lt.u32.totalorder %s7685_s27, %s7681_s28  ;;  %p7689_p12 = scmp.lt.u32.totalorder %s7681_s28, %s9861_s16 }
 0x638   : > { %p7683_p7 = pnand %p7682_p4, %p7838_p5 }
 0x639   : > { %p7688_p11 = por %p7687_p10, %p7686_p9 }
 0x63a   : > { %p7684_p8 = pneg %p7683_p7 }
 0x63b   : > { %p7690_p13 = por %p7689_p12, %p7688_p11 }
 0x63d   : > { %p7691_p0 = pnand %p7690_p13, %p7684_p8 }
 0x63f   : > { %7694 = shalt.err (!%p7691_p0)
}
 0x640   : > { %s7733_s17 = smov 128   ;;  %s7734_s30 = smov 8  }
 0x641   : > { %7615 = dma.vmem_to_hbm [thread:$0]  (%p7838_p5), %s9863_s26, 1024, %s9861_s16, %s9870_s25, %s7733_s17, %s7733_s17, %s7734_s30  }
 0x642 PF: > { %p7621_p1 = scmp.ge.s32.totalorder %s7729_s24, 2  ;;  %s5169_s18 = sand.u32 1, %s7717_s21  }
 0x643   : > { %s5170_s19 = scalar_lea.sflag [#allocation3], %s5169_s18 }
 0x644   : > { %p7618_p2 = pnand %p7621_p1, %p7842_p6 }
 0x646   : > { %7712 = dma.done.wait (!%p7618_p2), %s5170_s19, 1024  }
 0x647   : > { %7714 = vsyncadd (!%p7618_p2), %s5170_s19, 4294966272  ;;  %s10144_s24 = sld [smem:[#allocation6_spill]]  ;;  %s10145_s28 = sld [smem:[#allocation5_spill]] }
 0x648   : > { %s10146_s23 = sld [smem:[#allocation7_spill]]  ;;  %s10147_s21 = smov %s7721_s22 }
 0x64d   : > { %p22_p3 = scmp.ge.s32.totalorder %s10144_s24, 4   ;;  %s10148_s22 = smov %s10145_s28 }
 0x64f   :  { %24 = sbr.rel (!%p22_p3) target bundleno = 3 (0x3), region = 134 }
 0x656   :  { %5175 = vsyncpa [#allocation3], 1 }
 0x657   :  { %5177 = vsyncpa [#allocation3 + $0x1], 1 }

</bundles_post_ra>
